<compile_context>
chip_gen: v7x
topology: tpu7x:2x2x1
jax: 0.10.0
libtpu: 0.0.40
codegen_flags: <defaults>
</compile_context>

<pallas_src>
import jax
import jax.numpy as jnp
from jax.experimental import pallas as pl
from jax.experimental.pallas import tpu as pltpu

LANE = 128
EPS = 1e-5


def _round_up(x, m):
    return (x + m - 1) // m * m


def _dense_block_kernel(blk_ref, x_hbm, gamma_ref, beta_ref, w_ref, b_ref,
                        o_ref, pad_ref, mean_ref, var_ref, copy_sem):
    """One DenseBlock stage per grid step; the channel slab stays resident in o_ref.

    blk_ref:   (num_convs,) SMEM      first 128-channel block each stage writes into
    x_hbm:     (NB, N, H, W, 128)     input slab in HBM (channel-block-major, zero padded)
    gamma_ref: (1, NB, 128)           this stage's BN scale  (zero beyond its Cin)
    beta_ref:  (1, NB, 128)           this stage's BN shift
    w_ref:     (1, NB*9, 128, WIN)    this stage's conv weights, bf16, per (block, ky, kx) tap;
                                      the Cout real channels sit at their in-window lane offset
    b_ref:     (1, 1, WIN)            conv bias at the in-window lane offset
    o_ref:     (NB, N, H, W, 128)     resident slab = concat(input, stage0, stage1, ...)
    pad_ref:   (NB, N, H+2, Wp, 128)  bf16 scratch: spatially halo'd activations
    mean_ref/var_ref: (NB, 8, 128)    resident per-channel batch statistics (row 0 used)
    """
    nb, n, h, w, lane = o_ref.shape
    _, _, _, wpad, _ = pad_ref.shape
    nhw = n * h * w
    win = w_ref.shape[-1]
    inv_nhw = 1.0 / float(nhw)
    s = pl.program_id(0)

    @pl.when(s == 0)
    def _init():
        # Pull the zero-padded input slab straight into the resident output accumulator
        # (no duplicate VMEM copy of the slab).
        cp = pltpu.make_async_copy(x_hbm, o_ref, copy_sem)
        cp.start()
        cp.wait()
        # Zero ONLY the 1-pixel halo ring of the bf16 conv-input scratch, once; the
        # interior is fully overwritten by every stage, the extra sublane-padding
        # columns are never read.
        pad_ref[:, :, 0:1, :, :] = jnp.zeros((nb, n, 1, wpad, lane), jnp.bfloat16)
        pad_ref[:, :, h + 1:h + 2, :, :] = jnp.zeros((nb, n, 1, wpad, lane), jnp.bfloat16)
        pad_ref[:, :, :, 0:1, :] = jnp.zeros((nb, n, h + 2, 1, lane), jnp.bfloat16)
        pad_ref[:, :, :, w + 1:w + 2, :] = jnp.zeros((nb, n, h + 2, 1, lane), jnp.bfloat16)
        # Initial per-channel batch statistics (two-pass, f32).  Channels never change
        # once written, so these stay valid; later stages only re-reduce the block they add.
        x_all = o_ref[...].reshape(nb, nhw, lane)
        mu = jnp.sum(x_all, axis=1, keepdims=True) * inv_nhw
        mean_ref[:, 0:1, :] = mu
        var_ref[:, 0:1, :] = jnp.sum((x_all - mu) ** 2, axis=1, keepdims=True) * inv_nhw

    # ---- BatchNorm2d (training stats) folded to per-channel scale/shift, then ReLU ----
    mu = mean_ref[:, 0:1, :]
    va = var_ref[:, 0:1, :]
    scale = gamma_ref[0].reshape(nb, 1, lane) * jax.lax.rsqrt(va + EPS)
    shift = beta_ref[0].reshape(nb, 1, lane) - mu * scale
    x_all = o_ref[...].reshape(nb, nhw, lane)
    act = jnp.maximum(x_all * scale + shift, 0.0).astype(jnp.bfloat16)
    pad_ref[:, :, 1:h + 1, 1:w + 1, :] = act.reshape(nb, n, h, w, lane)

    # ---- 3x3 conv as 9*NB tap-wise accumulating matmuls (no materialized im2col) ----
    acc = jnp.zeros((nhw, win), jnp.float32) + b_ref[0]
    for cb in range(nb):                       # static: channel blocks (K = 128 each)
        for dy in range(3):
            for dx in range(3):
                tap = pad_ref[cb, :, dy:dy + h, dx:dx + w, :].reshape(nhw, lane)
                acc = acc + jnp.dot(tap, w_ref[0, cb * 9 + dy * 3 + dx],
                                    preferred_element_type=jnp.float32)

    # ---- fused channel-concat: add only into the 128-lane block(s) this stage owns ----
    # acc is exactly zero outside [coff, coff+Cout) (weights/bias padded with exact zeros),
    # so the add extends the slab without touching previously written channels.
    blk0 = blk_ref[s]
    for j in range(win // lane):               # static; usually 1
        blk = blk0 + j
        upd = o_ref[blk].reshape(nhw, lane) + acc[:, j * lane:(j + 1) * lane]
        o_ref[blk] = upd.reshape(n, h, w, lane)
        # refresh the resident statistics of just this block (two-pass, f32)
        mu_b = jnp.sum(upd, axis=0, keepdims=True) * inv_nhw
        mean_ref[blk, 0:1, :] = mu_b
        var_ref[blk, 0:1, :] = jnp.sum((upd - mu_b) ** 2, axis=0, keepdims=True) * inv_nhw


def dense_block_forward(x_nchw, params):
    """DenseBlock.forward: for each block, Y = Conv3x3(ReLU(BN(X))); X = cat([X, Y], C)."""
    num_convs = len(params)
    N, cin0, H, W = x_nchw.shape
    cout = params[0][2].shape[0]
    c_total = cin0 + num_convs * cout
    cp = _round_up(c_total, LANE)
    nb = cp // LANE
    wp = _round_up(W + 2, 8)

    # per-stage output-channel offsets and the 128-aligned window that contains them
    coffs = [cin0 + s * cout for s in range(num_convs)]
    blk0s = [c // LANE for c in coffs]
    win_blocks = max((coffs[s] + cout - 1) // LANE - blk0s[s] + 1 for s in range(num_convs))
    win = win_blocks * LANE

    # input slab: NCHW -> NHWC -> zero-pad channels to Cp -> channel-block-major
    x = jnp.transpose(x_nchw, (0, 2, 3, 1)).astype(jnp.float32)
    x = jnp.pad(x, ((0, 0), (0, 0), (0, 0), (0, cp - cin0)))
    x = jnp.transpose(x.reshape(N, H, W, nb, LANE), (3, 0, 1, 2, 4))

    gammas = jnp.zeros((num_convs, cp), jnp.float32)
    betas = jnp.zeros((num_convs, cp), jnp.float32)
    biases = jnp.zeros((num_convs, 1, win), jnp.float32)
    weights = jnp.zeros((num_convs, 3, 3, cp, win), jnp.float32)
    for s, (gamma, beta, w, b) in enumerate(params):
        cin = cin0 + s * cout
        loc = coffs[s] - blk0s[s] * LANE       # lane offset inside this stage's window
        gammas = gammas.at[s, :cin].set(gamma)
        betas = betas.at[s, :cin].set(beta)
        biases = biases.at[s, 0, loc:loc + cout].set(b)
        # torch (Cout, Cin, kh, kw) -> (kh, kw, Cin, Cout), placed at its window offset
        weights = weights.at[s, :, :, :cin, loc:loc + cout].set(jnp.transpose(w, (2, 3, 1, 0)))
    gammas = gammas.reshape(num_convs, nb, LANE)
    betas = betas.reshape(num_convs, nb, LANE)
    # (s, ky, kx, Cp, win) -> (s, cb, ky, kx, 128, win) -> (s, cb*9, 128, win), bf16
    weights = jnp.transpose(weights.reshape(num_convs, 3, 3, nb, LANE, win),
                            (0, 3, 1, 2, 4, 5)).reshape(num_convs, nb * 9, LANE, win)
    weights = weights.astype(jnp.bfloat16)
    blk_idx = jnp.array(blk0s, jnp.int32)

    grid_spec = pltpu.PrefetchScalarGridSpec(
        num_scalar_prefetch=1,
        grid=(num_convs,),
        in_specs=[
            pl.BlockSpec(memory_space=pl.ANY),                                  # input slab (HBM)
            pl.BlockSpec((1, nb, LANE), lambda s, blk: (s, 0, 0)),              # gamma
            pl.BlockSpec((1, nb, LANE), lambda s, blk: (s, 0, 0)),              # beta
            pl.BlockSpec((1, nb * 9, LANE, win), lambda s, blk: (s, 0, 0, 0)),  # conv weights
            pl.BlockSpec((1, 1, win), lambda s, blk: (s, 0, 0)),                # conv bias
        ],
        out_specs=pl.BlockSpec((nb, N, H, W, LANE), lambda s, blk: (0, 0, 0, 0, 0)),
        scratch_shapes=[
            pltpu.VMEM((nb, N, H + 2, wp, LANE), jnp.bfloat16),  # halo'd activations (bf16)
            pltpu.VMEM((nb, 8, LANE), jnp.float32),              # resident per-channel mean
            pltpu.VMEM((nb, 8, LANE), jnp.float32),              # resident per-channel var
            pltpu.SemaphoreType.DMA,                             # input-slab copy semaphore
        ],
    )

    # scoped-VMEM sized to the actual working set (slab + halo + streamed weights + temps)
    vmem_bytes = (nb * N * H * W * LANE * 4
                  + nb * N * (H + 2) * wp * LANE * 2
                  + 2 * nb * 9 * LANE * win * 2
                  + 2 * (2 * nb * LANE + win) * 4
                  + 2 * nb * 8 * LANE * 4
                  + 4 * N * H * W * win * 4)
    vmem_limit = int(min(100 * 1024 * 1024, max(32 * 1024 * 1024, 2 * vmem_bytes)))

    slab = pl.pallas_call(
        _dense_block_kernel,
        out_shape=jax.ShapeDtypeStruct((nb, N, H, W, LANE), jnp.float32),
        grid_spec=grid_spec,
        compiler_params=pltpu.CompilerParams(
            dimension_semantics=("arbitrary",),
            vmem_limit_bytes=vmem_limit,
        ),
    )(blk_idx, x, gammas, betas, weights, biases)

    # channel-block-major -> NHWC, drop lane padding, back to PyTorch NCHW
    out = jnp.transpose(slab, (1, 2, 3, 0, 4)).reshape(N, H, W, cp)[..., :c_total]
    return jnp.transpose(out, (0, 3, 1, 2))


def init_dense_block_params(key, num_convs, in_channels, out_channels):
    """Deterministic synthetic params (BN gamma=1/beta=0 as module init; random conv w/b)."""
    params = []
    for i in range(num_convs):
        in_c = in_channels + i * out_channels
        key, kw, kb = jax.random.split(key, 3)
        w = jax.random.normal(kw, (out_channels, in_c, 3, 3), jnp.float32) * 0.1
        b = jax.random.normal(kb, (out_channels,), jnp.float32) * 0.1
        gamma = jnp.ones((in_c,), jnp.float32)
        beta = jnp.zeros((in_c,), jnp.float32)
        params.append((gamma, beta, w, b))
    return params


def _ref_forward(x_nchw, params):
    """Pure-JAX reference with matching precision (folded BN in f32, bf16 conv, f32 acc)."""
    x = jnp.transpose(x_nchw, (0, 2, 3, 1)).astype(jnp.float32)
    for gamma, beta, w, b in params:
        mean = jnp.mean(x, axis=(0, 1, 2), keepdims=True)
        var = jnp.mean((x - mean) ** 2, axis=(0, 1, 2), keepdims=True)
        scale = gamma * jax.lax.rsqrt(var + EPS)
        shift = beta - mean * scale
        a = jnp.maximum(x * scale + shift, 0.0)
        y = jax.lax.conv_general_dilated(
            a.astype(jnp.bfloat16),
            jnp.transpose(w, (2, 3, 1, 0)).astype(jnp.bfloat16),
            (1, 1), "SAME",
            dimension_numbers=("NHWC", "HWIO", "NHWC"),
            preferred_element_type=jnp.float32) + b
        x = jnp.concatenate([x, y], axis=-1)
    return jnp.transpose(x, (0, 3, 1, 2))


if __name__ == "__main__":
    # Same configuration as the d2l example: DenseBlock(2, 3, 10) on X of shape (4, 3, 8, 8).
    num_convs, in_channels, out_channels = 2, 3, 10
    key = jax.random.PRNGKey(0)
    key, kx = jax.random.split(key)
    x = jax.random.uniform(kx, (4, in_channels, 8, 8), jnp.float32)

    params = init_dense_block_params(key, num_convs, in_channels, out_channels)

    out = jax.block_until_ready(dense_block_forward(x, params))
    expected_channels = in_channels + num_convs * out_channels
    assert out.shape == (4, expected_channels, 8, 8), out.shape

    ref = jax.block_until_ready(_ref_forward(x, params))
    err = float(jnp.max(jnp.abs(out - ref)))
    assert jnp.allclose(out, ref, rtol=2e-3, atol=2e-3), err

    print("KERNEL_OK")
</pallas_src>

<mosaic_0001>
module attributes {stable_mosaic.version = 11 : i64} {
  func.func @_dense_block_kernel(%arg0: i32, %arg1: memref<2xi32, #tpu.memory_space<smem>>, %arg2: memref<1x4x8x8x128xf32, #tpu.memory_space<any>>, %arg3: memref<1x1x128xf32, #tpu.memory_space<vmem>>, %arg4: memref<1x1x128xf32, #tpu.memory_space<vmem>>, %arg5: memref<1x9x128x128xbf16, #tpu.memory_space<vmem>>, %arg6: memref<1x1x128xf32, #tpu.memory_space<vmem>>, %arg7: memref<1x4x8x8x128xf32, #tpu.memory_space<vmem>>, %arg8: memref<1x4x10x16x128xbf16, #tpu.memory_space<vmem>>, %arg9: memref<1x8x128xf32, #tpu.memory_space<vmem>>, %arg10: memref<1x8x128xf32, #tpu.memory_space<vmem>>, %arg11: memref<!tpu.dma_semaphore, #tpu.memory_space<semaphore_mem>>) attributes {dimension_semantics = [#tpu.dimension_semantics<arbitrary>], iteration_bounds = array<i64: 2>, scalar_prefetch = 1 : i64, scratch_operands = 4 : i64, tpu.core_type = #tpu.core_type<tc>, window_params = [{}, {transform_indices = @transform_1, window_bounds = array<i64: 1, 1, 128>}, {transform_indices = @transform_2, window_bounds = array<i64: 1, 1, 128>}, {transform_indices = @transform_3, window_bounds = array<i64: 1, 9, 128, 128>}, {transform_indices = @transform_4, window_bounds = array<i64: 1, 1, 128>}, {pipeline_mode = #tpu.pipeline_mode<synchronous>, transform_indices = @transform_5, window_bounds = array<i64: 1, 4, 8, 8, 128>}]} {
    %c0_i32 = arith.constant 0 : i32
    %0 = arith.cmpi eq, %arg0, %c0_i32 : i32
    %1 = arith.extui %0 : i1 to i32
    %c0_i32_0 = arith.constant 0 : i32
    %2 = arith.cmpi ne, %1, %c0_i32_0 : i32
    scf.if %2 {
      tpu.enqueue_dma source(%arg2 : memref<1x4x8x8x128xf32, #tpu.memory_space<any>>) target(%arg7 : memref<1x4x8x8x128xf32, #tpu.memory_space<vmem>>) target_semaphore(%arg11 : memref<!tpu.dma_semaphore, #tpu.memory_space<semaphore_mem>>)
      tpu.wait_dma2 semaphore(%arg11 : memref<!tpu.dma_semaphore, #tpu.memory_space<semaphore_mem>>) src(%arg2 : memref<1x4x8x8x128xf32, #tpu.memory_space<any>>) dst(%arg7 : memref<1x4x8x8x128xf32, #tpu.memory_space<vmem>>)
      %cst_126 = arith.constant 0.000000e+00 : bf16
      %128 = vector.broadcast %cst_126 : bf16 to vector<1x4x1x16x128xbf16>
      %c0_127 = arith.constant 0 : index
      %c0_128 = arith.constant 0 : index
      %c0_129 = arith.constant 0 : index
      %c0_130 = arith.constant 0 : index
      %c0_131 = arith.constant 0 : index
      %129 = vector.load %arg8[%c0_127, %c0_128, %c0_129, %c0_130, %c0_131] : memref<1x4x10x16x128xbf16, #tpu.memory_space<vmem>>, vector<1x4x1x16x128xbf16>
      tpu.vector_store %arg8[%c0_127, %c0_128, %c0_129, %c0_130, %c0_131], %128 {strides = array<i32>} : memref<1x4x10x16x128xbf16, #tpu.memory_space<vmem>>, vector<1x4x1x16x128xbf16>,
      %cst_132 = arith.constant 0.000000e+00 : bf16
      %130 = vector.broadcast %cst_132 : bf16 to vector<1x4x1x16x128xbf16>
      %c0_133 = arith.constant 0 : index
      %c0_134 = arith.constant 0 : index
      %c9 = arith.constant 9 : index
      %c0_135 = arith.constant 0 : index
      %c0_136 = arith.constant 0 : index
      %131 = vector.load %arg8[%c0_133, %c0_134, %c9, %c0_135, %c0_136] : memref<1x4x10x16x128xbf16, #tpu.memory_space<vmem>>, vector<1x4x1x16x128xbf16>
      tpu.vector_store %arg8[%c0_133, %c0_134, %c9, %c0_135, %c0_136], %130 {strides = array<i32>} : memref<1x4x10x16x128xbf16, #tpu.memory_space<vmem>>, vector<1x4x1x16x128xbf16>,
      %cst_137 = arith.constant 0.000000e+00 : bf16
      %132 = vector.broadcast %cst_137 : bf16 to vector<1x4x10x1x128xbf16>
      %c0_138 = arith.constant 0 : index
      %c0_139 = arith.constant 0 : index
      %c0_140 = arith.constant 0 : index
      %c0_141 = arith.constant 0 : index
      %c0_142 = arith.constant 0 : index
      %133 = vector.load %arg8[%c0_138, %c0_139, %c0_140, %c0_141, %c0_142] : memref<1x4x10x16x128xbf16, #tpu.memory_space<vmem>>, vector<1x4x10x1x128xbf16>
      tpu.vector_store %arg8[%c0_138, %c0_139, %c0_140, %c0_141, %c0_142], %132 {strides = array<i32>} : memref<1x4x10x16x128xbf16, #tpu.memory_space<vmem>>, vector<1x4x10x1x128xbf16>,
      %cst_143 = arith.constant 0.000000e+00 : bf16
      %134 = vector.broadcast %cst_143 : bf16 to vector<1x4x10x1x128xbf16>
      %c0_144 = arith.constant 0 : index
      %c0_145 = arith.constant 0 : index
      %c0_146 = arith.constant 0 : index
      %c9_147 = arith.constant 9 : index
      %c0_148 = arith.constant 0 : index
      %135 = vector.load %arg8[%c0_144, %c0_145, %c0_146, %c9_147, %c0_148] : memref<1x4x10x16x128xbf16, #tpu.memory_space<vmem>>, vector<1x4x10x1x128xbf16>
      tpu.vector_store %arg8[%c0_144, %c0_145, %c0_146, %c9_147, %c0_148], %134 {strides = array<i32>} : memref<1x4x10x16x128xbf16, #tpu.memory_space<vmem>>, vector<1x4x10x1x128xbf16>,
      %c0_149 = arith.constant 0 : index
      %c0_150 = arith.constant 0 : index
      %c0_151 = arith.constant 0 : index
      %c0_152 = arith.constant 0 : index
      %c0_153 = arith.constant 0 : index
      %136 = vector.load %arg7[%c0_149, %c0_150, %c0_151, %c0_152, %c0_153] : memref<1x4x8x8x128xf32, #tpu.memory_space<vmem>>, vector<1x4x8x8x128xf32>
      %137 = vector.shape_cast %136 : vector<1x4x8x8x128xf32> to vector<1x256x128xf32>
      %cst_154 = arith.constant dense<0.000000e+00> : vector<1x128xf32>
      %138 = vector.multi_reduction <add>, %137, %cst_154 [1] : vector<1x256x128xf32> to vector<1x128xf32>
      %139 = vector.shape_cast %138 : vector<1x128xf32> to vector<1x1x128xf32>
      %cst_155 = arith.constant 3.906250e-03 : f32
      %140 = vector.broadcast %cst_155 : f32 to vector<1x1x128xf32>
      %141 = arith.mulf %139, %140 : vector<1x1x128xf32>
      %c0_156 = arith.constant 0 : index
      %c0_157 = arith.constant 0 : index
      %c0_158 = arith.constant 0 : index
      %142 = vector.load %arg9[%c0_156, %c0_157, %c0_158] : memref<1x8x128xf32, #tpu.memory_space<vmem>>, vector<1x1x128xf32>
      tpu.vector_store %arg9[%c0_156, %c0_157, %c0_158], %141 {strides = array<i32>} : memref<1x8x128xf32, #tpu.memory_space<vmem>>, vector<1x1x128xf32>,
      %143 = vector.broadcast %141 : vector<1x1x128xf32> to vector<1x256x128xf32>
      %144 = arith.subf %137, %143 : vector<1x256x128xf32>
      %145 = arith.mulf %144, %144 : vector<1x256x128xf32>
      %cst_159 = arith.constant dense<0.000000e+00> : vector<1x128xf32>
      %146 = vector.multi_reduction <add>, %145, %cst_159 [1] : vector<1x256x128xf32> to vector<1x128xf32>
      %147 = vector.shape_cast %146 : vector<1x128xf32> to vector<1x1x128xf32>
      %cst_160 = arith.constant 3.906250e-03 : f32
      %148 = vector.broadcast %cst_160 : f32 to vector<1x1x128xf32>
      %149 = arith.mulf %147, %148 : vector<1x1x128xf32>
      %c0_161 = arith.constant 0 : index
      %c0_162 = arith.constant 0 : index
      %c0_163 = arith.constant 0 : index
      %150 = vector.load %arg10[%c0_161, %c0_162, %c0_163] : memref<1x8x128xf32, #tpu.memory_space<vmem>>, vector<1x1x128xf32>
      tpu.vector_store %arg10[%c0_161, %c0_162, %c0_163], %149 {strides = array<i32>} : memref<1x8x128xf32, #tpu.memory_space<vmem>>, vector<1x1x128xf32>,
    } else {
    }
    %c0 = arith.constant 0 : index
    %c0_1 = arith.constant 0 : index
    %c0_2 = arith.constant 0 : index
    %3 = vector.load %arg9[%c0, %c0_1, %c0_2] : memref<1x8x128xf32, #tpu.memory_space<vmem>>, vector<1x1x128xf32>
    %c0_3 = arith.constant 0 : index
    %c0_4 = arith.constant 0 : index
    %c0_5 = arith.constant 0 : index
    %4 = vector.load %arg10[%c0_3, %c0_4, %c0_5] : memref<1x8x128xf32, #tpu.memory_space<vmem>>, vector<1x1x128xf32>
    %c0_6 = arith.constant 0 : index
    %c0_7 = arith.constant 0 : index
    %c0_8 = arith.constant 0 : index
    %5 = vector.load %arg3[%c0_6, %c0_7, %c0_8] : memref<1x1x128xf32, #tpu.memory_space<vmem>>, vector<1x1x128xf32>
    %6 = vector.shape_cast %5 : vector<1x1x128xf32> to vector<1x128xf32>
    %7 = vector.shape_cast %6 : vector<1x128xf32> to vector<1x1x128xf32>
    %cst = arith.constant 9.99999974E-6 : f32
    %8 = vector.broadcast %cst : f32 to vector<1x1x128xf32>
    %9 = arith.addf %4, %8 : vector<1x1x128xf32>
    %10 = math.rsqrt %9 : vector<1x1x128xf32>
    %11 = arith.mulf %7, %10 : vector<1x1x128xf32>
    %c0_9 = arith.constant 0 : index
    %c0_10 = arith.constant 0 : index
    %c0_11 = arith.constant 0 : index
    %12 = vector.load %arg4[%c0_9, %c0_10, %c0_11] : memref<1x1x128xf32, #tpu.memory_space<vmem>>, vector<1x1x128xf32>
    %13 = vector.shape_cast %12 : vector<1x1x128xf32> to vector<1x128xf32>
    %14 = vector.shape_cast %13 : vector<1x128xf32> to vector<1x1x128xf32>
    %15 = arith.mulf %3, %11 : vector<1x1x128xf32>
    %16 = arith.subf %14, %15 : vector<1x1x128xf32>
    %c0_12 = arith.constant 0 : index
    %c0_13 = arith.constant 0 : index
    %c0_14 = arith.constant 0 : index
    %c0_15 = arith.constant 0 : index
    %c0_16 = arith.constant 0 : index
    %17 = vector.load %arg7[%c0_12, %c0_13, %c0_14, %c0_15, %c0_16] : memref<1x4x8x8x128xf32, #tpu.memory_space<vmem>>, vector<1x4x8x8x128xf32>
    %18 = vector.shape_cast %17 : vector<1x4x8x8x128xf32> to vector<1x256x128xf32>
    %19 = vector.broadcast %11 : vector<1x1x128xf32> to vector<1x256x128xf32>
    %20 = arith.mulf %18, %19 : vector<1x256x128xf32>
    %21 = vector.broadcast %16 : vector<1x1x128xf32> to vector<1x256x128xf32>
    %22 = arith.addf %20, %21 : vector<1x256x128xf32>
    %cst_17 = arith.constant 0.000000e+00 : f32
    %23 = vector.broadcast %cst_17 : f32 to vector<1x256x128xf32>
    %24 = arith.maximumf %22, %23 : vector<1x256x128xf32>
    %25 = arith.truncf %24 : vector<1x256x128xf32> to vector<1x256x128xbf16>
    %26 = vector.shape_cast %25 : vector<1x256x128xbf16> to vector<1x4x8x8x128xbf16>
    %c0_18 = arith.constant 0 : index
    %c0_19 = arith.constant 0 : index
    %c1 = arith.constant 1 : index
    %c1_20 = arith.constant 1 : index
    %c0_21 = arith.constant 0 : index
    %27 = vector.load %arg8[%c0_18, %c0_19, %c1, %c1_20, %c0_21] : memref<1x4x10x16x128xbf16, #tpu.memory_space<vmem>>, vector<1x4x8x8x128xbf16>
    tpu.vector_store %arg8[%c0_18, %c0_19, %c1, %c1_20, %c0_21], %26 {strides = array<i32>} : memref<1x4x10x16x128xbf16, #tpu.memory_space<vmem>>, vector<1x4x8x8x128xbf16>,
    %cst_22 = arith.constant 0.000000e+00 : f32
    %28 = vector.broadcast %cst_22 : f32 to vector<256x128xf32>
    %c0_23 = arith.constant 0 : index
    %c0_24 = arith.constant 0 : index
    %c0_25 = arith.constant 0 : index
    %29 = vector.load %arg6[%c0_23, %c0_24, %c0_25] : memref<1x1x128xf32, #tpu.memory_space<vmem>>, vector<1x1x128xf32>
    %30 = vector.shape_cast %29 : vector<1x1x128xf32> to vector<1x128xf32>
    %31 = vector.broadcast %30 : vector<1x128xf32> to vector<256x128xf32>
    %32 = arith.addf %28, %31 : vector<256x128xf32>
    %c0_26 = arith.constant 0 : index
    %c0_27 = arith.constant 0 : index
    %c0_28 = arith.constant 0 : index
    %c0_29 = arith.constant 0 : index
    %c0_30 = arith.constant 0 : index
    %33 = vector.load %arg8[%c0_26, %c0_27, %c0_28, %c0_29, %c0_30] : memref<1x4x10x16x128xbf16, #tpu.memory_space<vmem>>, vector<1x4x8x8x128xbf16>
    %34 = vector.shape_cast %33 : vector<1x4x8x8x128xbf16> to vector<4x8x8x128xbf16>
    %35 = vector.shape_cast %34 : vector<4x8x8x128xbf16> to vector<256x128xbf16>
    %c0_31 = arith.constant 0 : index
    %c0_32 = arith.constant 0 : index
    %c0_33 = arith.constant 0 : index
    %c0_34 = arith.constant 0 : index
    %36 = vector.load %arg5[%c0_31, %c0_32, %c0_33, %c0_34] : memref<1x9x128x128xbf16, #tpu.memory_space<vmem>>, vector<1x1x128x128xbf16>
    %37 = vector.shape_cast %36 : vector<1x1x128x128xbf16> to vector<128x128xbf16>
    %cst_35 = arith.constant dense<0.000000e+00> : vector<256x128xf32>
    %38 = tpu.matmul %35, %37, %cst_35 {dimension_numbers = #tpu.dot_dimension_numbers<[1], [0], [0], [1], [0, 0, 1, 1], [], []>} : vector<256x128xbf16>, vector<128x128xbf16>, vector<256x128xf32> -> vector<256x128xf32>
    %39 = arith.addf %32, %38 : vector<256x128xf32>
    %c0_36 = arith.constant 0 : index
    %c0_37 = arith.constant 0 : index
    %c0_38 = arith.constant 0 : index
    %c1_39 = arith.constant 1 : index
    %c0_40 = arith.constant 0 : index
    %40 = vector.load %arg8[%c0_36, %c0_37, %c0_38, %c1_39, %c0_40] : memref<1x4x10x16x128xbf16, #tpu.memory_space<vmem>>, vector<1x4x8x8x128xbf16>
    %41 = vector.shape_cast %40 : vector<1x4x8x8x128xbf16> to vector<4x8x8x128xbf16>
    %42 = vector.shape_cast %41 : vector<4x8x8x128xbf16> to vector<256x128xbf16>
    %c0_41 = arith.constant 0 : index
    %c1_42 = arith.constant 1 : index
    %c0_43 = arith.constant 0 : index
    %c0_44 = arith.constant 0 : index
    %43 = vector.load %arg5[%c0_41, %c1_42, %c0_43, %c0_44] : memref<1x9x128x128xbf16, #tpu.memory_space<vmem>>, vector<1x1x128x128xbf16>
    %44 = vector.shape_cast %43 : vector<1x1x128x128xbf16> to vector<128x128xbf16>
    %cst_45 = arith.constant dense<0.000000e+00> : vector<256x128xf32>
    %45 = tpu.matmul %42, %44, %cst_45 {dimension_numbers = #tpu.dot_dimension_numbers<[1], [0], [0], [1], [0, 0, 1, 1], [], []>} : vector<256x128xbf16>, vector<128x128xbf16>, vector<256x128xf32> -> vector<256x128xf32>
    %46 = arith.addf %39, %45 : vector<256x128xf32>
    %c0_46 = arith.constant 0 : index
    %c0_47 = arith.constant 0 : index
    %c0_48 = arith.constant 0 : index
    %c2 = arith.constant 2 : index
    %c0_49 = arith.constant 0 : index
    %47 = vector.load %arg8[%c0_46, %c0_47, %c0_48, %c2, %c0_49] : memref<1x4x10x16x128xbf16, #tpu.memory_space<vmem>>, vector<1x4x8x8x128xbf16>
    %48 = vector.shape_cast %47 : vector<1x4x8x8x128xbf16> to vector<4x8x8x128xbf16>
    %49 = vector.shape_cast %48 : vector<4x8x8x128xbf16> to vector<256x128xbf16>
    %c0_50 = arith.constant 0 : index
    %c2_51 = arith.constant 2 : index
    %c0_52 = arith.constant 0 : index
    %c0_53 = arith.constant 0 : index
    %50 = vector.load %arg5[%c0_50, %c2_51, %c0_52, %c0_53] : memref<1x9x128x128xbf16, #tpu.memory_space<vmem>>, vector<1x1x128x128xbf16>
    %51 = vector.shape_cast %50 : vector<1x1x128x128xbf16> to vector<128x128xbf16>
    %cst_54 = arith.constant dense<0.000000e+00> : vector<256x128xf32>
    %52 = tpu.matmul %49, %51, %cst_54 {dimension_numbers = #tpu.dot_dimension_numbers<[1], [0], [0], [1], [0, 0, 1, 1], [], []>} : vector<256x128xbf16>, vector<128x128xbf16>, vector<256x128xf32> -> vector<256x128xf32>
    %53 = arith.addf %46, %52 : vector<256x128xf32>
    %c0_55 = arith.constant 0 : index
    %c0_56 = arith.constant 0 : index
    %c1_57 = arith.constant 1 : index
    %c0_58 = arith.constant 0 : index
    %c0_59 = arith.constant 0 : index
    %54 = vector.load %arg8[%c0_55, %c0_56, %c1_57, %c0_58, %c0_59] : memref<1x4x10x16x128xbf16, #tpu.memory_space<vmem>>, vector<1x4x8x8x128xbf16>
    %55 = vector.shape_cast %54 : vector<1x4x8x8x128xbf16> to vector<4x8x8x128xbf16>
    %56 = vector.shape_cast %55 : vector<4x8x8x128xbf16> to vector<256x128xbf16>
    %c0_60 = arith.constant 0 : index
    %c3 = arith.constant 3 : index
    %c0_61 = arith.constant 0 : index
    %c0_62 = arith.constant 0 : index
    %57 = vector.load %arg5[%c0_60, %c3, %c0_61, %c0_62] : memref<1x9x128x128xbf16, #tpu.memory_space<vmem>>, vector<1x1x128x128xbf16>
    %58 = vector.shape_cast %57 : vector<1x1x128x128xbf16> to vector<128x128xbf16>
    %cst_63 = arith.constant dense<0.000000e+00> : vector<256x128xf32>
    %59 = tpu.matmul %56, %58, %cst_63 {dimension_numbers = #tpu.dot_dimension_numbers<[1], [0], [0], [1], [0, 0, 1, 1], [], []>} : vector<256x128xbf16>, vector<128x128xbf16>, vector<256x128xf32> -> vector<256x128xf32>
    %60 = arith.addf %53, %59 : vector<256x128xf32>
    %c0_64 = arith.constant 0 : index
    %c0_65 = arith.constant 0 : index
    %c1_66 = arith.constant 1 : index
    %c1_67 = arith.constant 1 : index
    %c0_68 = arith.constant 0 : index
    %61 = vector.load %arg8[%c0_64, %c0_65, %c1_66, %c1_67, %c0_68] : memref<1x4x10x16x128xbf16, #tpu.memory_space<vmem>>, vector<1x4x8x8x128xbf16>
    %62 = vector.shape_cast %61 : vector<1x4x8x8x128xbf16> to vector<4x8x8x128xbf16>
    %63 = vector.shape_cast %62 : vector<4x8x8x128xbf16> to vector<256x128xbf16>
    %c0_69 = arith.constant 0 : index
    %c4 = arith.constant 4 : index
    %c0_70 = arith.constant 0 : index
    %c0_71 = arith.constant 0 : index
    %64 = vector.load %arg5[%c0_69, %c4, %c0_70, %c0_71] : memref<1x9x128x128xbf16, #tpu.memory_space<vmem>>, vector<1x1x128x128xbf16>
    %65 = vector.shape_cast %64 : vector<1x1x128x128xbf16> to vector<128x128xbf16>
    %cst_72 = arith.constant dense<0.000000e+00> : vector<256x128xf32>
    %66 = tpu.matmul %63, %65, %cst_72 {dimension_numbers = #tpu.dot_dimension_numbers<[1], [0], [0], [1], [0, 0, 1, 1], [], []>} : vector<256x128xbf16>, vector<128x128xbf16>, vector<256x128xf32> -> vector<256x128xf32>
    %67 = arith.addf %60, %66 : vector<256x128xf32>
    %c0_73 = arith.constant 0 : index
    %c0_74 = arith.constant 0 : index
    %c1_75 = arith.constant 1 : index
    %c2_76 = arith.constant 2 : index
    %c0_77 = arith.constant 0 : index
    %68 = vector.load %arg8[%c0_73, %c0_74, %c1_75, %c2_76, %c0_77] : memref<1x4x10x16x128xbf16, #tpu.memory_space<vmem>>, vector<1x4x8x8x128xbf16>
    %69 = vector.shape_cast %68 : vector<1x4x8x8x128xbf16> to vector<4x8x8x128xbf16>
    %70 = vector.shape_cast %69 : vector<4x8x8x128xbf16> to vector<256x128xbf16>
    %c0_78 = arith.constant 0 : index
    %c5 = arith.constant 5 : index
    %c0_79 = arith.constant 0 : index
    %c0_80 = arith.constant 0 : index
    %71 = vector.load %arg5[%c0_78, %c5, %c0_79, %c0_80] : memref<1x9x128x128xbf16, #tpu.memory_space<vmem>>, vector<1x1x128x128xbf16>
    %72 = vector.shape_cast %71 : vector<1x1x128x128xbf16> to vector<128x128xbf16>
    %cst_81 = arith.constant dense<0.000000e+00> : vector<256x128xf32>
    %73 = tpu.matmul %70, %72, %cst_81 {dimension_numbers = #tpu.dot_dimension_numbers<[1], [0], [0], [1], [0, 0, 1, 1], [], []>} : vector<256x128xbf16>, vector<128x128xbf16>, vector<256x128xf32> -> vector<256x128xf32>
    %74 = arith.addf %67, %73 : vector<256x128xf32>
    %c0_82 = arith.constant 0 : index
    %c0_83 = arith.constant 0 : index
    %c2_84 = arith.constant 2 : index
    %c0_85 = arith.constant 0 : index
    %c0_86 = arith.constant 0 : index
    %75 = vector.load %arg8[%c0_82, %c0_83, %c2_84, %c0_85, %c0_86] : memref<1x4x10x16x128xbf16, #tpu.memory_space<vmem>>, vector<1x4x8x8x128xbf16>
    %76 = vector.shape_cast %75 : vector<1x4x8x8x128xbf16> to vector<4x8x8x128xbf16>
    %77 = vector.shape_cast %76 : vector<4x8x8x128xbf16> to vector<256x128xbf16>
    %c0_87 = arith.constant 0 : index
    %c6 = arith.constant 6 : index
    %c0_88 = arith.constant 0 : index
    %c0_89 = arith.constant 0 : index
    %78 = vector.load %arg5[%c0_87, %c6, %c0_88, %c0_89] : memref<1x9x128x128xbf16, #tpu.memory_space<vmem>>, vector<1x1x128x128xbf16>
    %79 = vector.shape_cast %78 : vector<1x1x128x128xbf16> to vector<128x128xbf16>
    %cst_90 = arith.constant dense<0.000000e+00> : vector<256x128xf32>
    %80 = tpu.matmul %77, %79, %cst_90 {dimension_numbers = #tpu.dot_dimension_numbers<[1], [0], [0], [1], [0, 0, 1, 1], [], []>} : vector<256x128xbf16>, vector<128x128xbf16>, vector<256x128xf32> -> vector<256x128xf32>
    %81 = arith.addf %74, %80 : vector<256x128xf32>
    %c0_91 = arith.constant 0 : index
    %c0_92 = arith.constant 0 : index
    %c2_93 = arith.constant 2 : index
    %c1_94 = arith.constant 1 : index
    %c0_95 = arith.constant 0 : index
    %82 = vector.load %arg8[%c0_91, %c0_92, %c2_93, %c1_94, %c0_95] : memref<1x4x10x16x128xbf16, #tpu.memory_space<vmem>>, vector<1x4x8x8x128xbf16>
    %83 = vector.shape_cast %82 : vector<1x4x8x8x128xbf16> to vector<4x8x8x128xbf16>
    %84 = vector.shape_cast %83 : vector<4x8x8x128xbf16> to vector<256x128xbf16>
    %c0_96 = arith.constant 0 : index
    %c7 = arith.constant 7 : index
    %c0_97 = arith.constant 0 : index
    %c0_98 = arith.constant 0 : index
    %85 = vector.load %arg5[%c0_96, %c7, %c0_97, %c0_98] : memref<1x9x128x128xbf16, #tpu.memory_space<vmem>>, vector<1x1x128x128xbf16>
    %86 = vector.shape_cast %85 : vector<1x1x128x128xbf16> to vector<128x128xbf16>
    %cst_99 = arith.constant dense<0.000000e+00> : vector<256x128xf32>
    %87 = tpu.matmul %84, %86, %cst_99 {dimension_numbers = #tpu.dot_dimension_numbers<[1], [0], [0], [1], [0, 0, 1, 1], [], []>} : vector<256x128xbf16>, vector<128x128xbf16>, vector<256x128xf32> -> vector<256x128xf32>
    %88 = arith.addf %81, %87 : vector<256x128xf32>
    %c0_100 = arith.constant 0 : index
    %c0_101 = arith.constant 0 : index
    %c2_102 = arith.constant 2 : index
    %c2_103 = arith.constant 2 : index
    %c0_104 = arith.constant 0 : index
    %89 = vector.load %arg8[%c0_100, %c0_101, %c2_102, %c2_103, %c0_104] : memref<1x4x10x16x128xbf16, #tpu.memory_space<vmem>>, vector<1x4x8x8x128xbf16>
    %90 = vector.shape_cast %89 : vector<1x4x8x8x128xbf16> to vector<4x8x8x128xbf16>
    %91 = vector.shape_cast %90 : vector<4x8x8x128xbf16> to vector<256x128xbf16>
    %c0_105 = arith.constant 0 : index
    %c8 = arith.constant 8 : index
    %c0_106 = arith.constant 0 : index
    %c0_107 = arith.constant 0 : index
    %92 = vector.load %arg5[%c0_105, %c8, %c0_106, %c0_107] : memref<1x9x128x128xbf16, #tpu.memory_space<vmem>>, vector<1x1x128x128xbf16>
    %93 = vector.shape_cast %92 : vector<1x1x128x128xbf16> to vector<128x128xbf16>
    %cst_108 = arith.constant dense<0.000000e+00> : vector<256x128xf32>
    %94 = tpu.matmul %91, %93, %cst_108 {dimension_numbers = #tpu.dot_dimension_numbers<[1], [0], [0], [1], [0, 0, 1, 1], [], []>} : vector<256x128xbf16>, vector<128x128xbf16>, vector<256x128xf32> -> vector<256x128xf32>
    %95 = arith.addf %88, %94 : vector<256x128xf32>
    %96 = arith.index_cast %arg0 : i32 to index
    %97 = memref.load %arg1[%96] : memref<2xi32, #tpu.memory_space<smem>>
    %c0_i32_109 = arith.constant 0 : i32
    %98 = arith.addi %97, %c0_i32_109 : i32
    %99 = arith.index_cast %98 : i32 to index
    %c0_110 = arith.constant 0 : index
    %c0_111 = arith.constant 0 : index
    %c0_112 = arith.constant 0 : index
    %c0_113 = arith.constant 0 : index
    %100 = vector.load %arg7[%99, %c0_110, %c0_111, %c0_112, %c0_113] : memref<1x4x8x8x128xf32, #tpu.memory_space<vmem>>, vector<1x4x8x8x128xf32>
    %101 = vector.shape_cast %100 : vector<1x4x8x8x128xf32> to vector<4x8x8x128xf32>
    %102 = vector.shape_cast %101 : vector<4x8x8x128xf32> to vector<256x128xf32>
    %103 = arith.addf %102, %95 : vector<256x128xf32>
    %104 = vector.shape_cast %103 : vector<256x128xf32> to vector<4x8x8x128xf32>
    %105 = arith.index_cast %98 : i32 to index
    %c0_114 = arith.constant 0 : index
    %c0_115 = arith.constant 0 : index
    %c0_116 = arith.constant 0 : index
    %c0_117 = arith.constant 0 : index
    %106 = vector.load %arg7[%105, %c0_114, %c0_115, %c0_116, %c0_117] : memref<1x4x8x8x128xf32, #tpu.memory_space<vmem>>, vector<1x4x8x8x128xf32>
    %107 = vector.shape_cast %106 : vector<1x4x8x8x128xf32> to vector<4x8x8x128xf32>
    %108 = vector.shape_cast %104 : vector<4x8x8x128xf32> to vector<1x4x8x8x128xf32>
    tpu.vector_store %arg7[%105, %c0_114, %c0_115, %c0_116, %c0_117], %108 {strides = array<i32>} : memref<1x4x8x8x128xf32, #tpu.memory_space<vmem>>, vector<1x4x8x8x128xf32>,
    %cst_118 = arith.constant dense<0.000000e+00> : vector<128xf32>
    %109 = vector.multi_reduction <add>, %103, %cst_118 [0] : vector<256x128xf32> to vector<128xf32>
    %110 = vector.shape_cast %109 : vector<128xf32> to vector<1x128xf32>
    %cst_119 = arith.constant 3.906250e-03 : f32
    %111 = vector.broadcast %cst_119 : f32 to vector<1x128xf32>
    %112 = arith.mulf %110, %111 : vector<1x128xf32>
    %113 = arith.index_cast %98 : i32 to index
    %c0_120 = arith.constant 0 : index
    %c0_121 = arith.constant 0 : index
    %114 = vector.load %arg9[%113, %c0_120, %c0_121] : memref<1x8x128xf32, #tpu.memory_space<vmem>>, vector<1x1x128xf32>
    %115 = vector.shape_cast %114 : vector<1x1x128xf32> to vector<1x128xf32>
    %116 = vector.shape_cast %112 : vector<1x128xf32> to vector<1x1x128xf32>
    tpu.vector_store %arg9[%113, %c0_120, %c0_121], %116 {strides = array<i32>} : memref<1x8x128xf32, #tpu.memory_space<vmem>>, vector<1x1x128xf32>,
    %117 = vector.broadcast %112 : vector<1x128xf32> to vector<256x128xf32>
    %118 = arith.subf %103, %117 : vector<256x128xf32>
    %119 = arith.mulf %118, %118 : vector<256x128xf32>
    %cst_122 = arith.constant dense<0.000000e+00> : vector<128xf32>
    %120 = vector.multi_reduction <add>, %119, %cst_122 [0] : vector<256x128xf32> to vector<128xf32>
    %121 = vector.shape_cast %120 : vector<128xf32> to vector<1x128xf32>
    %cst_123 = arith.constant 3.906250e-03 : f32
    %122 = vector.broadcast %cst_123 : f32 to vector<1x128xf32>
    %123 = arith.mulf %121, %122 : vector<1x128xf32>
    %124 = arith.index_cast %98 : i32 to index
    %c0_124 = arith.constant 0 : index
    %c0_125 = arith.constant 0 : index
    %125 = vector.load %arg10[%124, %c0_124, %c0_125] : memref<1x8x128xf32, #tpu.memory_space<vmem>>, vector<1x1x128xf32>
    %126 = vector.shape_cast %125 : vector<1x1x128xf32> to vector<1x128xf32>
    %127 = vector.shape_cast %123 : vector<1x128xf32> to vector<1x1x128xf32>
    tpu.vector_store %arg10[%124, %c0_124, %c0_125], %127 {strides = array<i32>} : memref<1x8x128xf32, #tpu.memory_space<vmem>>, vector<1x1x128xf32>,
    return
  }
  func.func @transform_1(%arg0: i32, %arg1: memref<2xi32, #tpu.memory_space<smem>>) -> (i32, i32, i32) {
    %c0_i32 = arith.constant 0 : i32
    %c0_i32_0 = arith.constant 0 : i32
    %c0_i32_1 = arith.constant 0 : i32
    return %arg0, %c0_i32, %c0_i32_0 : i32, i32, i32
  }
  func.func @transform_2(%arg0: i32, %arg1: memref<2xi32, #tpu.memory_space<smem>>) -> (i32, i32, i32) {
    %c0_i32 = arith.constant 0 : i32
    %c0_i32_0 = arith.constant 0 : i32
    %c0_i32_1 = arith.constant 0 : i32
    return %arg0, %c0_i32, %c0_i32_0 : i32, i32, i32
  }
  func.func @transform_3(%arg0: i32, %arg1: memref<2xi32, #tpu.memory_space<smem>>) -> (i32, i32, i32, i32) {
    %c0_i32 = arith.constant 0 : i32
    %c0_i32_0 = arith.constant 0 : i32
    %c0_i32_1 = arith.constant 0 : i32
    %c0_i32_2 = arith.constant 0 : i32
    return %arg0, %c0_i32, %c0_i32_0, %c0_i32_1 : i32, i32, i32, i32
  }
  func.func @transform_4(%arg0: i32, %arg1: memref<2xi32, #tpu.memory_space<smem>>) -> (i32, i32, i32) {
    %c0_i32 = arith.constant 0 : i32
    %c0_i32_0 = arith.constant 0 : i32
    %c0_i32_1 = arith.constant 0 : i32
    return %arg0, %c0_i32, %c0_i32_0 : i32, i32, i32
  }
  func.func @transform_5(%arg0: i32, %arg1: memref<2xi32, #tpu.memory_space<smem>>) -> (i32, i32, i32, i32, i32) {
    %c0_i32 = arith.constant 0 : i32
    %c0_i32_0 = arith.constant 0 : i32
    %c0_i32_1 = arith.constant 0 : i32
    %c0_i32_2 = arith.constant 0 : i32
    %c0_i32_3 = arith.constant 0 : i32
    %c0_i32_4 = arith.constant 0 : i32
    return %c0_i32, %c0_i32_0, %c0_i32_1, %c0_i32_2, %c0_i32_3 : i32, i32, i32, i32, i32
  }
}

</mosaic_0001>

<bundles_post_ra>
// kernel: tpu_custom_call.1
= control target key start
LH: loop header
LB: loop body
LE: loop exit
PB: predicated region body
PF: predicated region fallthrough
CT: control target
= control target key end

     0   :  { %s11882_s0 = inlined_call_operand.hbm [shape: s32[2], index: 0, kind: input, shape index: {}]   ;;  %s11883_s1 = inlined_call_operand.hbm [shape: f32[1,4,8,8,128], index: 1, kind: input, shape index: {}]   ;;  %s11884_s2 = inlined_call_operand.vmem [shape: f32[2,1,128], index: 2, kind: input, shape index: {}]   ;;  %s11885_s3 = inlined_call_operand.vmem [shape: f32[2,1,128], index: 3, kind: input, shape index: {}]   ;;  %s11886_s4 = inlined_call_operand.hbm [shape: bf16[2,9,128,128], index: 4, kind: input, shape index: {}]   ;;  %s11887_s5 = inlined_call_operand.vmem [shape: f32[2,1,128], index: 5, kind: input, shape index: {}]   ;;  %s11888_s6 = inlined_call_operand.hbm [shape: f32[1,4,8,8,128], index: 6, kind: output, shape index: {}]  }
   0x1   :  { %s10057_s23 = scalar_lea.hbm %s11882_s0, 16 }
   0x2   :  { %p10058_p0 = scmp.ne.s32.totalorder %s11882_s0, %s10057_s23  ;;  %p10061_p1 = scmp.lt.u32.totalorder %s10057_s23, %s11882_s0 }
   0x4   :  { %p10063_p2 = pnand %p10061_p1, %p10058_p0 }
   0x6   :  { %10066 = shalt.err (!%p10063_p2)  }
   0x7   :  { %s10189_s28 = smov [#allocation7]  }
   0x8   :  { %12 = dma.hbm_to_smem %s11882_s0, 16, %s10189_s28, [#allocation6] }
   0x9   :  { %10161 = dma.done.wait [#allocation6], 16 }
   0xa   :  { %10162 = vsyncadd [#allocation6], 4294967280 }
   0xb   :  { %14 = sfence }
   0xc   :  { %15 = vsyncpa [#allocation9], 0 }
   0xd   :  { %17 = vsyncpa [#allocation9 + $0x1], 0 }
   0xe   :  { %18 = vsyncpa [#allocation10], 0  ;;  %s10245_s7 = smov 0   ;;  %s10247_s8 = smov 0  }
   0xf   :  { %s10249_s9 = smov 0   ;;  %s10251_s10 = smov 0  }
  0x10 LB: > { %s10264_s0 = sadd.s32 4294967295, %s10187_s10   ;;  %s10267_s11 = sadd.s32 1, %s10187_s10   ;;  %s10187_s10 = sphi %s10251_s10, %s11905_s10   ;;  %s10183_s9 = sphi %s10249_s9, %s11904_s9   ;;  %s10179_s8 = sphi %s10247_s8, %s11903_s8   ;;  %s10175_s7 = sphi %s10245_s7, %s11902_s7  }
  0x11   : > { %s80_s12 = ssub.s32 %s10187_s10, %s10267_s11  ;;  %s83_s13 = sadd.s32 1, %s10183_s9 }
  0x12   : > { %p81_p3 = scmp.eq.s32.totalorder %s80_s12, 0  ;;  %p90_p4 = scmp.ne.s32.totalorder %s10183_s9, %s10179_s8 }
  0x13   : > { %p91_p5 = scmp.eq.s32.totalorder %s10187_s10, 0  ;;  %p96_p6 = scmp.ne.s32.totalorder %s10179_s8, %s10175_s7 }
  0x14   : > { %s10277_s14 = scalar_select %p81_p3, %s10183_s9, %s83_s13  }
  0x15   : > { %p92_p7 = por %p91_p5, %p90_p4  ;;  %p97_p8 = scmp.eq.s32.totalorder %s10264_s0, 0 }
  0x16   : > { %p9497_p9 = scmp.lt.s32.totalorder %s10187_s10, 2  ;;  %s179_s16 = sand.u32 1, %s10183_s9  }
  0x17   : > { %p10281_p10 = por %p97_p8, %p96_p6  ;;  %s9484_s17 = smul.u32 576, %s179_s16 }
  0x18   : > { %s9485_s18 = smul.u32 9216, %s10187_s10  ;;  %p10287_p11 = pnand %p9497_p9, %p92_p7 }
  0x19   : > { %s183_s23 = scalar_lea.vmem [#allocation8], %s9484_s17  ;;  %s10299_s25 = scalar_lea.sflag [#allocation9], %s179_s16 }
  0x1a   : > { %s10294_s22 = scalar_lea.hbm %s11886_s4, %s9485_s18  ;;  %s190_s24 = sshll.u32 %s183_s23, 4  ;;  %s10296_s24 = int_to_ptr.vmem [resolvable:$true] %s190_s24 }
  0x1b   : > { %s10067_s26 = scalar_lea.hbm %s10294_s22, 9216  ;;  %p10069_p0 = pneg %p10287_p11 }
  0x1c   : > { %p10068_p13 = scmp.ne.s32.totalorder %s10294_s22, %s10067_s26  ;;  %s10072_s29 = scalar_lea.hbm %s11886_s4, 18432 }
  0x1d   : > { %p10073_p3 = scmp.lt.u32.totalorder %s10294_s22, %s11886_s4  ;;  %p10074_p4 = scmp.lt.u32.totalorder %s10072_s29, %s10067_s26 }
  0x1e   : > { %p10070_p1 = pnand %p10069_p0, %p10068_p13  ;;  %p10076_p6 = scmp.lt.u32.totalorder %s10067_s26, %s10294_s22 }
  0x1f   : > { %p10075_p5 = por %p10074_p4, %p10073_p3 }
  0x20   : > { %p10071_p2 = pneg %p10070_p1 }
  0x21   : > { %p10077_p7 = por %p10076_p6, %p10075_p5 }
  0x23   : > { %p10078_p8 = pnand %p10077_p7, %p10071_p2 }
  0x25   : > { %10081 = shalt.err (!%p10078_p8)
}
  0x26   : > { %s10082_s12 = scalar_lea.vmem %s10296_s24, 9216  ;;  %s10190_s13 = smov [#allocation8]  }
  0x27   : > { %p10083_p9 = scmp.ne.s32.totalorder %s10296_s24, %s10082_s12  ;;  %s10087_s16 = sshll.u32 %s10190_s13, 4  ;;  %s10088_s16 = int_to_ptr.vmem [resolvable:$false] %s10087_s16 }
  0x28   : > { %s10089_s17 = scalar_lea.vmem %s10088_s16, 18432  ;;  %p10090_p12 = scmp.lt.s32.totalorder %s10296_s24, %s10088_s16 }
  0x29   : > { %p10085_p13 = pnand %p10083_p9, %p10069_p0  ;;  %p10091_p3 = scmp.lt.s32.totalorder %s10089_s17, %s10082_s12 }
  0x2b   : > { %p10086_p1 = pneg %p10085_p13  ;;  %p10092_p4 = por %p10091_p3, %p10090_p12 }
  0x2d   : > { %p10093_p5 = pnand %p10092_p4, %p10086_p1 }
  0x2f   : > { %10096 = shalt.err (!%p10093_p5)
}
  0x30   : > { %s10191_s18 = smov 64   ;;  %s10192_s20 = smov 4  }
  0x31   : > { %9496 = dma.hbm_to_vmem [thread:$0]  (!%p10287_p11), %s10294_s22, 9216, %s10296_s24, %s10299_s25, %s10191_s18, %s10191_s18, %s10192_s20  }
  0x32   : > { %p204_p0 = scmp.lt.s32.totalorder %s10187_s10, 3  ;;  %p11891_p2 = scmp.ge.s32.totalorder %s10187_s10, 1 }
  0x34   : > { %p205_p6 = pnand %p11891_p2, %p204_p0 }
  0x35   : > { %s210_s21 = sand.u32 (!%p205_p6), 1, %s10179_s8  }
  0x36   : > { %208 = sbr.rel (%p205_p6) target bundleno = 1157 (0x485), region = 36  ;;  %s211_s26 = scalar_lea.sflag (!%p205_p6), [#allocation9], %s210_s21 }
  0x37   : > { %s9486_s23 = smul.u32 (!%p205_p6), 576, %s210_s21 }
  0x39   : > { %s10331_s27 = scalar_lea.vmem (!%p205_p6), [#allocation8], %s9486_s23 }
  0x3d   : > { %10164 = dma.done.wait (%p10281_p10), %s211_s26, 9216  }
  0x3e   : > { %10166 = vsyncadd (%p10281_p10), %s211_s26, 4294958080  ;;  %p243_p12 = scmp.lt.s32.totalorder %s10264_s0, 1  ;;  %p7635_p10 = scmp.ne.s32.totalorder %s10264_s0, 0 }
  0x3f   : > { %s10193_s12 = smov (!%p7635_p10), [#allocation11]   ;;  %s10097_s18 = scalar_lea.hbm (!%p7635_p10), %s11883_s1, 4096 }
  0x40   : > { %s10339_s19 = scalar_select %p243_p12, %s10264_s0, 1 }
  0x41   : > { %256 = sbr.rel (%p7635_p10) target bundleno = 309 (0x135), region = 44  ;;  %s264_s13 = sshll.u32 (!%p7635_p10), %s10193_s12, 4  ;;  %s265_s13 = int_to_ptr.vmem [resolvable:$true] %s264_s13 }
  0x42   : > { %s245_s24 = scalar_lea.vmem %s11884_s2, %s10339_s19  ;;  %s248_s29 = scalar_lea.vmem %s11885_s3, %s10339_s19 }
  0x43   : > { %s251_s15 = scalar_lea.vmem %s11887_s5, %s10339_s19  ;;  %p10098_p11 = scmp.ne.s32.totalorder (!%p7635_p10), %s11883_s1, %s10097_s18 }
  0x44   : > { %p10101_p7 = scmp.lt.u32.totalorder (!%p7635_p10), %s10097_s18, %s11883_s1 }
  0x46   : > { %p10103_p8 = pnand (!%p7635_p10), %p10101_p7, %p10098_p11 }
  0x48   : > { %10106 = shalt.err (!%p10103_p8)  }
  0x49   : > { %s10107_s10 = scalar_lea.vmem %s265_s13, 4096  ;;  %p10112_p13 = scmp.lt.s32.totalorder %s265_s13, %s265_s13 }
  0x4a   : > { %p10108_p9 = scmp.ne.s32.totalorder %s265_s13, %s10107_s10  ;;  %p10113_p1 = scmp.lt.s32.totalorder %s10107_s10, %s10107_s10 }
  0x4c   : > { %p10114_p3 = por %p10113_p1, %p10112_p13 }
  0x4e   : > { %p10115_p4 = pnand %p10114_p3, %p10108_p9 }
  0x50   : > { %10118 = shalt.err (!%p10115_p4)  }
  0x51   : > { %267 = dma.hbm_to_vmem [thread:$0]  %s11883_s1, 4096, %s265_s13, [#allocation5] }
  0x52   : > { %10167 = dma.done.wait [#allocation5], 4096 }
  0x53   : > { %10168 = vsyncadd [#allocation5], 4294963200  ;;  %v10194_v0 = vmov 0   ;;  %vm283_vm0 = vcmask 1040384   ;;  %vm284_vm1 = vsmask.f32 256 }
  0x54   : > { %274 = vst [vmem:[#allocation2] sm:$0xff] %v10194_v0  ;;  %275 = vst [vmem:[#allocation2 + $0x50] sm:$0xff] %v10194_v0  ;;  %v289_v2 = vld [vmem:[#allocation2 + $0x8] sm:$0x1]  ;;  %v292_v3 = vld [vmem:[#allocation2 + $0x10] sm:$0x1] }
  0x55   : > { %276 = vst [vmem:[#allocation2 + $0xa0] sm:$0xff] %v10194_v0  ;;  %277 = vst [vmem:[#allocation2 + $0xf0] sm:$0xff] %v10194_v0  ;;  %v295_v4 = vld [vmem:[#allocation2 + $0x18] sm:$0x1]  ;;  %v298_v10 = vld [vmem:[#allocation2 + $0x20] sm:$0x1] }
  0x56   : > { %279 = vst [vmem:[#allocation2 + $0x48] sm:$0xff] %v10194_v0  ;;  %280 = vst [vmem:[#allocation2 + $0x98] sm:$0xff] %v10194_v0  ;;  %v301_v11 = vld [vmem:[#allocation2 + $0x28] sm:$0x1]  ;;  %v304_v14 = vld [vmem:[#allocation2 + $0x30] sm:$0x1] }
  0x57   : > { %281 = vst [vmem:[#allocation2 + $0xe8] sm:$0xff] %v10194_v0  ;;  %282 = vst [vmem:[#allocation2 + $0x138] sm:$0xff] %v10194_v0  ;;  %v307_v15 = vld [vmem:[#allocation2 + $0x38] sm:$0x1]  ;;  %v310_v18 = vld [vmem:[#allocation2 + $0x40] sm:$0x1] }
  0x58   : > { %vm10366_vm2 = vmand %vm283_vm0, %vm284_vm1  ;;  %v319_v23 = vld [vmem:[#allocation2 + $0x58] sm:$0x1]  ;;  %v322_v26 = vld [vmem:[#allocation2 + $0x60] sm:$0x1]  ;;  %vm406_vm3 = vcmask 1044484  }
  0x59   : > { %v290_v6 = vsel %vm10366_vm2, 0, %v289_v2  ;;  %v293_v7 = vsel %vm10366_vm2, 0, %v292_v3  ;;  %v296_v8 = vsel %vm10366_vm2, 0, %v295_v4  ;;  %v299_v12 = vsel %vm10366_vm2, 0, %v298_v10  ;;  %v325_v27 = vld [vmem:[#allocation2 + $0x68] sm:$0x1] }
  0x5a   : > { %291 = vst [vmem:[#allocation2 + $0x8] sm:$0x1] %v290_v6  ;;  %294 = vst [vmem:[#allocation2 + $0x10] sm:$0x1] %v293_v7  ;;  %v302_v13 = vsel %vm10366_vm2, 0, %v301_v11  ;;  %v305_v16 = vsel %vm10366_vm2, 0, %v304_v14 }
  0x5b   : > { %v286_v5 = vld [vmem:[#allocation2] sm:$0x1]  ;;  %297 = vst [vmem:[#allocation2 + $0x18] sm:$0x1] %v296_v8  ;;  %300 = vst [vmem:[#allocation2 + $0x20] sm:$0x1] %v299_v12 }
  0x5c   : > { %v287_v9 = vsel %vm10366_vm2, 0, %v286_v5  ;;  %303 = vst [vmem:[#allocation2 + $0x28] sm:$0x1] %v302_v13  ;;  %v308_v17 = vsel %vm10366_vm2, 0, %v307_v15  ;;  %306 = vst [vmem:[#allocation2 + $0x30] sm:$0x1] %v305_v16 }
  0x5d   : > { %288 = vst [vmem:[#allocation2] sm:$0x1] %v287_v9  ;;  %v313_v19 = vld [vmem:[#allocation2 + $0x48] sm:$0x1]  ;;  %309 = vst [vmem:[#allocation2 + $0x38] sm:$0x1] %v308_v17 }
  0x5e   : > { %v311_v20 = vsel %vm10366_vm2, 0, %v310_v18  ;;  %v314_v21 = vsel %vm10366_vm2, 0, %v313_v19  ;;  %v316_v22 = vld [vmem:[#allocation2 + $0x50] sm:$0x1]  ;;  %v320_v25 = vsel %vm10366_vm2, 0, %v319_v23  ;;  %v323_v28 = vsel %vm10366_vm2, 0, %v322_v26 }
  0x5f   : > { %312 = vst [vmem:[#allocation2 + $0x40] sm:$0x1] %v311_v20  ;;  %315 = vst [vmem:[#allocation2 + $0x48] sm:$0x1] %v314_v21  ;;  %v317_v24 = vsel %vm10366_vm2, 0, %v316_v22  ;;  %v326_v29 = vsel %vm10366_vm2, 0, %v325_v27 }
  0x60   : > { %318 = vst [vmem:[#allocation2 + $0x50] sm:$0x1] %v317_v24  ;;  %321 = vst [vmem:[#allocation2 + $0x58] sm:$0x1] %v320_v25  ;;  %v328_v30 = vld [vmem:[#allocation2 + $0x70] sm:$0x1] }
  0x61   : > { %v331_v31 = vld [vmem:[#allocation2 + $0x78] sm:$0x1]  ;;  %vm407_vm4 = vsmask.f32 7954  ;;  %324 = vst [vmem:[#allocation2 + $0x60] sm:$0x1] %v323_v28 }
  0x62   : > { %327 = vst [vmem:[#allocation2 + $0x68] sm:$0x1] %v326_v29  ;;  %v329_v32 = vsel %vm10366_vm2, 0, %v328_v30  ;;  %v332_v33 = vsel %vm10366_vm2, 0, %v331_v31  ;;  %v334_v34 = vld [vmem:[#allocation2 + $0x80] sm:$0x1]  ;;  %vm10444_vm5 = vmand %vm406_vm3, %vm407_vm4 }
  0x63   : > { %v337_v35 = vld [vmem:[#allocation2 + $0x88] sm:$0x1]  ;;  %330 = vst [vmem:[#allocation2 + $0x70] sm:$0x1] %v329_v32  ;;  %333 = vst [vmem:[#allocation2 + $0x78] sm:$0x1] %v332_v33 }
  0x64   : > { %v335_v36 = vsel %vm10366_vm2, 0, %v334_v34  ;;  %v338_v37 = vsel %vm10366_vm2, 0, %v337_v35  ;;  %v340_v38 = vld [vmem:[#allocation2 + $0x90] sm:$0x1]  ;;  %v343_v39 = vld [vmem:[#allocation2 + $0x98] sm:$0x1] }
  0x65   : > { %336 = vst [vmem:[#allocation2 + $0x80] sm:$0x1] %v335_v36  ;;  %339 = vst [vmem:[#allocation2 + $0x88] sm:$0x1] %v338_v37  ;;  %v341_v40 = vsel %vm10366_vm2, 0, %v340_v38  ;;  %v344_v41 = vsel %vm10366_vm2, 0, %v343_v39 }
  0x66   : > { %v346_v42 = vld [vmem:[#allocation2 + $0xa0] sm:$0x1]  ;;  %v349_v43 = vld [vmem:[#allocation2 + $0xa8] sm:$0x1]  ;;  %342 = vst [vmem:[#allocation2 + $0x90] sm:$0x1] %v341_v40 }
  0x67   : > { %345 = vst [vmem:[#allocation2 + $0x98] sm:$0x1] %v344_v41  ;;  %v347_v44 = vsel %vm10366_vm2, 0, %v346_v42  ;;  %v350_v45 = vsel %vm10366_vm2, 0, %v349_v43  ;;  %v352_v46 = vld [vmem:[#allocation2 + $0xb0] sm:$0x1] }
  0x68   : > { %v355_v47 = vld [vmem:[#allocation2 + $0xb8] sm:$0x1]  ;;  %348 = vst [vmem:[#allocation2 + $0xa0] sm:$0x1] %v347_v44  ;;  %351 = vst [vmem:[#allocation2 + $0xa8] sm:$0x1] %v350_v45 }
  0x69   : > { %v353_v48 = vsel %vm10366_vm2, 0, %v352_v46  ;;  %v356_v49 = vsel %vm10366_vm2, 0, %v355_v47  ;;  %v358_v50 = vld [vmem:[#allocation2 + $0xc0] sm:$0x1]  ;;  %v361_v51 = vld [vmem:[#allocation2 + $0xc8] sm:$0x1] }
  0x6a   : > { %354 = vst [vmem:[#allocation2 + $0xb0] sm:$0x1] %v353_v48  ;;  %357 = vst [vmem:[#allocation2 + $0xb8] sm:$0x1] %v356_v49  ;;  %v359_v52 = vsel %vm10366_vm2, 0, %v358_v50  ;;  %v362_v53 = vsel %vm10366_vm2, 0, %v361_v51 }
  0x6b   : > { %v364_v54 = vld [vmem:[#allocation2 + $0xd0] sm:$0x1]  ;;  %v367_v55 = vld [vmem:[#allocation2 + $0xd8] sm:$0x1]  ;;  %360 = vst [vmem:[#allocation2 + $0xc0] sm:$0x1] %v359_v52 }
  0x6c   : > { %363 = vst [vmem:[#allocation2 + $0xc8] sm:$0x1] %v362_v53  ;;  %v365_v56 = vsel %vm10366_vm2, 0, %v364_v54  ;;  %v368_v57 = vsel %vm10366_vm2, 0, %v367_v55  ;;  %v370_v58 = vld [vmem:[#allocation2 + $0xe0] sm:$0x1] }
  0x6d   : > { %v373_v59 = vld [vmem:[#allocation2 + $0xe8] sm:$0x1]  ;;  %366 = vst [vmem:[#allocation2 + $0xd0] sm:$0x1] %v365_v56  ;;  %369 = vst [vmem:[#allocation2 + $0xd8] sm:$0x1] %v368_v57 }
  0x6e   : > { %v371_v60 = vsel %vm10366_vm2, 0, %v370_v58  ;;  %v374_v61 = vsel %vm10366_vm2, 0, %v373_v59  ;;  %v376_v62 = vld [vmem:[#allocation2 + $0xf0] sm:$0x1]  ;;  %v379_v63 = vld [vmem:[#allocation2 + $0xf8] sm:$0x1] }
  0x6f   : > { %372 = vst [vmem:[#allocation2 + $0xe0] sm:$0x1] %v371_v60  ;;  %375 = vst [vmem:[#allocation2 + $0xe8] sm:$0x1] %v374_v61  ;;  %v377_v0 = vsel %vm10366_vm2, 0, %v376_v62  ;;  %v380_v2 = vsel %vm10366_vm2, 0, %v379_v63 }
  0x70   : > { %v382_v3 = vld [vmem:[#allocation2 + $0x100] sm:$0x1]  ;;  %v385_v4 = vld [vmem:[#allocation2 + $0x108] sm:$0x1]  ;;  %378 = vst [vmem:[#allocation2 + $0xf0] sm:$0x1] %v377_v0 }
  0x71   : > { %381 = vst [vmem:[#allocation2 + $0xf8] sm:$0x1] %v380_v2  ;;  %v383_v5 = vsel %vm10366_vm2, 0, %v382_v3  ;;  %v386_v6 = vsel %vm10366_vm2, 0, %v385_v4  ;;  %v388_v7 = vld [vmem:[#allocation2 + $0x110] sm:$0x1] }
  0x72   : > { %v391_v8 = vld [vmem:[#allocation2 + $0x118] sm:$0x1]  ;;  %384 = vst [vmem:[#allocation2 + $0x100] sm:$0x1] %v383_v5  ;;  %387 = vst [vmem:[#allocation2 + $0x108] sm:$0x1] %v386_v6 }
  0x73   : > { %v389_v9 = vsel %vm10366_vm2, 0, %v388_v7  ;;  %v392_v10 = vsel %vm10366_vm2, 0, %v391_v8  ;;  %v394_v11 = vld [vmem:[#allocation2 + $0x120] sm:$0x1]  ;;  %v397_v12 = vld [vmem:[#allocation2 + $0x128] sm:$0x1] }
  0x74   : > { %390 = vst [vmem:[#allocation2 + $0x110] sm:$0x1] %v389_v9  ;;  %393 = vst [vmem:[#allocation2 + $0x118] sm:$0x1] %v392_v10  ;;  %v395_v14 = vsel %vm10366_vm2, 0, %v394_v11  ;;  %v398_v15 = vsel %vm10366_vm2, 0, %v397_v12 }
  0x75   : > { %v400_v16 = vld [vmem:[#allocation2 + $0x130] sm:$0x1]  ;;  %v403_v17 = vld [vmem:[#allocation2 + $0x138] sm:$0x1]  ;;  %396 = vst [vmem:[#allocation2 + $0x120] sm:$0x1] %v395_v14 }
  0x76   : > { %399 = vst [vmem:[#allocation2 + $0x128] sm:$0x1] %v398_v15  ;;  %v401_v18 = vsel %vm10366_vm2, 0, %v400_v16  ;;  %v404_v19 = vsel %vm10366_vm2, 0, %v403_v17  ;;  %v409_v20 = vld [vmem:[#allocation2] sm:$0x10] }
  0x77   : > { %v412_v21 = vld [vmem:[#allocation2 + $0x8] sm:$0x10]  ;;  %402 = vst [vmem:[#allocation2 + $0x130] sm:$0x1] %v401_v18  ;;  %405 = vst [vmem:[#allocation2 + $0x138] sm:$0x1] %v404_v19 }
  0x78   : > { %v410_v22 = vsel %vm10444_vm5, 0, %v409_v20  ;;  %v413_v23 = vsel %vm10444_vm5, 0, %v412_v21  ;;  %v415_v24 = vld [vmem:[#allocation2 + $0x10] sm:$0x10]  ;;  %v418_v25 = vld [vmem:[#allocation2 + $0x18] sm:$0x10] }
  0x79   : > { %411 = vst [vmem:[#allocation2] sm:$0x10] %v410_v22  ;;  %414 = vst [vmem:[#allocation2 + $0x8] sm:$0x10] %v413_v23  ;;  %v416_v26 = vsel %vm10444_vm5, 0, %v415_v24  ;;  %v419_v1 = vsel %vm10444_vm5, 0, %v418_v25 }
  0x7a   : > { %v421_v27 = vld [vmem:[#allocation2 + $0x20] sm:$0x10]  ;;  %v424_v28 = vld [vmem:[#allocation2 + $0x28] sm:$0x10]  ;;  %417 = vst [vmem:[#allocation2 + $0x10] sm:$0x10] %v416_v26 }
  0x7b   : > { %420 = vst [vmem:[#allocation2 + $0x18] sm:$0x10] %v419_v1  ;;  %v422_v29 = vsel %vm10444_vm5, 0, %v421_v27  ;;  %v425_v30 = vsel %vm10444_vm5, 0, %v424_v28  ;;  %v427_v31 = vld [vmem:[#allocation2 + $0x30] sm:$0x10] }
  0x7c   : > { %v430_v32 = vld [vmem:[#allocation2 + $0x38] sm:$0x10]  ;;  %423 = vst [vmem:[#allocation2 + $0x20] sm:$0x10] %v422_v29  ;;  %426 = vst [vmem:[#allocation2 + $0x28] sm:$0x10] %v425_v30 }
  0x7d   : > { %v428_v33 = vsel %vm10444_vm5, 0, %v427_v31  ;;  %v431_v34 = vsel %vm10444_vm5, 0, %v430_v32  ;;  %v433_v35 = vld [vmem:[#allocation2 + $0x40] sm:$0x10]  ;;  %v436_v36 = vld [vmem:[#allocation2 + $0x48] sm:$0x10] }
  0x7e   : > { %429 = vst [vmem:[#allocation2 + $0x30] sm:$0x10] %v428_v33  ;;  %432 = vst [vmem:[#allocation2 + $0x38] sm:$0x10] %v431_v34  ;;  %v434_v37 = vsel %vm10444_vm5, 0, %v433_v35  ;;  %v437_v38 = vsel %vm10444_vm5, 0, %v436_v36 }
  0x7f   : > { %v439_v39 = vld [vmem:[#allocation2 + $0x50] sm:$0x10]  ;;  %v442_v40 = vld [vmem:[#allocation2 + $0x58] sm:$0x10]  ;;  %435 = vst [vmem:[#allocation2 + $0x40] sm:$0x10] %v434_v37 }
  0x80   : > { %438 = vst [vmem:[#allocation2 + $0x48] sm:$0x10] %v437_v38  ;;  %v440_v41 = vsel %vm10444_vm5, 0, %v439_v39  ;;  %v443_v42 = vsel %vm10444_vm5, 0, %v442_v40  ;;  %v445_v43 = vld [vmem:[#allocation2 + $0x60] sm:$0x10] }
  0x81   : > { %v448_v44 = vld [vmem:[#allocation2 + $0x68] sm:$0x10]  ;;  %441 = vst [vmem:[#allocation2 + $0x50] sm:$0x10] %v440_v41  ;;  %444 = vst [vmem:[#allocation2 + $0x58] sm:$0x10] %v443_v42 }
  0x82   : > { %v446_v45 = vsel %vm10444_vm5, 0, %v445_v43  ;;  %v449_v46 = vsel %vm10444_vm5, 0, %v448_v44  ;;  %v451_v47 = vld [vmem:[#allocation2 + $0x70] sm:$0x10]  ;;  %v454_v48 = vld [vmem:[#allocation2 + $0x78] sm:$0x10] }
  0x83   : > { %447 = vst [vmem:[#allocation2 + $0x60] sm:$0x10] %v446_v45  ;;  %450 = vst [vmem:[#allocation2 + $0x68] sm:$0x10] %v449_v46  ;;  %v452_v49 = vsel %vm10444_vm5, 0, %v451_v47  ;;  %v455_v50 = vsel %vm10444_vm5, 0, %v454_v48 }
  0x84   : > { %v457_v51 = vld [vmem:[#allocation2 + $0x80] sm:$0x10]  ;;  %v460_v52 = vld [vmem:[#allocation2 + $0x88] sm:$0x10]  ;;  %453 = vst [vmem:[#allocation2 + $0x70] sm:$0x10] %v452_v49 }
  0x85   : > { %456 = vst [vmem:[#allocation2 + $0x78] sm:$0x10] %v455_v50  ;;  %v458_v53 = vsel %vm10444_vm5, 0, %v457_v51  ;;  %v461_v54 = vsel %vm10444_vm5, 0, %v460_v52  ;;  %v463_v55 = vld [vmem:[#allocation2 + $0x90] sm:$0x10] }
  0x86   : > { %v466_v56 = vld [vmem:[#allocation2 + $0x98] sm:$0x10]  ;;  %459 = vst [vmem:[#allocation2 + $0x80] sm:$0x10] %v458_v53  ;;  %462 = vst [vmem:[#allocation2 + $0x88] sm:$0x10] %v461_v54 }
  0x87   : > { %v464_v57 = vsel %vm10444_vm5, 0, %v463_v55  ;;  %v467_v58 = vsel %vm10444_vm5, 0, %v466_v56  ;;  %v469_v59 = vld [vmem:[#allocation2 + $0xa0] sm:$0x10]  ;;  %v472_v60 = vld [vmem:[#allocation2 + $0xa8] sm:$0x10] }
  0x88   : > { %465 = vst [vmem:[#allocation2 + $0x90] sm:$0x10] %v464_v57  ;;  %468 = vst [vmem:[#allocation2 + $0x98] sm:$0x10] %v467_v58  ;;  %v470_v61 = vsel %vm10444_vm5, 0, %v469_v59  ;;  %v473_v62 = vsel %vm10444_vm5, 0, %v472_v60 }
  0x89   : > { %v475_v63 = vld [vmem:[#allocation2 + $0xb0] sm:$0x10]  ;;  %v478_v0 = vld [vmem:[#allocation2 + $0xb8] sm:$0x10]  ;;  %471 = vst [vmem:[#allocation2 + $0xa0] sm:$0x10] %v470_v61 }
  0x8a   : > { %474 = vst [vmem:[#allocation2 + $0xa8] sm:$0x10] %v473_v62  ;;  %v476_v2 = vsel %vm10444_vm5, 0, %v475_v63  ;;  %v479_v3 = vsel %vm10444_vm5, 0, %v478_v0  ;;  %v481_v4 = vld [vmem:[#allocation2 + $0xc0] sm:$0x10] }
  0x8b   : > { %v484_v5 = vld [vmem:[#allocation2 + $0xc8] sm:$0x10]  ;;  %v10504_v6 = vld [vmem:[#allocation11] sm:$0xff]  ;;  %v10506_v7 = vld [vmem:[#allocation11 + $0x8] sm:$0xff]  ;;  %477 = vst [vmem:[#allocation2 + $0xb0] sm:$0x10] %v476_v2 }
  0x8c   : > { %480 = vst [vmem:[#allocation2 + $0xb8] sm:$0x10] %v479_v3  ;;  %v482_v8 = vsel %vm10444_vm5, 0, %v481_v4  ;;  %v485_v9 = vsel %vm10444_vm5, 0, %v484_v5  ;;  %v487_v10 = vld [vmem:[#allocation2 + $0xd0] sm:$0x10]  ;;  %v561_v28 = vadd.f32 %v10506_v7, %v10504_v6 }
  0x8d   : > { %v490_v11 = vld [vmem:[#allocation2 + $0xd8] sm:$0x10]  ;;  %483 = vst [vmem:[#allocation2 + $0xc0] sm:$0x10] %v482_v8  ;;  %486 = vst [vmem:[#allocation2 + $0xc8] sm:$0x10] %v485_v9 }
  0x8e   : > { %v488_v12 = vsel %vm10444_vm5, 0, %v487_v10  ;;  %v491_v14 = vsel %vm10444_vm5, 0, %v490_v11  ;;  %v493_v15 = vld [vmem:[#allocation2 + $0xe0] sm:$0x10]  ;;  %v496_v16 = vld [vmem:[#allocation2 + $0xe8] sm:$0x10] }
  0x8f   : > { %489 = vst [vmem:[#allocation2 + $0xd0] sm:$0x10] %v488_v12  ;;  %492 = vst [vmem:[#allocation2 + $0xd8] sm:$0x10] %v491_v14  ;;  %v494_v17 = vsel %vm10444_vm5, 0, %v493_v15  ;;  %v497_v18 = vsel %vm10444_vm5, 0, %v496_v16 }
  0x90   : > { %v499_v19 = vld [vmem:[#allocation2 + $0xf0] sm:$0x10]  ;;  %v502_v20 = vld [vmem:[#allocation2 + $0xf8] sm:$0x10]  ;;  %495 = vst [vmem:[#allocation2 + $0xe0] sm:$0x10] %v494_v17 }
  0x91   : > { %498 = vst [vmem:[#allocation2 + $0xe8] sm:$0x10] %v497_v18  ;;  %v500_v21 = vsel %vm10444_vm5, 0, %v499_v19  ;;  %v503_v22 = vsel %vm10444_vm5, 0, %v502_v20  ;;  %v505_v23 = vld [vmem:[#allocation2 + $0x100] sm:$0x10] }
  0x92   : > { %v508_v24 = vld [vmem:[#allocation2 + $0x108] sm:$0x10]  ;;  %501 = vst [vmem:[#allocation2 + $0xf0] sm:$0x10] %v500_v21  ;;  %504 = vst [vmem:[#allocation2 + $0xf8] sm:$0x10] %v503_v22 }
  0x93   : > { %v506_v25 = vsel %vm10444_vm5, 0, %v505_v23  ;;  %v509_v26 = vsel %vm10444_vm5, 0, %v508_v24  ;;  %v511_v1 = vld [vmem:[#allocation2 + $0x110] sm:$0x10]  ;;  %v514_v27 = vld [vmem:[#allocation2 + $0x118] sm:$0x10] }
  0x94   : > { %507 = vst [vmem:[#allocation2 + $0x100] sm:$0x10] %v506_v25  ;;  %510 = vst [vmem:[#allocation2 + $0x108] sm:$0x10] %v509_v26  ;;  %v512_v29 = vsel %vm10444_vm5, 0, %v511_v1  ;;  %v515_v30 = vsel %vm10444_vm5, 0, %v514_v27 }
  0x95   : > { %v517_v31 = vld [vmem:[#allocation2 + $0x120] sm:$0x10]  ;;  %v520_v32 = vld [vmem:[#allocation2 + $0x128] sm:$0x10]  ;;  %513 = vst [vmem:[#allocation2 + $0x110] sm:$0x10] %v512_v29 }
  0x96   : > { %516 = vst [vmem:[#allocation2 + $0x118] sm:$0x10] %v515_v30  ;;  %v518_v33 = vsel %vm10444_vm5, 0, %v517_v31  ;;  %v521_v34 = vsel %vm10444_vm5, 0, %v520_v32  ;;  %v523_v35 = vld [vmem:[#allocation2 + $0x130] sm:$0x10] }
  0x97   : > { %v526_v36 = vld [vmem:[#allocation2 + $0x138] sm:$0x10]  ;;  %519 = vst [vmem:[#allocation2 + $0x120] sm:$0x10] %v518_v33  ;;  %522 = vst [vmem:[#allocation2 + $0x128] sm:$0x10] %v521_v34 }
  0x98   : > { %v524_v37 = vsel %vm10444_vm5, 0, %v523_v35  ;;  %v527_v38 = vsel %vm10444_vm5, 0, %v526_v36  ;;  %v10542_v39 = vld [vmem:[#allocation11 + $0x10] sm:$0xff]  ;;  %v10544_v40 = vld [vmem:[#allocation11 + $0x18] sm:$0xff]  ;;  %v10547_v42 = vld [vmem:[#allocation11 + $0x20] sm:$0xff] }
  0x99   : > { %525 = vst [vmem:[#allocation2 + $0x130] sm:$0x10] %v524_v37  ;;  %528 = vst [vmem:[#allocation2 + $0x138] sm:$0x10] %v527_v38  ;;  %v562_v41 = vadd.f32 %v561_v28, %v10542_v39  ;;  %v10550_v44 = vld [vmem:[#allocation11 + $0x28] sm:$0xff]  ;;  %v10553_v46 = vld [vmem:[#allocation11 + $0x30] sm:$0xff] }
  0x9a   : > { %v10556_v47 = vld [vmem:[#allocation11 + $0x38] sm:$0xff]  ;;  %v10559_v49 = vld [vmem:[#allocation11 + $0x40] sm:$0xff]  ;;  %v10562_v51 = vld [vmem:[#allocation11 + $0x48] sm:$0xff] }
  0x9b   : > { %v563_v43 = vadd.f32 %v562_v41, %v10544_v40  ;;  %v10565_v53 = vld [vmem:[#allocation11 + $0x50] sm:$0xff]  ;;  %v10568_v55 = vld [vmem:[#allocation11 + $0x58] sm:$0xff]  ;;  %v10571_v57 = vld [vmem:[#allocation11 + $0x60] sm:$0xff] }
  0x9c   : > { %v10574_v59 = vld [vmem:[#allocation11 + $0x68] sm:$0xff]  ;;  %v10577_v61 = vld [vmem:[#allocation11 + $0x70] sm:$0xff]  ;;  %v10580_v63 = vld [vmem:[#allocation11 + $0x78] sm:$0xff] }
  0x9d   : > { %v564_v45 = vadd.f32 %v563_v43, %v10547_v42  ;;  %v10583_v2 = vld [vmem:[#allocation11 + $0x80] sm:$0xff]  ;;  %v10586_v4 = vld [vmem:[#allocation11 + $0x88] sm:$0xff]  ;;  %v10589_v8 = vld [vmem:[#allocation11 + $0x90] sm:$0xff] }
  0x9e   : > { %v10592_v10 = vld [vmem:[#allocation11 + $0x98] sm:$0xff]  ;;  %v10595_v12 = vld [vmem:[#allocation11 + $0xa0] sm:$0xff]  ;;  %v10598_v15 = vld [vmem:[#allocation11 + $0xa8] sm:$0xff] }
  0x9f   : > { %v565_v13 = vadd.f32 %v564_v45, %v10550_v44  ;;  %v10601_v17 = vld [vmem:[#allocation11 + $0xb0] sm:$0xff]  ;;  %v10604_v19 = vld [vmem:[#allocation11 + $0xb8] sm:$0xff]  ;;  %v10607_v21 = vld [vmem:[#allocation11 + $0xc0] sm:$0xff] }
  0xa0   : > { %v10610_v23 = vld [vmem:[#allocation11 + $0xc8] sm:$0xff]  ;;  %v10613_v25 = vld [vmem:[#allocation11 + $0xd0] sm:$0xff]  ;;  %v556_v1 = vld [vmem:[#allocation11 + $0xd8] sm:$0xff] }
  0xa1   : > { %v566_v48 = vadd.f32 %v565_v13, %v10553_v46  ;;  %v557_v28 = vld [vmem:[#allocation11 + $0xe0] sm:$0xff]  ;;  %v558_v30 = vld [vmem:[#allocation11 + $0xe8] sm:$0xff]  ;;  %v559_v32 = vld [vmem:[#allocation11 + $0xf0] sm:$0xff] }
  0xa2   : > { %v560_v34 = vld [vmem:[#allocation11 + $0xf8] sm:$0xff] }
  0xa3   : > { %v567_v50 = vadd.f32 %v566_v48, %v10556_v47 }
  0xa5   : > { %v568_v52 = vadd.f32 %v567_v50, %v10559_v49 }
  0xa7   : > { %v569_v54 = vadd.f32 %v568_v52, %v10562_v51 }
  0xa9   : > { %v570_v56 = vadd.f32 %v569_v54, %v10565_v53 }
  0xab   : > { %v571_v58 = vadd.f32 %v570_v56, %v10568_v55 }
  0xad   : > { %v572_v60 = vadd.f32 %v571_v58, %v10571_v57 }
  0xaf   : > { %v573_v62 = vadd.f32 %v572_v60, %v10574_v59 }
  0xb1   : > { %v574_v0 = vadd.f32 %v573_v62, %v10577_v61 }
  0xb3   : > { %v575_v3 = vadd.f32 %v574_v0, %v10580_v63 }
  0xb5   : > { %v576_v5 = vadd.f32 %v575_v3, %v10583_v2 }
  0xb7   : > { %v577_v9 = vadd.f32 %v576_v5, %v10586_v4 }
  0xb9   : > { %v578_v11 = vadd.f32 %v577_v9, %v10589_v8 }
  0xbb   : > { %v579_v14 = vadd.f32 %v578_v11, %v10592_v10 }
  0xbd   : > { %v580_v16 = vadd.f32 %v579_v14, %v10595_v12 }
  0xbf   : > { %v581_v18 = vadd.f32 %v580_v16, %v10598_v15 }
  0xc1   : > { %v582_v20 = vadd.f32 %v581_v18, %v10601_v17 }
  0xc3   : > { %v583_v22 = vadd.f32 %v582_v20, %v10604_v19 }
  0xc5   : > { %v584_v24 = vadd.f32 %v583_v22, %v10607_v21 }
  0xc7   : > { %v585_v26 = vadd.f32 %v584_v24, %v10610_v23 }
  0xc9   : > { %v586_v27 = vadd.f32 %v585_v26, %v10613_v25 }
  0xcb   : > { %v587_v29 = vadd.f32 %v586_v27, %v556_v1 }
  0xcd   : > { %v588_v31 = vadd.f32 %v587_v29, %v557_v28 }
  0xcf   : > { %v589_v33 = vadd.f32 %v588_v31, %v558_v30 }
  0xd1   : > { %v590_v35 = vadd.f32 %v589_v33, %v559_v32 }
  0xd3   : > { %v591_v36 = vadd.f32 %v590_v35, %v560_v34 }
  0xd5   : > { %v592_v37 = vrot.slane %v591_v36, 4 }
  0xd7   : > { %v593_v38 = vadd.f32 %v592_v37, %v591_v36 }
  0xd9   : > { %v594_v41 = vrot.slane %v593_v38, 2 }
  0xdb   : > { %v595_v43 = vadd.f32 %v594_v41, %v593_v38 }
  0xdd   : > { %v596_v45 = vrot.slane %v595_v43, 1 }
  0xdf   : > { %v597_v13 = vadd.f32 %v596_v45, %v595_v43 }
  0xe1   : > { %v10617_v48 = vmul.f32 0.00390625, %v597_v13 }
  0xe3   : > { %599 = vst [vmem:[#allocation3] sm:$0x1] %v10617_v48  ;;  %v10621_v50 = vsub.f32 %v556_v1, %v10617_v48  ;;  %v10624_v52 = vsub.f32 %v557_v28, %v10617_v48  ;;  %v10627_v54 = vsub.f32 %v558_v30, %v10617_v48  ;;  %v10630_v56 = vsub.f32 %v559_v32, %v10617_v48 }
  0xe4   : > { %v10633_v58 = vsub.f32 %v560_v34, %v10617_v48  ;;  %v600_v60 = vsub.f32 %v10504_v6, %v10617_v48  ;;  %v601_v62 = vsub.f32 %v10506_v7, %v10617_v48  ;;  %v602_v0 = vsub.f32 %v10542_v39, %v10617_v48 }
  0xe5   : > { %v603_v3 = vsub.f32 %v10544_v40, %v10617_v48  ;;  %v604_v11 = vsub.f32 %v10547_v42, %v10617_v48  ;;  %v605_v16 = vsub.f32 %v10550_v44, %v10617_v48  ;;  %v606_v7 = vsub.f32 %v10553_v46, %v10617_v48 }
  0xe6   : > { %v632_v5 = vmul.f32 %v600_v60, %v600_v60  ;;  %v633_v9 = vmul.f32 %v601_v62, %v601_v62  ;;  %v634_v14 = vmul.f32 %v602_v0, %v602_v0  ;;  %v607_v39 = vsub.f32 %v10556_v47, %v10617_v48 }
  0xe7   : > { %v635_v18 = vmul.f32 %v603_v3, %v603_v3  ;;  %v636_v20 = vmul.f32 %v604_v11, %v604_v11  ;;  %v637_v40 = vmul.f32 %v605_v16, %v605_v16  ;;  %v608_v26 = vsub.f32 %v10559_v49, %v10617_v48 }
  0xe8   : > { %v664_v6 = vadd.f32 %v633_v9, %v632_v5  ;;  %v638_v42 = vmul.f32 %v606_v7, %v606_v7  ;;  %v609_v44 = vsub.f32 %v10562_v51, %v10617_v48  ;;  %v639_v27 = vmul.f32 %v607_v39, %v607_v39 }
  0xe9   : > { %v610_v46 = vsub.f32 %v10565_v53, %v10617_v48  ;;  %v640_v29 = vmul.f32 %v608_v26, %v608_v26  ;;  %v611_v47 = vsub.f32 %v10568_v55, %v10617_v48  ;;  %v612_v49 = vsub.f32 %v10571_v57, %v10617_v48 }
  0xea   : > { %v665_v22 = vadd.f32 %v664_v6, %v634_v14  ;;  %v641_v31 = vmul.f32 %v609_v44, %v609_v44  ;;  %v613_v51 = vsub.f32 %v10574_v59, %v10617_v48  ;;  %v614_v53 = vsub.f32 %v10577_v61, %v10617_v48 }
  0xeb   : > { %v642_v33 = vmul.f32 %v610_v46, %v610_v46  ;;  %v643_v35 = vmul.f32 %v611_v47, %v611_v47  ;;  %v644_v37 = vmul.f32 %v612_v49, %v612_v49  ;;  %v615_v55 = vsub.f32 %v10580_v63, %v10617_v48 }
  0xec   : > { %v666_v24 = vadd.f32 %v665_v22, %v635_v18  ;;  %v645_v41 = vmul.f32 %v613_v51, %v613_v51  ;;  %v616_v57 = vsub.f32 %v10583_v2, %v10617_v48  ;;  %v646_v45 = vmul.f32 %v614_v53, %v614_v53 }
  0xed   : > { %v617_v59 = vsub.f32 %v10586_v4, %v10617_v48  ;;  %v647_v60 = vmul.f32 %v615_v55, %v615_v55  ;;  %v618_v61 = vsub.f32 %v10589_v8, %v10617_v48  ;;  %v619_v63 = vsub.f32 %v10592_v10, %v10617_v48 }
  0xee   : > { %v667_v1 = vadd.f32 %v666_v24, %v636_v20  ;;  %v648_v0 = vmul.f32 %v616_v57, %v616_v57  ;;  %v620_v2 = vsub.f32 %v10595_v12, %v10617_v48  ;;  %v621_v4 = vsub.f32 %v10598_v15, %v10617_v48 }
  0xef   : > { %v649_v5 = vmul.f32 %v617_v59, %v617_v59  ;;  %v650_v11 = vmul.f32 %v618_v61, %v618_v61  ;;  %v651_v16 = vmul.f32 %v619_v63, %v619_v63  ;;  %v622_v8 = vsub.f32 %v10601_v17, %v10617_v48 }
  0xf0   : > { %v668_v28 = vadd.f32 %v667_v1, %v637_v40  ;;  %v652_v6 = vmul.f32 %v620_v2, %v620_v2  ;;  %v623_v10 = vsub.f32 %v10604_v19, %v10617_v48  ;;  %v653_v20 = vmul.f32 %v621_v4, %v621_v4 }
  0xf1   : > { %v624_v12 = vsub.f32 %v10607_v21, %v10617_v48  ;;  %v654_v39 = vmul.f32 %v622_v8, %v622_v8  ;;  %v625_v15 = vsub.f32 %v10610_v23, %v10617_v48  ;;  %v626_v17 = vsub.f32 %v10613_v25, %v10617_v48 }
  0xf2   : > { %v669_v30 = vadd.f32 %v668_v28, %v638_v42  ;;  %v655_v24 = vmul.f32 %v623_v10, %v623_v10  ;;  %v659_v46 = vmul.f32 %v10621_v50, %v10621_v50  ;;  %v661_v23 = vmul.f32 %v10627_v54, %v10627_v54 }
  0xf3   : > { %v656_v42 = vmul.f32 %v624_v12, %v624_v12  ;;  %v657_v44 = vmul.f32 %v625_v15, %v625_v15  ;;  %v658_v19 = vmul.f32 %v626_v17, %v626_v17  ;;  %v662_v25 = vmul.f32 %v10630_v56, %v10630_v56 }
  0xf4   : > { %v670_v32 = vadd.f32 %v669_v30, %v639_v27 }
  0xf6   : > { %v671_v34 = vadd.f32 %v670_v32, %v640_v29  ;;  %v660_v29 = vmul.f32 %v10624_v52, %v10624_v52 }
  0xf8   : > { %v672_v36 = vadd.f32 %v671_v34, %v641_v31  ;;  %v663_v31 = vmul.f32 %v10633_v58, %v10633_v58 }
  0xfa   : > { %v673_v38 = vadd.f32 %v672_v36, %v642_v33 }
  0xfc   : > { %v674_v43 = vadd.f32 %v673_v38, %v643_v35 }
  0xfe   : > { %v675_v13 = vadd.f32 %v674_v43, %v644_v37 }
 0x100   : > { %v676_v62 = vadd.f32 %v675_v13, %v645_v41 }
 0x102   : > { %v677_v3 = vadd.f32 %v676_v62, %v646_v45 }
 0x104   : > { %v678_v9 = vadd.f32 %v677_v3, %v647_v60 }
 0x106   : > { %v679_v14 = vadd.f32 %v678_v9, %v648_v0 }
 0x108   : > { %v680_v18 = vadd.f32 %v679_v14, %v649_v5 }
 0x10a   : > { %v681_v7 = vadd.f32 %v680_v18, %v650_v11 }
 0x10c   : > { %v682_v22 = vadd.f32 %v681_v7, %v651_v16 }
 0x10e   : > { %v683_v40 = vadd.f32 %v682_v22, %v652_v6 }
 0x110   : > { %v684_v26 = vadd.f32 %v683_v40, %v653_v20 }
 0x112   : > { %v685_v1 = vadd.f32 %v684_v26, %v654_v39 }
 0x114   : > { %v686_v27 = vadd.f32 %v685_v1, %v655_v24 }
 0x116   : > { %v687_v28 = vadd.f32 %v686_v27, %v656_v42 }
 0x118   : > { %v688_v21 = vadd.f32 %v687_v28, %v657_v44 }
 0x11a   : > { %v689_v30 = vadd.f32 %v688_v21, %v658_v19 }
 0x11c   : > { %v690_v47 = vadd.f32 %v689_v30, %v659_v46 }
 0x11e   : > { %v691_v48 = vadd.f32 %v690_v47, %v660_v29 }
 0x120   : > { %v692_v32 = vadd.f32 %v691_v48, %v661_v23 }
 0x122   : > { %v693_v49 = vadd.f32 %v692_v32, %v662_v25 }
 0x124   : > { %v694_v33 = vadd.f32 %v693_v49, %v663_v31 }
 0x126   : > { %v695_v50 = vrot.slane %v694_v33, 4 }
 0x128   : > { %v696_v34 = vadd.f32 %v695_v50, %v694_v33 }
 0x12a   : > { %v697_v51 = vrot.slane %v696_v34, 2 }
 0x12c   : > { %v698_v35 = vadd.f32 %v697_v51, %v696_v34 }
 0x12e   : > { %v699_v52 = vrot.slane %v698_v35, 1 }
 0x130   : > { %v700_v36 = vadd.f32 %v699_v52, %v698_v35 }
 0x132   : > { %v701_v53 = vmul.f32 0.00390625, %v700_v36 }
 0x134   : > { %702 = vst [vmem:[#allocation4] sm:$0x1] %v701_v53 }
 0x135 PF: > { %v9540_v54 = vld [vmem:[%s10331_s27] sm:$0xff]   ;;  %v9541_v56 = vld [vmem:[%s10331_s27 + $0x8] sm:$0xff]   ;;  %v9542_v37 = vld [vmem:[%s10331_s27 + $0x10] sm:$0xff]   ;;  %v745_v62 = vlaneseq  ;;  %vm1205_vm6 = vcmask 1044480   ;;  %vm1206_vm7 = vsmask.f32 4354 }
 0x136   : > { %8748 = vmatprep.subr.bf16.mxu1 %v9540_v54  ;;  %v9543_v58 = vld [vmem:[%s10331_s27 + $0x100] sm:$0xff]   ;;  %v9545_v38 = vld [vmem:[%s10331_s27 + $0x108] sm:$0xff]   ;;  %v9547_v55 = vld [vmem:[%s10331_s27 + $0x110] sm:$0xff]   ;;  %vm1889_vm9 = vsmask.f32 3328  ;;  %vm2854_vm12 = vcmask 1042432  }
 0x137   : > { %8749 = vmatpush3.bf16.msra.mxu1 %v9540_v54  ;;  %8940 = vmatprep.subr.bf16.mxu0 %v9543_v58  ;;  %v9544_v41 = vld [vmem:[%s10331_s27 + $0x18] sm:$0xff]   ;;  %v9546_v57 = vld [vmem:[%s10331_s27 + $0x20] sm:$0xff]   ;;  %v9548_v60 = vld [vmem:[%s10331_s27 + $0x28] sm:$0xff]   ;;  %v746_v3 = vshrl.u32 %v745_v62, 7  ;;  %vm1890_vm10 = vsmask.f32 7440 }
 0x138   : > { %8750 = vmatprep.subr.bf16.mxu1 %v9541_v56  ;;  %8941 = vmatpush3.bf16.msra.mxu0 %v9543_v58  ;;  %v9549_v43 = vld [vmem:[%s10331_s27 + $0x118] sm:$0xff]   ;;  %v9551_v13 = vld [vmem:[%s10331_s27 + $0x120] sm:$0xff]   ;;  %v9553_v61 = vld [vmem:[%s10331_s27 + $0x128] sm:$0xff]   ;;  %vm2855_vm13 = vcmask 1046532   ;;  %s10195_s19 = smov [#allocation11]   ;;  %p9498_p5 = scmp.eq.s32.totalorder %s10264_s0, 1 }
 0x139   : > { %8942 = vmatprep.subr.bf16.mxu0 %v9545_v38  ;;  %v9550_v0 = vld [vmem:[%s10331_s27 + $0x30] sm:$0xff]   ;;  %v9552_v5 = vld [vmem:[%s10331_s27 + $0x38] sm:$0xff]   ;;  %v747_v11 = vsub.s32 0, %v746_v3  ;;  %v712_v16 = vld [vmem:[#allocation11] sm:$0xff] }
 0x13a   : > { %v9556_v63 = vld [vmem:[%s10331_s27 + $0x130] sm:$0xff]   ;;  %v705_v9 = vld [vmem:[%s245_s24] sm:$0x1]  ;;  %v713_v18 = vld [vmem:[#allocation11 + $0x8] sm:$0xff] }
 0x13b   : > { %8751 = vmatpush3.bf16.msra.mxu1 %v9541_v56  ;;  %v704_v45 = vld [vmem:[#allocation4] sm:$0x1]  ;;  %v703_v2 = vld [vmem:[#allocation3] sm:$0x1]  ;;  %v716_v20 = vld [vmem:[#allocation11 + $0x20] sm:$0xff] }
 0x13c   : > { %8752 = vmatprep.subr.bf16.mxu1 %v9542_v37  ;;  %8943 = vmatpush3.bf16.msra.mxu0 %v9545_v38  ;;  %v706_v59 = vadd.f32 1e-05, %v704_v45  ;;  %v709_v4 = vld [vmem:[%s248_s29] sm:$0x1]  ;;  %v714_v8 = vld [vmem:[#allocation11 + $0x10] sm:$0xff]  ;;  %v717_v22 = vld [vmem:[#allocation11 + $0x28] sm:$0xff] }
 0x13d   : > { %8944 = vmatprep.subr.bf16.mxu0 %v9547_v55  ;;  %v9557_v6 = vld [vmem:[%s10331_s27 + $0x138] sm:$0xff]   ;;  %v718_v12 = vld [vmem:[#allocation11 + $0x30] sm:$0xff]  ;;  %v10726_v39 = vld [vmem:[%s10331_s27 + $0x40] sm:$0xff]  }
 0x13e   : > { %10044 = vrsqrt.f32 %v706_v59  ;;  %v715_v10 = vld [vmem:[#allocation11 + $0x18] sm:$0xff]  ;;  %v10729_v40 = vld [vmem:[%s10331_s27 + $0x140] sm:$0xff]   ;;  %v721_v17 = vld [vmem:[#allocation11 + $0x48] sm:$0xff] }
 0x13f   : > { %8753 = vmatpush3.bf16.msra.mxu1 %v9542_v37  ;;  %v720_v26 = vld [vmem:[#allocation11 + $0x40] sm:$0xff]  ;;  %v722_v42 = vld [vmem:[#allocation11 + $0x50] sm:$0xff]  ;;  %v719_v28 = vld [vmem:[#allocation11 + $0x38] sm:$0xff] }
 0x140   : > { %8754 = vmatprep.subr.bf16.mxu1 %v9544_v41  ;;  %8945 = vmatpush3.bf16.msra.mxu0 %v9547_v55  ;;  %v723_v46 = vld [vmem:[#allocation11 + $0x58] sm:$0xff]  ;;  %v724_v21 = vld [vmem:[#allocation11 + $0x60] sm:$0xff]  ;;  %v725_v25 = vld [vmem:[#allocation11 + $0x68] sm:$0xff] }
 0x141   : > { %8946 = vmatprep.subr.bf16.mxu0 %v9549_v43  ;;  %vm10775_vm8 = vmand %vm1205_vm6, %vm1206_vm7 }
 0x142   : > { %vm10859_vm11 = vmor %vm1889_vm9, %vm1890_vm10 }
 0x143   : > { %8755 = vmatpush3.bf16.msra.mxu1 %v9544_v41  ;;  %vm10959_vm14 = vmor %vm2854_vm12, %vm2855_vm13 }
 0x144   : > { %8756 = vmatprep.subr.bf16.mxu1 %v9546_v57  ;;  %8947 = vmatpush3.bf16.msra.mxu0 %v9549_v43 }
 0x145   : > { %8948 = vmatprep.subr.bf16.mxu0 %v9551_v13 }
 0x147   : > { %8757 = vmatpush3.bf16.msra.mxu1 %v9546_v57 }
 0x148   : > { %8758 = vmatprep.subr.bf16.mxu1 %v9548_v60  ;;  %8949 = vmatpush3.bf16.msra.mxu0 %v9551_v13  ;;  %v10045_v14 = vpop.eup %10044 }
 0x149   : > { %8950 = vmatprep.subr.bf16.mxu0 %v9553_v61  ;;  %v708_v7 = vmul.f32 %v10045_v14, %v705_v9 }
 0x14b   : > { %8759 = vmatpush3.bf16.msra.mxu1 %v9548_v60  ;;  %v710_v15 = vmul.f32 %v708_v7, %v703_v2  ;;  %v10731_v24 = vrot.slane %v708_v7, %v747_v11 }
 0x14c   : > { %8760 = vmatprep.subr.bf16.mxu1 %v9550_v0  ;;  %8951 = vmatpush3.bf16.msra.mxu0 %v9553_v61 }
 0x14d   : > { %8952 = vmatprep.subr.bf16.mxu0 %v9556_v63  ;;  %v711_v1 = vsub.f32 %v709_v4, %v710_v15  ;;  %v750_v44 = vmul.f32 %v10731_v24, %v712_v16  ;;  %v751_v27 = vmul.f32 %v10731_v24, %v713_v18  ;;  %v752_v19 = vmul.f32 %v10731_v24, %v714_v8  ;;  %v1208_v16 = vld [vmem:[#allocation2 + $0x8] sm:$0x1f] }
 0x14e   : > { %v753_v29 = vmul.f32 %v10731_v24, %v715_v10  ;;  %v754_v30 = vmul.f32 %v10731_v24, %v716_v20  ;;  %v755_v23 = vmul.f32 %v10731_v24, %v717_v22  ;;  %v756_v47 = vmul.f32 %v10731_v24, %v718_v12 }
 0x14f   : > { %8761 = vmatpush3.bf16.msra.mxu1 %v9550_v0  ;;  %v10741_v48 = vrot.slane %v711_v1, %v747_v11  ;;  %v758_v31 = vmul.f32 %v10731_v24, %v720_v26  ;;  %v10745_v32 = vmul.f32 %v10731_v24, %v721_v17  ;;  %v10748_v49 = vmul.f32 %v10731_v24, %v722_v42  ;;  %v1214_v42 = vld [vmem:[#allocation2 + $0x18] sm:$0x1f] }
 0x150   : > { %8762 = vmatprep.subr.bf16.mxu1 %v9552_v5  ;;  %8953 = vmatpush3.bf16.msra.mxu0 %v9556_v63  ;;  %v10752_v33 = vmul.f32 %v10731_v24, %v719_v28  ;;  %v10755_v50 = vmul.f32 %v10731_v24, %v723_v46  ;;  %v10758_v34 = vmul.f32 %v10731_v24, %v724_v21  ;;  %v1217_v21 = vld [vmem:[#allocation2 + $0x20] sm:$0x1f] }
 0x151   : > { %8954 = vmatprep.subr.bf16.mxu0 %v9557_v6  ;;  %v10761_v51 = vmul.f32 %v10731_v24, %v725_v25  ;;  %v788_v35 = vadd.f32 %v10741_v48, %v750_v44  ;;  %v789_v52 = vadd.f32 %v10741_v48, %v751_v27  ;;  %v790_v36 = vadd.f32 %v10741_v48, %v752_v19 }
 0x152   : > { %v791_v53 = vadd.f32 %v10741_v48, %v753_v29  ;;  %v792_v54 = vadd.f32 %v10741_v48, %v754_v30  ;;  %v793_v56 = vadd.f32 %v10741_v48, %v755_v23  ;;  %v794_v58 = vadd.f32 %v10741_v48, %v756_v47  ;;  %v1220_v47 = vld [vmem:[#allocation2 + $0x28] sm:$0x1f] }
 0x153   : > { %8763 = vmatpush3.bf16.msra.mxu1 %v9552_v5  ;;  %v796_v37 = vadd.f32 %v10741_v48, %v758_v31  ;;  %v820_v38 = vmax.f32 %v788_v35, 0.0  ;;  %v821_v55 = vmax.f32 %v789_v52, 0.0  ;;  %v822_v41 = vmax.f32 %v790_v36, 0.0 }
 0x154   : > { %8796 = vmatprep.subr.bf16.mxu1 %v10726_v39  ;;  %8955 = vmatpush3.bf16.msra.mxu0 %v9557_v6  ;;  %v823_v43 = vmax.f32 %v791_v53, 0.0  ;;  %v824_v57 = vmax.f32 %v792_v54, 0.0  ;;  %v825_v45 = vmax.f32 %v793_v56, 0.0  ;;  %v826_v13 = vmax.f32 %v794_v58, 0.0  ;;  %v1211_v6 = vld [vmem:[#allocation2 + $0x10] sm:$0x1f] }
 0x155   : > { %8988 = vmatprep.subr.bf16.mxu0 %v10729_v40  ;;  %v828_v59 = vmax.f32 %v796_v37, 0.0  ;;  %v8500_v60 = vpack.c.bf16 %v820_v38, %v820_v38  ;;  %v8501_v62 = vpack.c.bf16 %v821_v55, %v821_v55  ;;  %v8502_v61 = vpack.c.bf16 %v822_v41, %v822_v41  ;;  %v1223_v54 = vld [vmem:[#allocation2 + $0x30] sm:$0x1f]  ;;  %v1226_v38 = vld [vmem:[#allocation2 + $0x38] sm:$0x1f] }
 0x156   : > { %v8503_v0 = vpack.c.bf16 %v823_v43, %v823_v43  ;;  %v8504_v3 = vpack.c.bf16 %v824_v57, %v824_v57  ;;  %v8505_v63 = vpack.c.bf16 %v825_v45, %v825_v45  ;;  %v8506_v5 = vpack.c.bf16 %v826_v13, %v826_v13  ;;  %v1232_v45 = vld [vmem:[#allocation2 + $0x58] sm:$0x1f] }
 0x157   : > { %v10771_v9 = vpack.c.bf16 %v828_v59, %v828_v59  ;;  %v949_v2 = vshrl.u32 %v8500_v60, 16  ;;  %v952_v11 = vshll.u32 %v8500_v60, 16  ;;  %v956_v14 = vshrl.u32 %v8501_v62, 16  ;;  %v726_v59 = vld [vmem:[#allocation11 + $0x70] sm:$0xff] }
 0x158   : > { %v959_v4 = vshll.u32 %v8501_v62, 16  ;;  %v963_v18 = vshrl.u32 %v8502_v61, 16  ;;  %v966_v8 = vshll.u32 %v8502_v61, 16  ;;  %v970_v7 = vshrl.u32 %v8503_v0, 16 }
 0x159   : > { %v973_v10 = vshll.u32 %v8503_v0, 16  ;;  %v951_v20 = vrot.slane %v949_v2, 7  ;;  %v958_v22 = vrot.slane %v956_v14, 7  ;;  %v977_v12 = vshrl.u32 %v8504_v3, 16  ;;  %v729_v2 = vld [vmem:[#allocation11 + $0x88] sm:$0xff] }
 0x15a   : > { %v980_v15 = vshll.u32 %v8504_v3, 16  ;;  %v965_v17 = vrot.slane %v963_v18, 7  ;;  %v972_v1 = vrot.slane %v970_v7, 7  ;;  %v984_v44 = vshrl.u32 %v8505_v63, 16  ;;  %v731_v18 = vld [vmem:[#allocation11 + $0x98] sm:$0xff] }
 0x15b   : > { %v987_v27 = vshll.u32 %v8505_v63, 16  ;;  %v954_v19 = vor.u32 %v952_v11, %v951_v20  ;;  %v961_v28 = vor.u32 %v959_v4, %v958_v22  ;;  %v979_v46 = vrot.slane %v977_v12, 7  ;;  %v730_v4 = vld [vmem:[#allocation11 + $0x90] sm:$0xff]  ;;  %v9573_v12 = vld [vmem:[%s10331_s27 + $0x48] sm:$0xff]  }
 0x15c   : > { %v991_v29 = vshrl.u32 %v8506_v5, 16  ;;  %v968_v30 = vor.u32 %v966_v8, %v965_v17  ;;  %v975_v23 = vor.u32 %v973_v10, %v972_v1  ;;  %v986_v25 = vrot.slane %v984_v44, 7  ;;  %v733_v10 = vld [vmem:[#allocation11 + $0xa8] sm:$0xff] }
 0x15d   : > { %v994_v31 = vshll.u32 %v8506_v5, 16  ;;  %v1209_v35 = vsel %vm10775_vm8, %v954_v19, %v1208_v16  ;;  %v1212_v52 = vsel %vm10775_vm8, %v961_v28, %v1211_v6  ;;  %v982_v36 = vor.u32 %v980_v15, %v979_v46  ;;  %v727_v16 = vld [vmem:[#allocation11 + $0x78] sm:$0xff] }
 0x15e   : > { %v993_v53 = vrot.slane %v991_v29, 7  ;;  %1210 = vst [vmem:[#allocation2 + $0x8] sm:$0x1f] %v1209_v35  ;;  %1213 = vst [vmem:[#allocation2 + $0x10] sm:$0x1f] %v1212_v52  ;;  %v1215_v56 = vsel %vm10775_vm8, %v968_v30, %v1214_v42  ;;  %v1218_v58 = vsel %vm10775_vm8, %v975_v23, %v1217_v21  ;;  %v989_v37 = vor.u32 %v987_v27, %v986_v25  ;;  %v734_v42 = vld [vmem:[#allocation11 + $0xb0] sm:$0xff] }
 0x15f   : > { %v1005_v55 = vshrl.u32 %v10771_v9, 16  ;;  %1216 = vst [vmem:[#allocation2 + $0x18] sm:$0x1f] %v1215_v56  ;;  %1219 = vst [vmem:[#allocation2 + $0x20] sm:$0x1f] %v1218_v58  ;;  %v1221_v41 = vsel %vm10775_vm8, %v982_v36, %v1220_v47  ;;  %v1008_v57 = vshll.u32 %v10771_v9, 16  ;;  %v797_v13 = vadd.f32 %v10741_v48, %v10745_v32 }
 0x160   : > { %v996_v43 = vor.u32 %v994_v31, %v993_v53  ;;  %1222 = vst [vmem:[#allocation2 + $0x28] sm:$0x1f] %v1221_v41  ;;  %v1224_v60 = vsel %vm10775_vm8, %v989_v37, %v1223_v54  ;;  %v798_v61 = vadd.f32 %v10741_v48, %v10748_v49  ;;  %v795_v0 = vadd.f32 %v10741_v48, %v10752_v33  ;;  %v728_v9 = vld [vmem:[#allocation11 + $0x80] sm:$0xff] }
 0x161   : > { %v1007_v62 = vrot.slane %v1005_v55, 7  ;;  %1225 = vst [vmem:[#allocation2 + $0x30] sm:$0x1f] %v1224_v60  ;;  %v829_v63 = vmax.f32 %v797_v13, 0.0  ;;  %v799_v32 = vadd.f32 %v10741_v48, %v10755_v50  ;;  %v800_v5 = vadd.f32 %v10741_v48, %v10758_v34  ;;  %v732_v34 = vld [vmem:[#allocation11 + $0xa0] sm:$0xff]  ;;  %v9586_v60 = vld [vmem:[%s10331_s27 + $0x50] sm:$0xff]  }
 0x162   : > { %v1227_v3 = vsel %vm10775_vm8, %v996_v43, %v1226_v38  ;;  %v830_v49 = vmax.f32 %v798_v61, 0.0  ;;  %v827_v14 = vmax.f32 %v795_v0, 0.0  ;;  %v764_v33 = vmul.f32 %v10731_v24, %v726_v59 }
 0x163   : > { %1228 = vst [vmem:[#allocation2 + $0x38] sm:$0x1f] %v1227_v3  ;;  %v1010_v11 = vor.u32 %v1008_v57, %v1007_v62  ;;  %v10806_v8 = vpack.c.bf16 %v829_v63, %v829_v63  ;;  %v831_v6 = vmax.f32 %v799_v32, 0.0  ;;  %v832_v7 = vmax.f32 %v800_v5, 0.0 }
 0x164   : > { %v10810_v50 = vadd.f32 %v10741_v48, %v10761_v51  ;;  %v10814_v22 = vpack.c.bf16 %v830_v49, %v830_v49  ;;  %v10817_v15 = vpack.c.bf16 %v827_v14, %v827_v14  ;;  %v10820_v17 = vadd.f32 %v10741_v48, %v764_v33 }
 0x165   : > { %v1233_v20 = vsel %vm10775_vm8, %v1010_v11, %v1232_v45  ;;  %v9554_v1 = vld [vmem:[#allocation2] ss:$8 sps:$4 sm:$0xff]   ;;  %v10822_v44 = vpack.c.bf16 %v831_v6, %v831_v6  ;;  %v10824_v51 = vpack.c.bf16 %v832_v7, %v832_v7  ;;  %v766_v27 = vmul.f32 %v10731_v24, %v728_v9  ;;  %v3694_v36 = vld [vmem:[#allocation2 + $0x10] sm:$0x1f] }
 0x166   : > { %1234 = vst [vmem:[#allocation2 + $0x58] sm:$0x1f] %v1233_v20  ;;  %v767_v19 = vmul.f32 %v10731_v24, %v729_v2  ;;  %v9555_v28 = vld [vmem:[#allocation2 + $0x10] ss:$8 sps:$4 sm:$0xff]   ;;  %v768_v46 = vmul.f32 %v10731_v24, %v730_v4  ;;  %v765_v21 = vmul.f32 %v10731_v24, %v727_v16  ;;  %v10831_v29 = vmul.f32 %v10731_v24, %v731_v18  ;;  %v3693_v47 = vld [vmem:[#allocation2 + $0x8] sm:$0x1f] }
 0x167   : > { %v10834_v30 = vmul.f32 %v10731_v24, %v732_v34  ;;  %8764 = vmatprep.mubr.bf16.mxu1 %v9554_v1  ;;  %v9558_v23 = vld [vmem:[#allocation2 + $0x20] ss:$8 sps:$4 sm:$0xff]   ;;  %v10837_v25 = vadd.f32 %v10741_v48, %v766_v27  ;;  %v10843_v35 = vmul.f32 %v10731_v24, %v733_v10  ;;  %v10846_v52 = vmul.f32 %v10731_v24, %v734_v42  ;;  %v3695_v56 = vld [vmem:[#allocation2 + $0x18] sm:$0x1f] }
 0x168   : > { %v10840_v31 = vadd.f32 %v10741_v48, %v767_v19  ;;  %8765 = vmatmul.mubr.bf16.vlgmr.msra.gmra.mrb[0].mxu1 %v9555_v28  ;;  %v7973_v53 = vcombine.low %v3693_v47, %v3693_v47  ;;  %v7974_v54 = vcombine.high %v3693_v47, %v3693_v47  ;;  %v10849_v58 = vadd.f32 %v10741_v48, %v768_v46  ;;  %v3696_v41 = vld [vmem:[#allocation2 + $0x20] sm:$0x1f]  ;;  %v9599_v7 = vld [vmem:[%s10331_s27 + $0x58] sm:$0xff]  }
 0x169   : > { %v10852_v37 = vadd.f32 %v10741_v48, %v765_v21  ;;  %8768 = vmatprep.mubr.bf16.mxu1 %v9558_v23  ;;  %8797 = vmatpush3.bf16.msra.mxu1 %v10726_v39  ;;  %v7975_v38 = vcombine.low %v3694_v36, %v3694_v36  ;;  %v7976_v55 = vcombine.high %v3694_v36, %v3694_v36  ;;  %v1012_v47 = vshrl.u32 %v10806_v8, 16  ;;  %v3697_v36 = vld [vmem:[#allocation2 + $0x28] sm:$0x1f] }
 0x16a   : > { %v7977_v43 = vcombine.low %v3695_v56, %v3695_v56  ;;  %v3886_v57 = vshrl.u32 %v7973_v53, 16  ;;  %v3889_v45 = vshll.u32 %v7973_v53, 16  ;;  %v3895_v13 = vshll.u32 %v7974_v54, 16  ;;  %8798 = vmatprep.subr.bf16.mxu1 %v9573_v12  ;;  %v9559_v62 = vld [vmem:[#allocation2 + $0x30] ss:$8 sps:$4 sm:$0xff]  }
 0x16b   : > { %v7978_v59 = vcombine.high %v3695_v56, %v3695_v56  ;;  %v3900_v61 = vshrl.u32 %v7975_v38, 16  ;;  %v3903_v0 = vshll.u32 %v7975_v38, 16  ;;  %v3909_v3 = vshll.u32 %v7976_v55, 16  ;;  %v3698_v55 = vld [vmem:[#allocation2 + $0x30] sm:$0x1f] }
 0x16c   : > { %v7979_v63 = vcombine.low %v3696_v41, %v3696_v41  ;;  %v3888_v32 = vrot.slane %v3886_v57, 4  ;;  %v3891_v5 = vrot.slane %v3889_v45, 5  ;;  %v3897_v39 = vrot.slane %v3895_v13, 5 }
 0x16d   : > { %v7980_v9 = vcombine.high %v3696_v41, %v3696_v41  ;;  %v3902_v2 = vrot.slane %v3900_v61, 4  ;;  %v3905_v11 = vrot.slane %v3903_v0, 5  ;;  %v3911_v49 = vrot.slane %v3909_v3, 5  ;;  %v9571_v33 = vld [vmem:[#allocation2 + $0x50] ss:$8 sps:$4 sm:$0xff]   ;;  %8799 = vmatpush3.bf16.msra.mxu1 %v9573_v12 }
 0x16e   : > { %v3914_v14 = vshrl.u32 %v7977_v43, 16  ;;  %v3892_v4 = vor.u32 %v3891_v5, %v3888_v32  ;;  %v3917_v16 = vshll.u32 %v7977_v43, 16  ;;  %v3923_v18 = vshll.u32 %v7978_v59, 16  ;;  %8800 = vmatprep.subr.bf16.mxu1 %v9586_v60  ;;  %v9612_v41 = vld [vmem:[%s10331_s27 + $0x60] sm:$0xff]   ;;  %v1235_v61 = vld [vmem:[#allocation2 + $0x60] sm:$0x1f] }
 0x16f   : > { %v3928_v6 = vshrl.u32 %v7979_v63, 16  ;;  %v3906_v10 = vor.u32 %v3905_v11, %v3902_v2  ;;  %v3931_v42 = vshll.u32 %v7979_v63, 16  ;;  %v3937_v1 = vshll.u32 %v7980_v9, 16  ;;  %v1238_v63 = vld [vmem:[#allocation2 + $0x68] sm:$0x1f] }
 0x170   : > { %v3916_v20 = vrot.slane %v3914_v14, 4  ;;  %8769 = vmatmul.mubr.bf16.gmra.mrb[4].mxu1 %v9559_v62  ;;  %v3893_v27 = vrot.slane %v3892_v4, 4  ;;  %v3919_v19 = vrot.slane %v3917_v16, 5  ;;  %v3925_v12 = vrot.slane %v3923_v18, 5  ;;  %v3699_v11 = vld [vmem:[#allocation2 + $0x38] sm:$0x1f] }
 0x171   : > { %v3930_v28 = vrot.slane %v3928_v6, 4  ;;  %v3907_v46 = vrot.slane %v3906_v10, 4  ;;  %v3933_v21 = vrot.slane %v3931_v42, 5  ;;  %v3939_v23 = vrot.slane %v3937_v1, 5  ;;  %8772 = vmatprep.mubr.bf16.mxu1 %v9571_v33  ;;  %8801 = vmatpush3.bf16.msra.mxu1 %v9586_v60  ;;  %v9570_v6 = vld [vmem:[%s10331_s27 + $0x148] sm:$0xff]  }
 0x172   : > { %v3898_v53 = vsel %vm10859_vm11, %v3893_v27, %v3897_v39  ;;  %v3920_v54 = vor.u32 %v3919_v19, %v3916_v20  ;;  %v1015_v56 = vshll.u32 %v10806_v8, 16  ;;  %v1019_v38 = vshrl.u32 %v10814_v22, 16  ;;  %8802 = vmatprep.subr.bf16.mxu1 %v9599_v7 }
 0x173   : > { %v3912_v43 = vsel %vm10859_vm11, %v3907_v46, %v3911_v49  ;;  %v3934_v57 = vor.u32 %v3933_v21, %v3930_v28  ;;  %v1014_v45 = vrot.slane %v1012_v47, 7  ;;  %v1022_v13 = vshll.u32 %v10814_v22, 16  ;;  %v9624_v49 = vld [vmem:[%s10331_s27 + $0x68] sm:$0xff]  }
 0x174   : > { %v8053_v59 = vcombine.low %v3898_v53, %v3912_v43  ;;  %v3921_v60 = vrot.slane %v3920_v54, 4  ;;  %v1021_v62 = vrot.slane %v1019_v38, 7  ;;  %v7981_v0 = vcombine.low %v3697_v36, %v3697_v36  ;;  %v9578_v54 = vld [vmem:[%s10331_s27 + $0x150] sm:$0xff]  }
 0x175   : > { %v3935_v3 = vrot.slane %v3934_v57, 4  ;;  %v1017_v8 = vor.u32 %v1015_v56, %v1014_v45  ;;  %v7982_v32 = vcombine.high %v3697_v36, %v3697_v36  ;;  %v7983_v5 = vcombine.low %v3698_v55, %v3698_v55  ;;  %8803 = vmatpush3.bf16.msra.mxu1 %v9599_v7 }
 0x176   : > { %8956 = vmatprep.mubr.bf16.mxu0 %v8053_v59  ;;  %v3926_v39 = vsel %vm10859_vm11, %v3921_v60, %v3925_v12  ;;  %v1024_v9 = vor.u32 %v1022_v13, %v1021_v62  ;;  %v7984_v2 = vcombine.high %v3698_v55, %v3698_v55  ;;  %v3942_v22 = vshrl.u32 %v7981_v0, 16  ;;  %8804 = vmatprep.subr.bf16.mxu1 %v9612_v41  ;;  %v1229_v55 = vld [vmem:[#allocation2 + $0x40] sm:$0x1f]  ;;  %v1241_v60 = vld [vmem:[#allocation2 + $0x70] sm:$0x1f] }
 0x177   : > { %v3940_v14 = vsel %vm10859_vm11, %v3935_v3, %v3939_v23  ;;  %v1236_v33 = vsel %vm10775_vm8, %v1017_v8, %v1235_v61  ;;  %v3945_v4 = vshll.u32 %v7981_v0, 16  ;;  %v3951_v16 = vshll.u32 %v7982_v32, 16  ;;  %v9636_v23 = vld [vmem:[%s10331_s27 + $0x70] sm:$0xff]   ;;  %v3701_v3 = vld [vmem:[#allocation2 + $0x58] sm:$0x1f]  ;;  %v9646_v8 = vld [vmem:[%s10331_s27 + $0x78] sm:$0xff]  }
 0x178   : > { %v8054_v18 = vcombine.low %v3926_v39, %v3940_v14  ;;  %1237 = vst [vmem:[#allocation2 + $0x60] sm:$0x1f] %v1236_v33  ;;  %v1239_v7 = vsel %vm10775_vm8, %v1024_v9, %v1238_v63  ;;  %v3944_v10 = vrot.slane %v3942_v22, 4  ;;  %v3956_v20 = vshrl.u32 %v7983_v5, 16  ;;  %v9583_v22 = vld [vmem:[%s10331_s27 + $0x158] sm:$0xff]  }
 0x179   : > { %1240 = vst [vmem:[#allocation2 + $0x68] sm:$0x1f] %v1239_v7  ;;  %v3947_v42 = vrot.slane %v3945_v4, 5  ;;  %v3953_v1 = vrot.slane %v3951_v16, 5  ;;  %v3959_v27 = vshll.u32 %v7983_v5, 16  ;;  %v3965_v19 = vshll.u32 %v7984_v2, 16  ;;  %8805 = vmatpush3.bf16.msra.mxu1 %v9612_v41 }
 0x17a   : > { %8957 = vmatmul.mubr.bf16.vlgmr.msra.gmra.mrb[0].mxu0 %v8054_v18  ;;  %v3958_v12 = vrot.slane %v3956_v20, 4  ;;  %v998_v28 = vshrl.u32 %v10817_v15, 16  ;;  %v1001_v46 = vshll.u32 %v10817_v15, 16  ;;  %v7985_v21 = vcombine.low %v3699_v11, %v3699_v11  ;;  %8806 = vmatprep.subr.bf16.mxu1 %v9624_v49  ;;  %v1244_v20 = vld [vmem:[#allocation2 + $0x78] sm:$0x1f] }
 0x17b   : > { %8989 = vmatpush3.bf16.msra.mxu0 %v10729_v40  ;;  %v3948_v47 = vor.u32 %v3947_v42, %v3944_v10  ;;  %v3961_v36 = vrot.slane %v3959_v27, 5  ;;  %v3967_v53 = vrot.slane %v3965_v19, 5  ;;  %v7986_v56 = vcombine.high %v3699_v11, %v3699_v11  ;;  %v9672_v42 = vld [vmem:[%s10331_s27 + $0x80] sm:$0xff]  }
 0x17c   : > { %8990 = vmatprep.subr.bf16.mxu0 %v9570_v6  ;;  %v1000_v38 = vrot.slane %v998_v28, 7  ;;  %v3970_v41 = vshrl.u32 %v7985_v21, 16  ;;  %v3973_v43 = vshll.u32 %v7985_v21, 16  ;;  %v1026_v57 = vshrl.u32 %v10822_v44, 16  ;;  %v9591_v21 = vld [vmem:[%s10331_s27 + $0x160] sm:$0xff]  }
 0x17d   : > { %v3949_v45 = vrot.slane %v3948_v47, 4  ;;  %v3962_v15 = vor.u32 %v3961_v36, %v3958_v12  ;;  %v3979_v13 = vshll.u32 %v7986_v56, 16  ;;  %v1029_v59 = vshll.u32 %v10822_v44, 16  ;;  %8807 = vmatpush3.bf16.msra.mxu1 %v9624_v49 }
 0x17e   : > { %v1003_v40 = vor.u32 %v1001_v46, %v1000_v38  ;;  %v3972_v62 = vrot.slane %v3970_v41, 4  ;;  %v3975_v61 = vrot.slane %v3973_v43, 5  ;;  %v1028_v0 = vrot.slane %v1026_v57, 7  ;;  %8808 = vmatprep.subr.bf16.mxu1 %v9636_v23  ;;  %v1247_v38 = vld [vmem:[#allocation2 + $0x80] sm:$0x1f] }
 0x17f   : > { %8991 = vmatpush3.bf16.msra.mxu0 %v9570_v6  ;;  %v3954_v63 = vsel %vm10859_vm11, %v3949_v45, %v3953_v1  ;;  %v3963_v32 = vrot.slane %v3962_v15, 4  ;;  %v3981_v5 = vrot.slane %v3979_v13, 5  ;;  %v1033_v39 = vshrl.u32 %v10824_v51, 16  ;;  %v3702_v18 = vld [vmem:[#allocation2 + $0x60] sm:$0x1f] }
 0x180   : > { %v9572_v9 = vld [vmem:[#allocation2 + $0x60] ss:$8 sps:$4 sm:$0xff]   ;;  %8992 = vmatprep.subr.bf16.mxu0 %v9578_v54  ;;  %v1230_v44 = vsel %vm10775_vm8, %v1003_v40, %v1229_v55  ;;  %v3976_v2 = vor.u32 %v3975_v61, %v3972_v62  ;;  %v1031_v11 = vor.u32 %v1029_v59, %v1028_v0  ;;  %v1036_v49 = vshll.u32 %v10824_v51, 16  ;;  %v9596_v0 = vld [vmem:[%s10331_s27 + $0x168] sm:$0xff]  }
 0x181   : > { %v3968_v14 = vsel %vm10859_vm11, %v3963_v32, %v3967_v53  ;;  %1231 = vst [vmem:[#allocation2 + $0x40] sm:$0x1f] %v1230_v44  ;;  %v1035_v33 = vrot.slane %v1033_v39, 7  ;;  %v833_v4 = vmax.f32 %v10810_v50, 0.0  ;;  %v834_v16 = vmax.f32 %v10820_v17, 0.0  ;;  %8809 = vmatpush3.bf16.msra.mxu1 %v9636_v23 }
 0x182   : > { %8773 = vmatmul.mubr.bf16.gmra.mrb[8].mxu1 %v9572_v9  ;;  %v8055_v6 = vcombine.low %v3954_v63, %v3968_v14  ;;  %v3977_v7 = vrot.slane %v3976_v2, 4  ;;  %v1242_v10 = vsel %vm10775_vm8, %v1031_v11, %v1241_v60  ;;  %v7989_v51 = vcombine.low %v3701_v3, %v3701_v3  ;;  %8810 = vmatprep.subr.bf16.mxu1 %v9646_v8 }
 0x183   : > { %8993 = vmatpush3.bf16.msra.mxu0 %v9578_v54  ;;  %v1038_v1 = vor.u32 %v1036_v49, %v1035_v33  ;;  %1243 = vst [vmem:[#allocation2 + $0x70] sm:$0x1f] %v1242_v10  ;;  %v8513_v27 = vpack.c.bf16 %v833_v4, %v833_v4  ;;  %v8514_v50 = vpack.c.bf16 %v834_v16, %v834_v16  ;;  %v3703_v54 = vld [vmem:[#allocation2 + $0x68] sm:$0x1f] }
 0x184   : > { %v7990_v19 = vcombine.high %v3701_v3, %v3701_v3  ;;  %8960 = vmatprep.mubr.bf16.mxu0 %v8055_v6  ;;  %v10906_v17 = vsel %vm10859_vm11, %v3977_v7, %v3981_v5  ;;  %8994 = vmatprep.subr.bf16.mxu0 %v9583_v22  ;;  %v7991_v12 = vcombine.low %v3702_v18, %v3702_v18  ;;  %v3998_v46 = vshrl.u32 %v7989_v51, 16  ;;  %v1250_v5 = vld [vmem:[#allocation2 + $0x88] sm:$0x1f]  ;;  %v9604_v7 = vld [vmem:[%s10331_s27 + $0x170] sm:$0xff]  }
 0x185   : > { %v7992_v28 = vcombine.high %v3702_v18, %v3702_v18  ;;  %v1245_v23 = vsel %vm10775_vm8, %v1038_v1, %v1244_v20  ;;  %v1040_v47 = vshrl.u32 %v8513_v27, 16  ;;  %v1043_v36 = vshll.u32 %v8513_v27, 16  ;;  %8811 = vmatpush3.bf16.msra.mxu1 %v9646_v8 }
 0x186   : > { %v1047_v53 = vshrl.u32 %v8514_v50, 16  ;;  %1246 = vst [vmem:[#allocation2 + $0x78] sm:$0x1f] %v1245_v23  ;;  %v1050_v56 = vshll.u32 %v8514_v50, 16  ;;  %v4000_v55 = vrot.slane %v3998_v46, 4  ;;  %v4001_v41 = vshll.u32 %v7989_v51, 16  ;;  %8844 = vmatprep.subr.bf16.mxu1 %v9672_v42 }
 0x187   : > { %v4007_v43 = vshll.u32 %v7990_v19, 16  ;;  %8995 = vmatpush3.bf16.msra.mxu0 %v9583_v22  ;;  %v1042_v57 = vrot.slane %v1040_v47, 7  ;;  %v4012_v15 = vshrl.u32 %v7991_v12, 16  ;;  %v4015_v13 = vshll.u32 %v7991_v12, 16 }
 0x188   : > { %v1049_v45 = vrot.slane %v1047_v53, 7  ;;  %v3700_v59 = vld [vmem:[#allocation2 + $0x40] sm:$0x1f]  ;;  %v4003_v60 = vrot.slane %v4001_v41, 5  ;;  %v4021_v62 = vshll.u32 %v7992_v28, 16  ;;  %8996 = vmatprep.subr.bf16.mxu0 %v9591_v21  ;;  %v7993_v61 = vcombine.low %v3703_v54, %v3703_v54 }
 0x189   : > { %v4009_v40 = vrot.slane %v4007_v43, 5  ;;  %v7987_v3 = vcombine.low %v3700_v59, %v3700_v59  ;;  %v7988_v8 = vcombine.high %v3700_v59, %v3700_v59  ;;  %v1045_v63 = vor.u32 %v1043_v36, %v1042_v57 }
 0x18a   : > { %v1052_v32 = vor.u32 %v1050_v56, %v1049_v45  ;;  %v4004_v39 = vor.u32 %v4003_v60, %v4000_v55  ;;  %v4014_v9 = vrot.slane %v4012_v15, 4  ;;  %v4017_v44 = vrot.slane %v4015_v13, 5  ;;  %v3704_v33 = vld [vmem:[#allocation2 + $0x70] sm:$0x1f]  ;;  %v9609_v56 = vld [vmem:[%s10331_s27 + $0x178] sm:$0xff]  }
 0x18b   : > { %v4023_v2 = vrot.slane %v4021_v62, 5  ;;  %v3984_v22 = vshrl.u32 %v7987_v3, 16  ;;  %v3987_v11 = vshll.u32 %v7987_v3, 16  ;;  %v3993_v49 = vshll.u32 %v7988_v8, 16  ;;  %8997 = vmatpush3.bf16.msra.mxu0 %v9591_v21 }
 0x18c   : > { %v1248_v14 = vsel %vm10775_vm8, %v1045_v63, %v1247_v38  ;;  %v1251_v4 = vsel %vm10775_vm8, %v1052_v32, %v1250_v5  ;;  %v4005_v16 = vrot.slane %v4004_v39, 4  ;;  %v4018_v18 = vor.u32 %v4017_v44, %v4014_v9  ;;  %8998 = vmatprep.subr.bf16.mxu0 %v9596_v0  ;;  %v10929_v39 = vld [vmem:[%s10331_s27 + $0x180] sm:$0xff]  }
 0x18d   : > { %1249 = vst [vmem:[#allocation2 + $0x80] sm:$0x1f] %v1248_v14  ;;  %v7994_v6 = vcombine.high %v3703_v54, %v3703_v54  ;;  %v3986_v10 = vrot.slane %v3984_v22, 4  ;;  %v3989_v20 = vrot.slane %v3987_v11, 5  ;;  %v3995_v51 = vrot.slane %v3993_v49, 5 }
 0x18e   : > { %1252 = vst [vmem:[#allocation2 + $0x88] sm:$0x1f] %v1251_v4  ;;  %v7995_v42 = vcombine.low %v3704_v33, %v3704_v33  ;;  %v9584_v1 = vld [vmem:[#allocation2 + $0x70] ss:$8 sps:$4 sm:$0xff]   ;;  %v4010_v27 = vsel %vm10859_vm11, %v4005_v16, %v4009_v40  ;;  %v4019_v50 = vrot.slane %v4018_v18, 4  ;;  %v7996_v19 = vcombine.high %v3704_v33, %v3704_v33 }
 0x18f   : > { %v4026_v12 = vshrl.u32 %v7993_v61, 16  ;;  %v3990_v28 = vor.u32 %v3989_v20, %v3986_v10  ;;  %v4029_v46 = vshll.u32 %v7993_v61, 16  ;;  %v4035_v21 = vshll.u32 %v7994_v6, 16  ;;  %8999 = vmatpush3.bf16.msra.mxu0 %v9596_v0  ;;  %8776 = vmatprep.mubr.bf16.mxu1 %v9584_v1  ;;  %v3705_v57 = vld [vmem:[#allocation2 + $0x78] sm:$0x1f] }
 0x190   : > { %v4040_v23 = vshrl.u32 %v7995_v42, 16  ;;  %v4024_v47 = vsel %vm10859_vm11, %v4019_v50, %v4023_v2  ;;  %v4043_v53 = vshll.u32 %v7995_v42, 16  ;;  %v4049_v54 = vshll.u32 %v7996_v19, 16  ;;  %9000 = vmatprep.subr.bf16.mxu0 %v9604_v7  ;;  %v1256_v49 = vld [vmem:[#allocation2 + $0xa8] sm:$0x1f] }
 0x191   : > { %v4028_v36 = vrot.slane %v4026_v12, 4  ;;  %v3991_v38 = vrot.slane %v3990_v28, 4  ;;  %v8057_v55 = vcombine.low %v4010_v27, %v4024_v47  ;;  %v4031_v41 = vrot.slane %v4029_v46, 5  ;;  %v1262_v50 = vld [vmem:[#allocation2 + $0xb8] sm:$0x1f] }
 0x192   : > { %v4037_v43 = vrot.slane %v4035_v21, 5  ;;  %v4042_v45 = vrot.slane %v4040_v23, 4  ;;  %v4045_v15 = vrot.slane %v4043_v53, 5  ;;  %v4051_v13 = vrot.slane %v4049_v54, 5 }
 0x193   : > { %v836_v59 = vmax.f32 %v10837_v25, 0.0  ;;  %v3996_v60 = vsel %vm10859_vm11, %v3991_v38, %v3995_v51  ;;  %v4032_v40 = vor.u32 %v4031_v41, %v4028_v36  ;;  %v837_v62 = vmax.f32 %v10840_v31, 0.0  ;;  %9001 = vmatpush3.bf16.msra.mxu0 %v9604_v7  ;;  %v1259_v7 = vld [vmem:[#allocation2 + $0xb0] sm:$0x1f] }
 0x194   : > { %v838_v61 = vmax.f32 %v10849_v58, 0.0  ;;  %v3706_v0 = vld [vmem:[#allocation2 + $0x80] sm:$0x1f]  ;;  %v8056_v3 = vcombine.low %v10906_v17, %v3996_v60  ;;  %v4046_v63 = vor.u32 %v4045_v15, %v4042_v45  ;;  %v7997_v5 = vcombine.low %v3705_v57, %v3705_v57  ;;  %9002 = vmatprep.subr.bf16.mxu0 %v9609_v56 }
 0x195   : > { %v9585_v8 = vld [vmem:[#allocation2 + $0x80] ss:$8 sps:$4 sm:$0xff]   ;;  %v8516_v32 = vpack.c.bf16 %v836_v59, %v836_v59  ;;  %v4033_v25 = vrot.slane %v4032_v40, 4  ;;  %v8517_v9 = vpack.c.bf16 %v837_v62, %v837_v62  ;;  %v7998_v2 = vcombine.high %v3705_v57, %v3705_v57 }
 0x196   : > { %v8518_v44 = vpack.c.bf16 %v838_v61, %v838_v61  ;;  %8961 = vmatmul.mubr.bf16.gmra.mrb[4].mxu0 %v8056_v3  ;;  %8777 = vmatmul.mubr.bf16.gmra.mrb[12].mxu1 %v9585_v8  ;;  %v4047_v31 = vrot.slane %v4046_v63, 4  ;;  %v7999_v11 = vcombine.low %v3706_v0, %v3706_v0  ;;  %v8000_v10 = vcombine.high %v3706_v0, %v3706_v0  ;;  %v3707_v36 = vld [vmem:[#allocation2 + $0x88] sm:$0x1f] }
 0x197   : > { %v1061_v22 = vshrl.u32 %v8516_v32, 16  ;;  %v1064_v58 = vshll.u32 %v8516_v32, 16  ;;  %8964 = vmatprep.mubr.bf16.mxu0 %v8057_v55  ;;  %v4038_v17 = vsel %vm10859_vm11, %v4033_v25, %v4037_v43  ;;  %v1068_v14 = vshrl.u32 %v8517_v9, 16  ;;  %9003 = vmatpush3.bf16.msra.mxu0 %v9609_v56  ;;  %v4655_v32 = vld [vmem:[#allocation2 + $0x8] sm:$0x1e] }
 0x198   : > { %v1071_v33 = vshll.u32 %v8517_v9, 16  ;;  %v1075_v4 = vshrl.u32 %v8518_v44, 16  ;;  %v4052_v16 = vsel %vm10859_vm11, %v4047_v31, %v4051_v13  ;;  %v1078_v6 = vshll.u32 %v8518_v44, 16  ;;  %9036 = vmatprep.subr.bf16.mxu0 %v10929_v39 }
 0x199   : > { %v1063_v18 = vrot.slane %v1061_v22, 7  ;;  %v8058_v20 = vcombine.low %v4038_v17, %v4052_v16  ;;  %v1070_v51 = vrot.slane %v1068_v14, 7  ;;  %v4054_v1 = vshrl.u32 %v7997_v5, 16 }
 0x19a   : > { %v1077_v42 = vrot.slane %v1075_v4, 7  ;;  %v4057_v19 = vshll.u32 %v7997_v5, 16  ;;  %v4063_v12 = vshll.u32 %v7998_v2, 16  ;;  %v4068_v28 = vshrl.u32 %v7999_v11, 16 }
 0x19b   : > { %v1066_v27 = vor.u32 %v1064_v58, %v1063_v18  ;;  %v1073_v46 = vor.u32 %v1071_v33, %v1070_v51  ;;  %v4056_v23 = vrot.slane %v4054_v1, 4  ;;  %v4071_v47 = vshll.u32 %v7999_v11, 16  ;;  %v1253_v58 = vld [vmem:[#allocation2 + $0x90] sm:$0x1f] }
 0x19c   : > { %v1080_v21 = vor.u32 %v1078_v6, %v1077_v42  ;;  %v4059_v54 = vrot.slane %v4057_v19, 5  ;;  %v4065_v56 = vrot.slane %v4063_v12, 5  ;;  %v4070_v38 = vrot.slane %v4068_v28, 4 }
 0x19d   : > { %v1257_v53 = vsel %vm10775_vm8, %v1066_v27, %v1256_v49  ;;  %v1260_v55 = vsel %vm10775_vm8, %v1073_v46, %v1259_v7  ;;  %v4073_v43 = vrot.slane %v4071_v47, 5  ;;  %v4077_v57 = vshll.u32 %v8000_v10, 16  ;;  %v4656_v49 = vld [vmem:[#allocation2 + $0x10] sm:$0x1e]  ;;  %v1265_v47 = vld [vmem:[#allocation2 + $0xc0] sm:$0x1f] }
 0x19e   : > { %1258 = vst [vmem:[#allocation2 + $0xa8] sm:$0x1f] %v1257_v53  ;;  %v1263_v41 = vsel %vm10775_vm8, %v1080_v21, %v1262_v50  ;;  %8965 = vmatmul.mubr.bf16.gmra.mrb[8].mxu0 %v8058_v20  ;;  %1261 = vst [vmem:[#allocation2 + $0xb0] sm:$0x1f] %v1260_v55  ;;  %v4060_v45 = vor.u32 %v4059_v54, %v4056_v23  ;;  %v835_v15 = vmax.f32 %v10852_v37, 0.0 }
 0x19f   : > { %1264 = vst [vmem:[#allocation2 + $0xb8] sm:$0x1f] %v1263_v41  ;;  %v8001_v13 = vcombine.low %v3707_v36, %v3707_v36  ;;  %v8002_v59 = vcombine.high %v3707_v36, %v3707_v36  ;;  %v4074_v60 = vor.u32 %v4073_v43, %v4070_v38  ;;  %v4079_v40 = vrot.slane %v4077_v57, 5  ;;  %v1268_v54 = vld [vmem:[#allocation2 + $0xc8] sm:$0x1f]  ;;  %v736_v43 = vld [vmem:[#allocation11 + $0xc0] sm:$0xff] }
 0x1a0   : > { %v807_v62 = vadd.f32 %v10741_v48, %v10831_v29  ;;  %v808_v61 = vadd.f32 %v10741_v48, %v10834_v30  ;;  %v4061_v0 = vrot.slane %v4060_v45, 4  ;;  %v8515_v3 = vpack.c.bf16 %v835_v15, %v835_v15  ;;  %v4657_v41 = vld [vmem:[#allocation2 + $0x18] sm:$0x1e] }
 0x1a1   : > { %v4082_v8 = vshrl.u32 %v8001_v13, 16  ;;  %v4085_v63 = vshll.u32 %v8001_v13, 16  ;;  %v4075_v5 = vrot.slane %v4074_v60, 4  ;;  %v4091_v25 = vshll.u32 %v8002_v59, 16  ;;  %v4658_v59 = vld [vmem:[#allocation2 + $0x20] sm:$0x1e] }
 0x1a2   : > { %v839_v9 = vmax.f32 %v807_v62, 0.0  ;;  %v840_v44 = vmax.f32 %v808_v61, 0.0  ;;  %v4066_v37 = vsel %vm10859_vm11, %v4061_v0, %v4065_v56  ;;  %v1054_v2 = vshrl.u32 %v8515_v3, 16 }
 0x1a3   : > { %v1057_v31 = vshll.u32 %v8515_v3, 16  ;;  %v4084_v22 = vrot.slane %v4082_v8, 4  ;;  %v4080_v29 = vsel %vm10859_vm11, %v4075_v5, %v4079_v40  ;;  %v4087_v30 = vrot.slane %v4085_v63, 5  ;;  %v1271_v8 = vld [vmem:[#allocation2 + $0xd0] sm:$0x1f] }
 0x1a4   : > { %v4093_v11 = vrot.slane %v4091_v25, 5  ;;  %v8519_v17 = vpack.c.bf16 %v839_v9, %v839_v9  ;;  %v8059_v33 = vcombine.low %v4066_v37, %v4080_v29  ;;  %v1056_v4 = vrot.slane %v1054_v2, 7  ;;  %v1274_v37 = vld [vmem:[#allocation2 + $0xd8] sm:$0x1f] }
 0x1a5   : > { %v9597_v14 = vld [vmem:[#allocation2 + $0xa0] ss:$8 sps:$4 sm:$0xff]   ;;  %v8520_v16 = vpack.c.bf16 %v840_v44, %v840_v44  ;;  %v809_v18 = vadd.f32 %v10741_v48, %v10843_v35  ;;  %v4088_v7 = vor.u32 %v4087_v30, %v4084_v22  ;;  %v810_v10 = vadd.f32 %v10741_v48, %v10846_v52 }
 0x1a6   : > { %v9598_v6 = vld [vmem:[#allocation2 + $0xb0] ss:$8 sps:$4 sm:$0xff]   ;;  %v8077_v20 = vcombine.low %v4655_v32, %v4655_v32  ;;  %v8078_v51 = vcombine.high %v4655_v32, %v4655_v32  ;;  %8780 = vmatprep.mubr.bf16.mxu1 %v9597_v14  ;;  %8968 = vmatprep.mubr.bf16.mxu0 %v8059_v33  ;;  %v1059_v42 = vor.u32 %v1057_v31, %v1056_v4  ;;  %v1082_v1 = vshrl.u32 %v8519_v17, 16  ;;  %v4659_v14 = vld [vmem:[#allocation2 + $0x28] sm:$0x1e] }
 0x1a7   : > { %v1085_v27 = vshll.u32 %v8519_v17, 16  ;;  %v1089_v50 = vshrl.u32 %v8520_v16, 16  ;;  %8781 = vmatmul.mubr.bf16.gmra.mrb[16].mxu1 %v9598_v6  ;;  %v4089_v19 = vrot.slane %v4088_v7, 4  ;;  %v1092_v12 = vshll.u32 %v8520_v16, 16  ;;  %v738_v7 = vld [vmem:[#allocation11 + $0xd0] sm:$0xff] }
 0x1a8   : > { %v841_v28 = vmax.f32 %v809_v18, 0.0  ;;  %v842_v46 = vmax.f32 %v810_v10, 0.0  ;;  %v1254_v35 = vsel %vm10775_vm8, %v1059_v42, %v1253_v58  ;;  %v1084_v21 = vrot.slane %v1082_v1, 7  ;;  %v4660_v1 = vld [vmem:[#allocation2 + $0x30] sm:$0x1e] }
 0x1a9   : > { %v1091_v23 = vrot.slane %v1089_v50, 7  ;;  %v8079_v36 = vcombine.low %v4656_v49, %v4656_v49  ;;  %1255 = vst [vmem:[#allocation2 + $0x90] sm:$0x1f] %v1254_v35  ;;  %v10965_v53 = vsel %vm10859_vm11, %v4089_v19, %v4093_v11  ;;  %v8080_v55 = vcombine.high %v4656_v49, %v4656_v49  ;;  %v737_v49 = vld [vmem:[#allocation11 + $0xc8] sm:$0xff] }
 0x1aa   : > { %v8521_v56 = vpack.c.bf16 %v841_v28, %v841_v28  ;;  %v8522_v38 = vpack.c.bf16 %v842_v46, %v842_v46  ;;  %v1087_v57 = vor.u32 %v1085_v27, %v1084_v21  ;;  %v8141_v15 = vrot.slane %v8077_v20, 9 }
 0x1ab   : > { %v1094_v45 = vor.u32 %v1092_v12, %v1091_v23  ;;  %v4849_v13 = vrot.slane %v8078_v51, 5  ;;  %v8142_v32 = vrot.slane %v8079_v36, 9  ;;  %v4853_v9 = vrot.slane %v8080_v55, 5 }
 0x1ac   : > { %v1096_v60 = vshrl.u32 %v8521_v56, 16  ;;  %v1099_v40 = vshll.u32 %v8521_v56, 16  ;;  %v1103_v62 = vshrl.u32 %v8522_v38, 16  ;;  %v1106_v61 = vshll.u32 %v8522_v38, 16 }
 0x1ad   : > { %v1266_v0 = vsel %vm10775_vm8, %v1087_v57, %v1265_v47  ;;  %v1269_v3 = vsel %vm10775_vm8, %v1094_v45, %v1268_v54  ;;  %v4850_v63 = vsel %vm10959_vm14, %v8141_v15, %v4849_v13  ;;  %v8081_v44 = vcombine.low %v4657_v41, %v4657_v41 }
 0x1ae   : > { %1267 = vst [vmem:[#allocation2 + $0xc0] sm:$0x1f] %v1266_v0  ;;  %1270 = vst [vmem:[#allocation2 + $0xc8] sm:$0x1f] %v1269_v3  ;;  %v1098_v5 = vrot.slane %v1096_v60, 7  ;;  %v1105_v25 = vrot.slane %v1103_v62, 7  ;;  %v8082_v2 = vcombine.high %v4657_v41, %v4657_v41  ;;  %v8083_v31 = vcombine.low %v4658_v59, %v4658_v59 }
 0x1af   : > { %v8084_v22 = vcombine.high %v4658_v59, %v4658_v59  ;;  %v774_v29 = vmul.f32 %v10731_v24, %v736_v43  ;;  %v4854_v11 = vsel %vm10959_vm14, %v8142_v32, %v4853_v9  ;;  %v8143_v17 = vrot.slane %v8081_v44, 9  ;;  %v4661_v59 = vld [vmem:[#allocation2 + $0x38] sm:$0x1e]  ;;  %v4662_v32 = vld [vmem:[#allocation2 + $0x40] sm:$0x1e] }
 0x1b0   : > { %v1101_v58 = vor.u32 %v1099_v40, %v1098_v5  ;;  %v1108_v30 = vor.u32 %v1106_v61, %v1105_v25  ;;  %v3708_v33 = vld [vmem:[#allocation2 + $0x90] sm:$0x1f]  ;;  %v10976_v4 = vcombine.low %v4850_v63, %v4854_v11  ;;  %v4857_v16 = vrot.slane %v8082_v2, 5  ;;  %v1280_v11 = vld [vmem:[#allocation2 + $0xf8] sm:$0x1f] }
 0x1b1   : > { %v8144_v18 = vrot.slane %v8083_v31, 9  ;;  %v4861_v6 = vrot.slane %v8084_v22, 5  ;;  %v8003_v10 = vcombine.low %v3708_v33, %v3708_v33  ;;  %v8004_v20 = vcombine.high %v3708_v33, %v3708_v33 }
 0x1b2   : > { %v1272_v51 = vsel %vm10775_vm8, %v1101_v58, %v1271_v8  ;;  %v1275_v42 = vsel %vm10775_vm8, %v1108_v30, %v1274_v37  ;;  %v4858_v27 = vsel %vm10959_vm14, %v8143_v17, %v4857_v16  ;;  %v812_v19 = vadd.f32 %v10741_v48, %v774_v29  ;;  %v1283_v17 = vld [vmem:[#allocation2 + $0x100] sm:$0x1f] }
 0x1b3   : > { %1273 = vst [vmem:[#allocation2 + $0xd0] sm:$0x1f] %v1272_v51  ;;  %1276 = vst [vmem:[#allocation2 + $0xd8] sm:$0x1f] %v1275_v42  ;;  %v4862_v50 = vsel %vm10959_vm14, %v8144_v18, %v4861_v6  ;;  %v775_v12 = vmul.f32 %v10731_v24, %v737_v49  ;;  %v4096_v28 = vshrl.u32 %v8003_v10, 16  ;;  %v4099_v46 = vshll.u32 %v8003_v10, 16 }
 0x1b4   : > { %v4105_v35 = vshll.u32 %v8004_v20, 16  ;;  %v10988_v21 = vcombine.low %v4858_v27, %v4862_v50  ;;  %v776_v47 = vmul.f32 %v10731_v24, %v738_v7  ;;  %v8085_v54 = vcombine.low %v4659_v14, %v4659_v14  ;;  %v739_v7 = vld [vmem:[#allocation11 + $0xd8] sm:$0xff]  ;;  %v740_v10 = vld [vmem:[#allocation11 + $0xe0] sm:$0xff]  ;;  %v741_v50 = vld [vmem:[#allocation11 + $0xe8] sm:$0xff] }
 0x1b5   : > { %v9610_v23 = vld [vmem:[#allocation2 + $0xc0] ss:$8 sps:$4 sm:$0xff]   ;;  %v813_v36 = vadd.f32 %v10741_v48, %v775_v12  ;;  %v8086_v56 = vcombine.high %v4659_v14, %v4659_v14  ;;  %v4098_v38 = vrot.slane %v4096_v28, 4  ;;  %v4101_v55 = vrot.slane %v4099_v46, 5 }
 0x1b6   : > { %v4107_v41 = vrot.slane %v4105_v35, 5  ;;  %v844_v43 = vmax.f32 %v812_v19, 0.0  ;;  %8784 = vmatprep.mubr.bf16.mxu1 %v9610_v23  ;;  %v814_v57 = vadd.f32 %v10741_v48, %v776_v47  ;;  %v8087_v15 = vcombine.low %v4660_v1, %v4660_v1  ;;  %v1286_v51 = vld [vmem:[#allocation2 + $0x108] sm:$0x1f]  ;;  %v4663_v19 = vld [vmem:[#allocation2 + $0x58] sm:$0x1e] }
 0x1b7   : > { %v845_v45 = vmax.f32 %v813_v36, 0.0  ;;  %v8088_v13 = vcombine.high %v4660_v1, %v4660_v1  ;;  %v4102_v60 = vor.u32 %v4101_v55, %v4098_v38  ;;  %v8145_v62 = vrot.slane %v8085_v54, 9  ;;  %v742_v23 = vld [vmem:[#allocation11 + $0xf0] sm:$0xff] }
 0x1b8   : > { %v8524_v40 = vpack.c.bf16 %v844_v43, %v844_v43  ;;  %v4865_v61 = vrot.slane %v8086_v56, 5  ;;  %v846_v0 = vmax.f32 %v814_v57, 0.0  ;;  %v8146_v8 = vrot.slane %v8087_v15, 9  ;;  %v4664_v15 = vld [vmem:[#allocation2 + $0x60] sm:$0x1e] }
 0x1b9   : > { %v8525_v3 = vpack.c.bf16 %v845_v45, %v845_v45  ;;  %v4869_v63 = vrot.slane %v8088_v13, 5  ;;  %v4103_v5 = vrot.slane %v4102_v60, 4  ;;  %v8089_v44 = vcombine.low %v4661_v59, %v4661_v59  ;;  %v11014_v13 = vld [vmem:[#allocation2 + $0x68] sm:$0x1e] }
 0x1ba   : > { %v1117_v25 = vshrl.u32 %v8524_v40, 16  ;;  %v4866_v9 = vsel %vm10959_vm14, %v8145_v62, %v4865_v61  ;;  %v9611_v37 = vld [vmem:[#allocation2 + $0xd0] ss:$8 sps:$4 sm:$0xff]   ;;  %v1120_v2 = vshll.u32 %v8524_v40, 16  ;;  %v8526_v31 = vpack.c.bf16 %v846_v0, %v846_v0 }
 0x1bb   : > { %v1124_v22 = vshrl.u32 %v8525_v3, 16  ;;  %v1127_v29 = vshll.u32 %v8525_v3, 16  ;;  %v4108_v58 = vsel %vm10859_vm11, %v4103_v5, %v4107_v41  ;;  %v4870_v49 = vsel %vm10959_vm14, %v8146_v8, %v4869_v63  ;;  %8785 = vmatmul.mubr.bf16.gmra.mrb[20].mxu1 %v9611_v37  ;;  %v9629_v61 = vld [vmem:[%s10331_s27 + $0x188] sm:$0xff]  }
 0x1bc   : > { %v1119_v30 = vrot.slane %v1117_v25, 7  ;;  %v8090_v14 = vcombine.high %v4661_v59, %v4661_v59  ;;  %v8060_v33 = vcombine.low %v10965_v53, %v4108_v58  ;;  %v1131_v18 = vshrl.u32 %v8526_v31, 16 }
 0x1bd   : > { %v1126_v16 = vrot.slane %v1124_v22, 7  ;;  %v1134_v6 = vshll.u32 %v8526_v31, 16  ;;  %v8191_v42 = vcombine.low %v4866_v9, %v4870_v49  ;;  %v8091_v1 = vcombine.low %v4662_v32, %v4662_v32 }
 0x1be   : > { %v1122_v20 = vor.u32 %v1120_v2, %v1119_v30  ;;  %v8092_v27 = vcombine.high %v4662_v32, %v4662_v32  ;;  %8969 = vmatmul.mubr.bf16.gmra.mrb[12].mxu0 %v8060_v33  ;;  %v1133_v28 = vrot.slane %v1131_v18, 7  ;;  %v8147_v46 = vrot.slane %v8089_v44, 9  ;;  %v9641_v30 = vld [vmem:[%s10331_s27 + $0x190] sm:$0xff]  }
 0x1bf   : > { %v1129_v12 = vor.u32 %v1127_v29, %v1126_v16  ;;  %v4873_v35 = vrot.slane %v8090_v14, 5  ;;  %9004 = vmatprep.mubr.bf16.mxu0 %v10976_v4  ;;  %v8148_v47 = vrot.slane %v8091_v1, 9  ;;  %v777_v54 = vmul.f32 %v10731_v24, %v739_v7  ;;  %v1289_v7 = vld [vmem:[#allocation2 + $0x110] sm:$0x1f] }
 0x1c0   : > { %v1281_v53 = vsel %vm10775_vm8, %v1122_v20, %v1280_v11  ;;  %v4877_v36 = vrot.slane %v8092_v27, 5  ;;  %v1136_v56 = vor.u32 %v1134_v6, %v1133_v28  ;;  %v778_v41 = vmul.f32 %v10731_v24, %v740_v10  ;;  %v4666_v20 = vld [vmem:[#allocation2 + $0x70] sm:$0x1e] }
 0x1c1   : > { %1282 = vst [vmem:[#allocation2 + $0xf8] sm:$0x1f] %v1281_v53  ;;  %v1284_v38 = vsel %vm10775_vm8, %v1129_v12, %v1283_v17  ;;  %v4874_v55 = vsel %vm10959_vm14, %v8147_v46, %v4873_v35  ;;  %v815_v43 = vadd.f32 %v10741_v48, %v777_v54  ;;  %v779_v57 = vmul.f32 %v10731_v24, %v741_v50  ;;  %v1697_v54 = vld [vmem:[#allocation2] sm:$0x1f] }
 0x1c2   : > { %1285 = vst [vmem:[#allocation2 + $0x100] sm:$0x1f] %v1284_v38  ;;  %v4878_v4 = vsel %vm10959_vm14, %v8148_v47, %v4877_v36  ;;  %v780_v45 = vmul.f32 %v10731_v24, %v742_v23  ;;  %v1287_v59 = vsel %vm10775_vm8, %v1136_v56, %v1286_v51  ;;  %v816_v40 = vadd.f32 %v10741_v48, %v778_v41  ;;  %v1295_v47 = vld [vmem:[#allocation2 + $0x120] sm:$0x1f]  ;;  %v1298_v38 = vld [vmem:[#allocation2 + $0x128] sm:$0x1f] }
 0x1c3   : > { %v11018_v60 = vcombine.low %v4874_v55, %v4878_v4  ;;  %v8093_v62 = vcombine.low %v4663_v19, %v4663_v19  ;;  %1288 = vst [vmem:[#allocation2 + $0x108] sm:$0x1f] %v1287_v59  ;;  %v847_v0 = vmax.f32 %v815_v43, 0.0  ;;  %v817_v3 = vadd.f32 %v10741_v48, %v779_v57  ;;  %v9659_v43 = vld [vmem:[%s10331_s27 + $0x198] sm:$0xff]  }
 0x1c4   : > { %v818_v8 = vadd.f32 %v10741_v48, %v780_v45  ;;  %v8094_v63 = vcombine.high %v4663_v19, %v4663_v19  ;;  %v848_v32 = vmax.f32 %v816_v40, 0.0  ;;  %v8095_v5 = vcombine.low %v4664_v15, %v4664_v15  ;;  %v1698_v59 = vld [vmem:[#allocation2 + $0x8] sm:$0x1f]  ;;  %v1699_v40 = vld [vmem:[#allocation2 + $0x10] sm:$0x1f] }
 0x1c5   : > { %v8096_v25 = vcombine.high %v4664_v15, %v4664_v15  ;;  %v8149_v9 = vrot.slane %v8093_v62, 9  ;;  %v8527_v44 = vpack.c.bf16 %v847_v0, %v847_v0  ;;  %v849_v37 = vmax.f32 %v817_v3, 0.0 }
 0x1c6   : > { %v850_v2 = vmax.f32 %v818_v8, 0.0  ;;  %v4881_v31 = vrot.slane %v8094_v63, 5  ;;  %9005 = vmatmul.mubr.bf16.vlgmr.msra.gmra.mrb[0].mxu0 %v10988_v21  ;;  %v8528_v22 = vpack.c.bf16 %v848_v32, %v848_v32  ;;  %v8150_v29 = vrot.slane %v8095_v5, 9  ;;  %v11043_v8 = vld [vmem:[#allocation2 + $0x18] sm:$0x1f] }
 0x1c7   : > { %v4885_v58 = vrot.slane %v8096_v25, 5  ;;  %v8097_v11 = vcombine.low %v11014_v13, %v11014_v13  ;;  %9037 = vmatpush3.bf16.msra.mxu0 %v10929_v39  ;;  %9008 = vmatprep.mubr.bf16.mxu0 %v8191_v42  ;;  %v1138_v49 = vshrl.u32 %v8527_v44, 16  ;;  %v1141_v14 = vshll.u32 %v8527_v44, 16  ;;  %v1292_v39 = vld [vmem:[#allocation2 + $0x118] sm:$0x1f] }
 0x1c8   : > { %v9622_v17 = vld [vmem:[#allocation2 + $0xf0] ss:$8 sps:$4 sm:$0xff]   ;;  %v8529_v33 = vpack.c.bf16 %v849_v37, %v849_v37  ;;  %v8530_v16 = vpack.c.bf16 %v850_v2, %v850_v2  ;;  %9038 = vmatprep.subr.bf16.mxu0 %v9629_v61  ;;  %v1145_v18 = vshrl.u32 %v8528_v22, 16  ;;  %v1148_v6 = vshll.u32 %v8528_v22, 16 }
 0x1c9   : > { %v4882_v21 = vsel %vm10959_vm14, %v8149_v9, %v4881_v31  ;;  %v4886_v10 = vsel %vm10959_vm14, %v8150_v29, %v4885_v58  ;;  %8788 = vmatprep.mubr.bf16.mxu1 %v9622_v17  ;;  %v1140_v51 = vrot.slane %v1138_v49, 7  ;;  %v8098_v46 = vcombine.high %v11014_v13, %v11014_v13  ;;  %v9677_v37 = vld [vmem:[%s10331_s27 + $0x1a0] sm:$0xff]  }
 0x1ca   : > { %v1152_v1 = vshrl.u32 %v8529_v33, 16  ;;  %v1155_v42 = vshll.u32 %v8529_v33, 16  ;;  %v1159_v27 = vshrl.u32 %v8530_v16, 16  ;;  %v9623_v50 = vld [vmem:[#allocation2 + $0x100] ss:$8 sps:$4 sm:$0xff]   ;;  %v1147_v19 = vrot.slane %v1145_v18, 7 }
 0x1cb   : > { %v1162_v12 = vshll.u32 %v8530_v16, 16  ;;  %v8193_v28 = vcombine.low %v4882_v21, %v4886_v10  ;;  %9039 = vmatpush3.bf16.msra.mxu0 %v9629_v61  ;;  %v1143_v35 = vor.u32 %v1141_v14, %v1140_v51  ;;  %v8099_v36 = vcombine.low %v4666_v20, %v4666_v20  ;;  %8789 = vmatmul.mubr.bf16.gmra.mrb[24].mxu1 %v9623_v50  ;;  %v4667_v18 = vld [vmem:[#allocation2 + $0x78] sm:$0x1e]  ;;  %v4669_v51 = vld [vmem:[#allocation2 + $0x88] sm:$0x1e] }
 0x1cc   : > { %v1154_v23 = vrot.slane %v1152_v1, 7  ;;  %v1161_v53 = vrot.slane %v1159_v27, 7  ;;  %v1150_v56 = vor.u32 %v1148_v6, %v1147_v19  ;;  %9040 = vmatprep.subr.bf16.mxu0 %v9641_v30  ;;  %v8100_v55 = vcombine.high %v4666_v20, %v4666_v20  ;;  %v4668_v6 = vld [vmem:[#allocation2 + $0x80] sm:$0x1e] }
 0x1cd   : > { %v8151_v41 = vrot.slane %v8097_v11, 9  ;;  %v4889_v4 = vrot.slane %v8098_v46, 5  ;;  %v1290_v57 = vsel %vm10775_vm8, %v1143_v35, %v1289_v7  ;;  %v8152_v13 = vrot.slane %v8099_v36, 9 }
 0x1ce   : > { %v1157_v45 = vor.u32 %v1155_v42, %v1154_v23  ;;  %v1164_v15 = vor.u32 %v1162_v12, %v1161_v53  ;;  %9009 = vmatmul.mubr.bf16.gmra.mrb[4].mxu0 %v11018_v60  ;;  %1291 = vst [vmem:[#allocation2 + $0x110] sm:$0x1f] %v1290_v57  ;;  %v1293_v62 = vsel %vm10775_vm8, %v1150_v56, %v1292_v39  ;;  %v4893_v0 = vrot.slane %v8100_v55, 5  ;;  %v9695_v39 = vld [vmem:[%s10331_s27 + $0x1a8] sm:$0xff]  }
 0x1cf   : > { %v4890_v61 = vsel %vm10959_vm14, %v8151_v41, %v4889_v4  ;;  %v7693_v3 = vcombine.low %v1697_v54, %v1697_v54  ;;  %1294 = vst [vmem:[#allocation2 + $0x118] sm:$0x1f] %v1293_v62  ;;  %9012 = vmatprep.mubr.bf16.mxu0 %v8193_v28  ;;  %9041 = vmatpush3.bf16.msra.mxu0 %v9641_v30  ;;  %v9713_v4 = vld [vmem:[%s10331_s27 + $0x1b0] sm:$0xff]  }
 0x1d0   : > { %v1296_v63 = vsel %vm10775_vm8, %v1157_v45, %v1295_v47  ;;  %v1299_v32 = vsel %vm10775_vm8, %v1164_v15, %v1298_v38  ;;  %v7694_v60 = vcombine.high %v1697_v54, %v1697_v54  ;;  %v4894_v5 = vsel %vm10959_vm14, %v8152_v13, %v4893_v0  ;;  %9042 = vmatprep.subr.bf16.mxu0 %v9659_v43 }
 0x1d1   : > { %1297 = vst [vmem:[#allocation2 + $0x120] sm:$0x1f] %v1296_v63  ;;  %1300 = vst [vmem:[#allocation2 + $0x128] sm:$0x1f] %v1299_v32  ;;  %v7695_v25 = vcombine.low %v1698_v59, %v1698_v59  ;;  %v7696_v9 = vcombine.high %v1698_v59, %v1698_v59  ;;  %v1893_v44 = vshrl.u32 %v7693_v3, 16  ;;  %v8194_v2 = vcombine.low %v4890_v61, %v4894_v5 }
 0x1d2   : > { %v1896_v31 = vshll.u32 %v7693_v3, 16  ;;  %v1902_v22 = vshll.u32 %v7694_v60, 16  ;;  %v7697_v29 = vcombine.low %v1699_v40, %v1699_v40  ;;  %v7698_v33 = vcombine.high %v1699_v40, %v1699_v40  ;;  %v4670_v61 = vld [vmem:[#allocation2 + $0x90] sm:$0x1e] }
 0x1d3   : > { %v1895_v58 = vrot.slane %v1893_v44, 4  ;;  %v1907_v11 = vshrl.u32 %v7695_v25, 16  ;;  %v1910_v17 = vshll.u32 %v7695_v25, 16  ;;  %v1916_v30 = vshll.u32 %v7696_v9, 16  ;;  %9043 = vmatpush3.bf16.msra.mxu0 %v9659_v43  ;;  %v9731_v9 = vld [vmem:[%s10331_s27 + $0x1b8] sm:$0xff]  }
 0x1d4   : > { %v1898_v49 = vrot.slane %v1896_v31, 5  ;;  %v1904_v14 = vrot.slane %v1902_v22, 5  ;;  %v7699_v16 = vcombine.low %v11043_v8, %v11043_v8  ;;  %v7700_v20 = vcombine.high %v11043_v8, %v11043_v8  ;;  %9044 = vmatprep.subr.bf16.mxu0 %v9677_v37  ;;  %v1701_v22 = vld [vmem:[#allocation2 + $0x20] sm:$0x1f] }
 0x1d5   : > { %v1909_v7 = vrot.slane %v1907_v11, 4  ;;  %v1912_v21 = vrot.slane %v1910_v17, 5  ;;  %v1918_v10 = vrot.slane %v1916_v30, 5  ;;  %v1921_v42 = vshrl.u32 %v7697_v29, 16  ;;  %v1702_v30 = vld [vmem:[#allocation2 + $0x28] sm:$0x1f] }
 0x1d6   : > { %v1899_v1 = vor.u32 %v1898_v49, %v1895_v58  ;;  %v1924_v27 = vshll.u32 %v7697_v29, 16  ;;  %v1930_v50 = vshll.u32 %v7698_v33, 16  ;;  %v9634_v19 = vld [vmem:[#allocation2 + $0x110] ss:$8 sps:$4 sm:$0xff]   ;;  %9013 = vmatmul.mubr.bf16.gmra.mrb[8].mxu0 %v8194_v2  ;;  %v1935_v28 = vshrl.u32 %v7699_v16, 16 }
 0x1d7   : > { %v1913_v12 = vor.u32 %v1912_v21, %v1909_v7  ;;  %v1938_v46 = vshll.u32 %v7699_v16, 16  ;;  %v8101_v35 = vcombine.low %v4667_v18, %v4667_v18  ;;  %v8102_v53 = vcombine.high %v4667_v18, %v4667_v18  ;;  %9045 = vmatpush3.bf16.msra.mxu0 %v9677_v37  ;;  %8792 = vmatprep.mubr.bf16.mxu1 %v9634_v19  ;;  %v1703_v49 = vld [vmem:[#allocation2 + $0x30] sm:$0x1f] }
 0x1d8   : > { %v9635_v23 = vld [vmem:[#allocation2 + $0x120] ss:$8 sps:$4 sm:$0xff]   ;;  %v8103_v47 = vcombine.low %v4668_v6, %v4668_v6  ;;  %v8104_v36 = vcombine.high %v4668_v6, %v4668_v6  ;;  %v8105_v54 = vcombine.low %v4669_v51, %v4669_v51  ;;  %v1900_v56 = vrot.slane %v1899_v1, 4  ;;  %9046 = vmatprep.subr.bf16.mxu0 %v9695_v39 }
 0x1d9   : > { %v1914_v38 = vrot.slane %v1913_v12, 4  ;;  %v1923_v55 = vrot.slane %v1921_v42, 4  ;;  %v1926_v41 = vrot.slane %v1924_v27, 5  ;;  %8793 = vmatmul.mubr.bf16.gmra.mrb[28].mxu1 %v9635_v23  ;;  %v1932_v43 = vrot.slane %v1930_v50, 5  ;;  %v9746_v50 = vld [vmem:[%s10331_s27 + $0x1c0] sm:$0xff]  }
 0x1da   : > { %v1937_v57 = vrot.slane %v1935_v28, 4  ;;  %v1940_v45 = vrot.slane %v1938_v46, 5  ;;  %v1944_v15 = vshll.u32 %v7700_v20, 16  ;;  %v1905_v13 = vsel %vm10859_vm11, %v1900_v56, %v1904_v14  ;;  %v1704_v20 = vld [vmem:[#allocation2 + $0x38] sm:$0x1f] }
 0x1db   : > { %v1919_v59 = vsel %vm10859_vm11, %v1914_v38, %v1918_v10  ;;  %v1927_v40 = vor.u32 %v1926_v41, %v1923_v55  ;;  %v8153_v62 = vrot.slane %v8101_v35, 9  ;;  %v4897_v63 = vrot.slane %v8102_v53, 5  ;;  %9047 = vmatpush3.bf16.msra.mxu0 %v9695_v39  ;;  %v9708_v41 = vld [vmem:[%s10331_s27 + $0x90] sm:$0xff]  }
 0x1dc   : > { %v7773_v0 = vcombine.low %v1905_v13, %v1919_v59  ;;  %v1941_v3 = vor.u32 %v1940_v45, %v1937_v57  ;;  %v1946_v8 = vrot.slane %v1944_v15, 5  ;;  %v8154_v60 = vrot.slane %v8103_v47, 9  ;;  %9048 = vmatprep.subr.bf16.mxu0 %v9713_v4 }
 0x1dd   : > { %v1928_v32 = vrot.slane %v1927_v40, 4  ;;  %v4901_v5 = vrot.slane %v8104_v36, 5  ;;  %v8106_v25 = vcombine.high %v4669_v51, %v4669_v51  ;;  %v4898_v37 = vsel %vm10959_vm14, %v8153_v62, %v4897_v63  ;;  %v9690_v51 = vld [vmem:[%s10331_s27 + $0x88] sm:$0xff]   ;;  %v10046_v36 = vld [vmem:[%s10331_s27 + $0x80] sm:$0xff]   ;;  %v4671_v62 = vld [vmem:[#allocation2 + $0xa8] sm:$0x1e] }
 0x1de   : > { %8812 = vmatprep.mubr.bf16.mxu1 %v7773_v0  ;;  %v1942_v44 = vrot.slane %v1941_v3, 4  ;;  %v8107_v2 = vcombine.low %v4670_v61, %v4670_v61  ;;  %v8108_v31 = vcombine.high %v4670_v61, %v4670_v61  ;;  %v8155_v11 = vrot.slane %v8105_v54, 9  ;;  %v4672_v63 = vld [vmem:[#allocation2 + $0xb0] sm:$0x1e] }
 0x1df   : > { %v1933_v29 = vsel %vm10859_vm11, %v1928_v32, %v1932_v43  ;;  %v4902_v58 = vsel %vm10959_vm14, %v8154_v60, %v4901_v5  ;;  %v4905_v17 = vrot.slane %v8106_v25, 5  ;;  %9049 = vmatpush3.bf16.msra.mxu0 %v9713_v4  ;;  %v7701_v21 = vcombine.low %v1701_v22, %v1701_v22  ;;  %v9726_v32 = vld [vmem:[%s10331_s27 + $0x98] sm:$0xff]  }
 0x1e0   : > { %v1947_v14 = vsel %vm10859_vm11, %v1942_v44, %v1946_v8  ;;  %v8195_v33 = vcombine.low %v4898_v37, %v4902_v58  ;;  %v8156_v16 = vrot.slane %v8107_v2, 9  ;;  %v4909_v18 = vrot.slane %v8108_v31, 5  ;;  %9050 = vmatprep.subr.bf16.mxu0 %v9731_v9 }
 0x1e1   : > { %v7774_v6 = vcombine.low %v1933_v29, %v1947_v14  ;;  %v4906_v7 = vsel %vm10959_vm14, %v8155_v11, %v4905_v17  ;;  %v7702_v10 = vcombine.high %v1701_v22, %v1701_v22  ;;  %v7703_v1 = vcombine.low %v1702_v30, %v1702_v30  ;;  %v4673_v17 = vld [vmem:[#allocation2 + $0xb8] sm:$0x1e] }
 0x1e2   : > { %9016 = vmatprep.mubr.bf16.mxu0 %v8195_v33  ;;  %v4910_v39 = vsel %vm10959_vm14, %v8156_v16, %v4909_v18  ;;  %v7704_v42 = vcombine.high %v1702_v30, %v1702_v30  ;;  %v7705_v27 = vcombine.low %v1703_v49, %v1703_v49  ;;  %v1949_v12 = vshrl.u32 %v7701_v21, 16  ;;  %v4674_v16 = vld [vmem:[#allocation2 + $0xc0] sm:$0x1e] }
 0x1e3   : > { %8813 = vmatmul.mubr.bf16.vlgmr.msra.gmra.mrb[0].mxu1 %v7774_v6  ;;  %v8196_v19 = vcombine.low %v4906_v7, %v4910_v39  ;;  %v1952_v28 = vshll.u32 %v7701_v21, 16  ;;  %v1958_v46 = vshll.u32 %v7702_v10, 16  ;;  %v1963_v35 = vshrl.u32 %v7703_v1, 16  ;;  %9051 = vmatpush3.bf16.msra.mxu0 %v9731_v9  ;;  %v1705_v10 = vld [vmem:[#allocation2 + $0x50] sm:$0x1f] }
 0x1e4   : > { %v1966_v23 = vshll.u32 %v7703_v1, 16  ;;  %v1972_v53 = vshll.u32 %v7704_v42, 16  ;;  %v7706_v47 = vcombine.high %v1703_v49, %v1703_v49  ;;  %8845 = vmatpush3.bf16.msra.mxu1 %v10046_v36  ;;  %v1951_v54 = vrot.slane %v1949_v12, 4  ;;  %9084 = vmatprep.subr.bf16.mxu0 %v9746_v50  ;;  %v1707_v50 = vld [vmem:[#allocation2 + $0x60] sm:$0x1f]  ;;  %v9756_v36 = vld [vmem:[%s10331_s27 + $0xa8] sm:$0xff]  }
 0x1e5   : > { %9017 = vmatmul.mubr.bf16.gmra.mrb[12].mxu0 %v8196_v19  ;;  %v1954_v56 = vrot.slane %v1952_v28, 5  ;;  %v1960_v38 = vrot.slane %v1958_v46, 5  ;;  %v7707_v55 = vcombine.low %v1704_v20, %v1704_v20  ;;  %8846 = vmatprep.subr.bf16.mxu1 %v9690_v51  ;;  %v1965_v4 = vrot.slane %v1963_v35, 4 }
 0x1e6   : > { %v1968_v43 = vrot.slane %v1966_v23, 5  ;;  %v1974_v57 = vrot.slane %v1972_v53, 5  ;;  %v7708_v45 = vcombine.high %v1704_v20, %v1704_v20  ;;  %v1977_v13 = vshrl.u32 %v7705_v27, 16  ;;  %v1706_v20 = vld [vmem:[#allocation2 + $0x58] sm:$0x1f] }
 0x1e7   : > { %v1955_v15 = vor.u32 %v1954_v56, %v1951_v54  ;;  %v1980_v59 = vshll.u32 %v7705_v27, 16  ;;  %v1986_v40 = vshll.u32 %v7706_v47, 16  ;;  %v1991_v0 = vshrl.u32 %v7707_v55, 16 }
 0x1e8   : > { %v1969_v61 = vor.u32 %v1968_v43, %v1965_v4  ;;  %v1994_v3 = vshll.u32 %v7707_v55, 16  ;;  %v2000_v8 = vshll.u32 %v7708_v45, 16  ;;  %8847 = vmatpush3.bf16.msra.mxu1 %v9690_v51  ;;  %v1979_v5 = vrot.slane %v1977_v13, 4  ;;  %v9744_v51 = vld [vmem:[%s10331_s27 + $0xa0] sm:$0xff]  }
 0x1e9   : > { %v1956_v60 = vrot.slane %v1955_v15, 4  ;;  %v1982_v25 = vrot.slane %v1980_v59, 5  ;;  %v1988_v9 = vrot.slane %v1986_v40, 5  ;;  %8848 = vmatprep.subr.bf16.mxu1 %v9708_v41  ;;  %v1993_v37 = vrot.slane %v1991_v0, 4  ;;  %v1708_v0 = vld [vmem:[#allocation2 + $0x68] sm:$0x1f] }
 0x1ea   : > { %v1970_v44 = vrot.slane %v1969_v61, 4  ;;  %v1996_v2 = vrot.slane %v1994_v3, 5  ;;  %v2002_v31 = vrot.slane %v2000_v8, 5  ;;  %v8109_v58 = vcombine.low %v4671_v62, %v4671_v62 }
 0x1eb   : > { %v1961_v22 = vsel %vm10859_vm11, %v1956_v60, %v1960_v38  ;;  %v1983_v29 = vor.u32 %v1982_v25, %v1979_v5  ;;  %v8110_v11 = vcombine.high %v4671_v62, %v4671_v62  ;;  %v8111_v14 = vcombine.low %v4672_v63, %v4672_v63  ;;  %v9768_v60 = vld [vmem:[%s10331_s27 + $0xb0] sm:$0xff]  }
 0x1ec   : > { %v1975_v30 = vsel %vm10859_vm11, %v1970_v44, %v1974_v57  ;;  %v1997_v49 = vor.u32 %v1996_v2, %v1993_v37  ;;  %v8112_v33 = vcombine.high %v4672_v63, %v4672_v63  ;;  %8849 = vmatpush3.bf16.msra.mxu1 %v9708_v41  ;;  %v8157_v7 = vrot.slane %v8109_v58, 9 }
 0x1ed   : > { %v7775_v18 = vcombine.low %v1961_v22, %v1975_v30  ;;  %v1984_v6 = vrot.slane %v1983_v29, 4  ;;  %v4913_v21 = vrot.slane %v8110_v11, 5  ;;  %8850 = vmatprep.subr.bf16.mxu1 %v9726_v32  ;;  %v8158_v1 = vrot.slane %v8111_v14, 9  ;;  %v4675_v29 = vld [vmem:[#allocation2 + $0xc8] sm:$0x1e] }
 0x1ee   : > { %v1998_v39 = vrot.slane %v1997_v49, 4  ;;  %v4917_v42 = vrot.slane %v8112_v33, 5  ;;  %v8113_v27 = vcombine.low %v4673_v17, %v4673_v17  ;;  %v8114_v28 = vcombine.high %v4673_v17, %v4673_v17  ;;  %v4676_v49 = vld [vmem:[#allocation2 + $0xd0] sm:$0x1e] }
 0x1ef   : > { %8816 = vmatprep.mubr.bf16.mxu1 %v7775_v18  ;;  %v1989_v19 = vsel %vm10859_vm11, %v1984_v6, %v1988_v9  ;;  %v4914_v12 = vsel %vm10959_vm14, %v8157_v7, %v4913_v21  ;;  %v8115_v46 = vcombine.low %v4674_v16, %v4674_v16  ;;  %v8116_v53 = vcombine.high %v4674_v16, %v4674_v16  ;;  %v9772_v6 = vld [vmem:[%s10331_s27 + $0xb8] sm:$0xff]  }
 0x1f0   : > { %v2003_v35 = vsel %vm10859_vm11, %v1998_v39, %v2002_v31  ;;  %v4918_v23 = vsel %vm10959_vm14, %v8158_v1, %v4917_v42  ;;  %v8159_v47 = vrot.slane %v8113_v27, 9  ;;  %8851 = vmatpush3.bf16.msra.mxu1 %v9726_v32  ;;  %v4921_v38 = vrot.slane %v8114_v28, 5  ;;  %v735_v28 = vld [vmem:[#allocation11 + $0xb8] sm:$0xff] }
 0x1f1   : > { %v7776_v54 = vcombine.low %v1989_v19, %v2003_v35  ;;  %v8197_v56 = vcombine.low %v4914_v12, %v4918_v23  ;;  %v8160_v55 = vrot.slane %v8115_v46, 9  ;;  %8852 = vmatprep.subr.bf16.mxu1 %v9744_v51  ;;  %v4925_v41 = vrot.slane %v8116_v53, 5  ;;  %v4677_v46 = vld [vmem:[#allocation2 + $0xd8] sm:$0x1e] }
 0x1f2   : > { %v7709_v4 = vcombine.low %v1705_v10, %v1705_v10  ;;  %v7710_v43 = vcombine.high %v1705_v10, %v1705_v10  ;;  %v7711_v57 = vcombine.low %v1706_v20, %v1706_v20  ;;  %v4922_v45 = vsel %vm10959_vm14, %v8159_v47, %v4921_v38 }
 0x1f3   : > { %8817 = vmatmul.mubr.bf16.gmra.mrb[4].mxu1 %v7776_v54  ;;  %9020 = vmatprep.mubr.bf16.mxu0 %v8197_v56  ;;  %v7712_v15 = vcombine.high %v1706_v20, %v1706_v20  ;;  %v7713_v13 = vcombine.low %v1707_v50, %v1707_v50  ;;  %v4926_v59 = vsel %vm10959_vm14, %v8160_v55, %v4925_v41  ;;  %v1709_v41 = vld [vmem:[#allocation2 + $0x70] sm:$0x1f] }
 0x1f4   : > { %v2005_v40 = vshrl.u32 %v7709_v4, 16  ;;  %v2008_v62 = vshll.u32 %v7709_v4, 16  ;;  %v2014_v61 = vshll.u32 %v7710_v43, 16  ;;  %8853 = vmatpush3.bf16.msra.mxu1 %v9744_v51  ;;  %v8198_v3 = vcombine.low %v4922_v45, %v4926_v59 }
 0x1f5   : > { %v2019_v8 = vshrl.u32 %v7711_v57, 16  ;;  %v2022_v63 = vshll.u32 %v7711_v57, 16  ;;  %v2028_v32 = vshll.u32 %v7712_v15, 16  ;;  %8854 = vmatprep.subr.bf16.mxu1 %v9756_v36  ;;  %v7714_v44 = vcombine.high %v1707_v50, %v1707_v50  ;;  %v1710_v15 = vld [vmem:[#allocation2 + $0x78] sm:$0x1f] }
 0x1f6   : > { %v2007_v5 = vrot.slane %v2005_v40, 4  ;;  %v2010_v25 = vrot.slane %v2008_v62, 5  ;;  %v2016_v9 = vrot.slane %v2014_v61, 5  ;;  %9021 = vmatmul.mubr.bf16.gmra.mrb[16].mxu0 %v8198_v3  ;;  %v7715_v22 = vcombine.low %v1708_v0, %v1708_v0 }
 0x1f7   : > { %v2021_v37 = vrot.slane %v2019_v8, 4  ;;  %v2024_v2 = vrot.slane %v2022_v63, 5  ;;  %v2030_v31 = vrot.slane %v2028_v32, 5  ;;  %v7716_v11 = vcombine.high %v1708_v0, %v1708_v0 }
 0x1f8   : > { %v2011_v58 = vor.u32 %v2010_v25, %v2007_v5  ;;  %v2033_v17 = vshrl.u32 %v7713_v13, 16  ;;  %v2036_v30 = vshll.u32 %v7713_v13, 16  ;;  %8855 = vmatpush3.bf16.msra.mxu1 %v9756_v36  ;;  %v2042_v33 = vshll.u32 %v7714_v44, 16  ;;  %v9792_v36 = vld [vmem:[%s10331_s27 + $0xc0] sm:$0xff]  }
 0x1f9   : > { %v2025_v14 = vor.u32 %v2024_v2, %v2021_v37  ;;  %v2047_v16 = vshrl.u32 %v7715_v22, 16  ;;  %v2050_v18 = vshll.u32 %v7715_v22, 16  ;;  %8856 = vmatprep.subr.bf16.mxu1 %v9768_v60  ;;  %v2056_v20 = vshll.u32 %v7716_v11, 16  ;;  %v1711_v2 = vld [vmem:[#allocation2 + $0x80] sm:$0x1f] }
 0x1fa   : > { %v2012_v7 = vrot.slane %v2011_v58, 4  ;;  %v2035_v21 = vrot.slane %v2033_v17, 4  ;;  %v2038_v10 = vrot.slane %v2036_v30, 5  ;;  %v2044_v39 = vrot.slane %v2042_v33, 5 }
 0x1fb   : > { %v2026_v51 = vrot.slane %v2025_v14, 4  ;;  %v2049_v1 = vrot.slane %v2047_v16, 4  ;;  %v2052_v42 = vrot.slane %v2050_v18, 5  ;;  %v2058_v19 = vrot.slane %v2056_v20, 5  ;;  %v1712_v18 = vld [vmem:[#allocation2 + $0x88] sm:$0x1f] }
 0x1fc   : > { %v2017_v27 = vsel %vm10859_vm11, %v2012_v7, %v2016_v9  ;;  %v2039_v50 = vor.u32 %v2038_v10, %v2035_v21  ;;  %v8117_v12 = vcombine.low %v4675_v29, %v4675_v29  ;;  %8857 = vmatpush3.bf16.msra.mxu1 %v9768_v60  ;;  %v8118_v53 = vcombine.high %v4675_v29, %v4675_v29 }
 0x1fd   : > { %v2031_v35 = vsel %vm10859_vm11, %v2026_v51, %v2030_v31  ;;  %v2053_v23 = vor.u32 %v2052_v42, %v2049_v1  ;;  %v8119_v47 = vcombine.low %v4676_v49, %v4676_v49  ;;  %8858 = vmatprep.subr.bf16.mxu1 %v9772_v6  ;;  %v8120_v38 = vcombine.high %v4676_v49, %v4676_v49 }
 0x1fe   : > { %v7777_v54 = vcombine.low %v2017_v27, %v2031_v35  ;;  %v2040_v56 = vrot.slane %v2039_v50, 4  ;;  %v8161_v55 = vrot.slane %v8117_v12, 9  ;;  %v4929_v43 = vrot.slane %v8118_v53, 5  ;;  %v1277_v50 = vld [vmem:[#allocation2 + $0xe0] sm:$0x1f] }
 0x1ff   : > { %v2054_v4 = vrot.slane %v2053_v23, 4  ;;  %v8162_v57 = vrot.slane %v8119_v47, 9  ;;  %v773_v45 = vmul.f32 %v10731_v24, %v735_v28  ;;  %v4933_v59 = vrot.slane %v8120_v38, 5  ;;  %v4679_v38 = vld [vmem:[#allocation2 + $0xf8] sm:$0x1e] }
 0x200   : > { %8820 = vmatprep.mubr.bf16.mxu1 %v7777_v54  ;;  %v2045_v13 = vsel %vm10859_vm11, %v2040_v56, %v2044_v39  ;;  %v8121_v40 = vcombine.low %v4677_v46, %v4677_v46  ;;  %v8122_v62 = vcombine.high %v4677_v46, %v4677_v46  ;;  %8859 = vmatpush3.bf16.msra.mxu1 %v9772_v6 }
 0x201   : > { %v2059_v61 = vsel %vm10859_vm11, %v2054_v4, %v2058_v19  ;;  %v4930_v0 = vsel %vm10959_vm14, %v8161_v55, %v4929_v43  ;;  %v811_v3 = vadd.f32 %v10741_v48, %v773_v45  ;;  %v7717_v8 = vcombine.low %v1709_v41, %v1709_v41  ;;  %8892 = vmatprep.subr.bf16.mxu1 %v9792_v36 }
 0x202   : > { %v7778_v63 = vcombine.low %v2045_v13, %v2059_v61  ;;  %v4934_v32 = vsel %vm10959_vm14, %v8162_v57, %v4933_v59  ;;  %v11115_v60 = vrot.slane %v8121_v40, 9  ;;  %v11117_v5 = vrot.slane %v8122_v62, 5  ;;  %v4680_v57 = vld [vmem:[#allocation2 + $0x100] sm:$0x1e] }
 0x203   : > { %v8199_v25 = vcombine.low %v4930_v0, %v4934_v32  ;;  %v843_v9 = vmax.f32 %v811_v3, 0.0  ;;  %v7718_v44 = vcombine.high %v1709_v41, %v1709_v41  ;;  %v7719_v37 = vcombine.low %v1710_v15, %v1710_v15  ;;  %v4681_v3 = vld [vmem:[#allocation2 + $0x108] sm:$0x1e] }
 0x204   : > { %8821 = vmatmul.mubr.bf16.gmra.mrb[8].mxu1 %v7778_v63  ;;  %v4938_v31 = vsel %vm10959_vm14, %v11115_v60, %v11117_v5  ;;  %v7720_v22 = vcombine.high %v1710_v15, %v1710_v15  ;;  %v2061_v29 = vshrl.u32 %v7717_v8, 16  ;;  %v2064_v58 = vshll.u32 %v7717_v8, 16  ;;  %v4682_v8 = vld [vmem:[#allocation2 + $0x110] sm:$0x1e]  ;;  %v4684_v60 = vld [vmem:[#allocation2 + $0x120] sm:$0x1e] }
 0x205   : > { %9024 = vmatprep.mubr.bf16.mxu0 %v8199_v25  ;;  %v8523_v11 = vpack.c.bf16 %v843_v9, %v843_v9  ;;  %v2070_v17 = vshll.u32 %v7718_v44, 16  ;;  %v2075_v30 = vshrl.u32 %v7719_v37, 16  ;;  %v2078_v49 = vshll.u32 %v7719_v37, 16 }
 0x206   : > { %v2063_v14 = vrot.slane %v2061_v29, 4  ;;  %v2066_v33 = vrot.slane %v2064_v58, 5  ;;  %v2084_v16 = vshll.u32 %v7720_v22, 16  ;;  %v7721_v6 = vcombine.low %v1711_v2, %v1711_v2 }
 0x207   : > { %v1110_v7 = vshrl.u32 %v8523_v11, 16  ;;  %v1113_v21 = vshll.u32 %v8523_v11, 16  ;;  %v2072_v10 = vrot.slane %v2070_v17, 5  ;;  %v2077_v20 = vrot.slane %v2075_v30, 4  ;;  %v1713_v30 = vld [vmem:[#allocation2 + $0xa0] sm:$0x1f] }
 0x208   : > { %v2067_v51 = vor.u32 %v2066_v33, %v2063_v14  ;;  %v2080_v39 = vrot.slane %v2078_v49, 5  ;;  %v2086_v1 = vrot.slane %v2084_v16, 5  ;;  %v7722_v42 = vcombine.high %v1711_v2, %v1711_v2 }
 0x209   : > { %v1112_v27 = vrot.slane %v1110_v7, 7  ;;  %v7723_v19 = vcombine.low %v1712_v18, %v1712_v18  ;;  %v7724_v12 = vcombine.high %v1712_v18, %v1712_v18  ;;  %v2089_v28 = vshrl.u32 %v7721_v6, 16 }
 0x20a   : > { %v2068_v46 = vrot.slane %v2067_v51, 4  ;;  %v2081_v35 = vor.u32 %v2080_v39, %v2077_v20  ;;  %v2092_v23 = vshll.u32 %v7721_v6, 16  ;;  %v2098_v53 = vshll.u32 %v7722_v42, 16 }
 0x20b   : > { %v1115_v47 = vor.u32 %v1113_v21, %v1112_v27  ;;  %v2091_v36 = vrot.slane %v2089_v28, 4  ;;  %v2103_v54 = vshrl.u32 %v7723_v19, 16  ;;  %v2106_v56 = vshll.u32 %v7723_v19, 16 }
 0x20c   : > { %v2073_v55 = vsel %vm10859_vm11, %v2068_v46, %v2072_v10  ;;  %v2082_v41 = vrot.slane %v2081_v35, 4  ;;  %v2094_v4 = vrot.slane %v2092_v23, 5  ;;  %v2100_v43 = vrot.slane %v2098_v53, 5  ;;  %v1714_v10 = vld [vmem:[#allocation2 + $0xa8] sm:$0x1f] }
 0x20d   : > { %v1278_v45 = vsel %vm10775_vm8, %v1115_v47, %v1277_v50  ;;  %v2105_v15 = vrot.slane %v2103_v54, 4  ;;  %v2108_v13 = vrot.slane %v2106_v56, 5  ;;  %v2112_v59 = vshll.u32 %v7724_v12, 16  ;;  %v1715_v53 = vld [vmem:[#allocation2 + $0xb0] sm:$0x1f] }
 0x20e   : > { %1279 = vst [vmem:[#allocation2 + $0xe0] sm:$0x1f] %v1278_v45  ;;  %v2087_v40 = vsel %vm10859_vm11, %v2082_v41, %v2086_v1  ;;  %v2095_v62 = vor.u32 %v2094_v4, %v2091_v36  ;;  %v8125_v61 = vcombine.low %v4679_v38, %v4679_v38  ;;  %v8126_v0 = vcombine.high %v4679_v38, %v4679_v38  ;;  %v1716_v38 = vld [vmem:[#allocation2 + $0xb8] sm:$0x1f] }
 0x20f   : > { %v7779_v63 = vcombine.low %v2073_v55, %v2087_v40  ;;  %v2109_v32 = vor.u32 %v2108_v13, %v2105_v15  ;;  %v2114_v25 = vrot.slane %v2112_v59, 5  ;;  %v8127_v9 = vcombine.low %v4680_v57, %v4680_v57 }
 0x210   : > { %v2096_v44 = vrot.slane %v2095_v62, 4  ;;  %v8128_v37 = vcombine.high %v4680_v57, %v4680_v57  ;;  %v8165_v2 = vrot.slane %v8125_v61, 9  ;;  %v4945_v22 = vrot.slane %v8126_v0, 5 }
 0x211   : > { %8824 = vmatprep.mubr.bf16.mxu1 %v7779_v63  ;;  %v2110_v29 = vrot.slane %v2109_v32, 4  ;;  %v8166_v58 = vrot.slane %v8127_v9, 9  ;;  %v8129_v11 = vcombine.low %v4681_v3, %v4681_v3  ;;  %v8130_v17 = vcombine.high %v4681_v3, %v4681_v3 }
 0x212   : > { %v2101_v49 = vsel %vm10859_vm11, %v2096_v44, %v2100_v43  ;;  %v4946_v14 = vsel %vm10959_vm14, %v8165_v2, %v4945_v22  ;;  %v4949_v33 = vrot.slane %v8128_v37, 5  ;;  %v8131_v16 = vcombine.low %v4682_v8, %v4682_v8  ;;  %v4683_v37 = vld [vmem:[#allocation2 + $0x118] sm:$0x1e] }
 0x213   : > { %v2115_v18 = vsel %vm10859_vm11, %v2110_v29, %v2114_v25  ;;  %v8132_v6 = vcombine.high %v4682_v8, %v4682_v8  ;;  %v8167_v7 = vrot.slane %v8129_v11, 9  ;;  %v4953_v21 = vrot.slane %v8130_v17, 5 }
 0x214   : > { %v7780_v20 = vcombine.low %v2101_v49, %v2115_v18  ;;  %v4950_v51 = vsel %vm10959_vm14, %v8166_v58, %v4949_v33  ;;  %v8168_v39 = vrot.slane %v8131_v16, 9  ;;  %v7725_v1 = vcombine.low %v1713_v30, %v1713_v30  ;;  %v4685_v16 = vld [vmem:[#allocation2 + $0x128] sm:$0x1e] }
 0x215   : > { %v4678_v42 = vld [vmem:[#allocation2 + $0xe0] sm:$0x1e]  ;;  %v8201_v27 = vcombine.low %v4946_v14, %v4950_v51  ;;  %v4954_v50 = vsel %vm10959_vm14, %v8167_v7, %v4953_v21  ;;  %v4957_v19 = vrot.slane %v8132_v6, 5  ;;  %v7726_v12 = vcombine.high %v1713_v30, %v1713_v30 }
 0x216   : > { %v8123_v28 = vcombine.low %v4678_v42, %v4678_v42  ;;  %v8124_v46 = vcombine.high %v4678_v42, %v4678_v42  ;;  %8825 = vmatmul.mubr.bf16.gmra.mrb[12].mxu1 %v7780_v20  ;;  %v7727_v35 = vcombine.low %v1714_v10, %v1714_v10  ;;  %v7728_v23 = vcombine.high %v1714_v10, %v1714_v10  ;;  %v743_v10 = vld [vmem:[#allocation11 + $0xf8] sm:$0xff] }
 0x217   : > { %v4958_v47 = vsel %vm10959_vm14, %v8168_v39, %v4957_v19  ;;  %v2117_v36 = vshrl.u32 %v7725_v1, 16  ;;  %v2120_v54 = vshll.u32 %v7725_v1, 16  ;;  %v2126_v56 = vshll.u32 %v7726_v12, 16  ;;  %v1717_v12 = vld [vmem:[#allocation2 + $0xc0] sm:$0x1f] }
 0x218   : > { %v8164_v55 = vrot.slane %v8123_v28, 9  ;;  %v4941_v41 = vrot.slane %v8124_v46, 5  ;;  %v8202_v4 = vcombine.low %v4954_v50, %v4958_v47  ;;  %v2131_v43 = vshrl.u32 %v7727_v35, 16 }
 0x219   : > { %v2119_v57 = vrot.slane %v2117_v36, 4  ;;  %v2122_v45 = vrot.slane %v2120_v54, 5  ;;  %v2128_v15 = vrot.slane %v2126_v56, 5  ;;  %v2134_v13 = vshll.u32 %v7727_v35, 16 }
 0x21a   : > { %v4942_v59 = vsel %vm10959_vm14, %v8164_v55, %v4941_v41  ;;  %v2133_v40 = vrot.slane %v2131_v43, 4  ;;  %v2140_v62 = vshll.u32 %v7728_v23, 16  ;;  %v7729_v61 = vcombine.low %v1715_v53, %v1715_v53 }
 0x21b   : > { %v8200_v0 = vcombine.low %v4938_v31, %v4942_v59  ;;  %v2123_v3 = vor.u32 %v2122_v45, %v2119_v57  ;;  %v2136_v8 = vrot.slane %v2134_v13, 5  ;;  %v7730_v63 = vcombine.high %v1715_v53, %v1715_v53  ;;  %v1718_v53 = vld [vmem:[#allocation2 + $0xc8] sm:$0x1f] }
 0x21c   : > { %v2142_v32 = vrot.slane %v2140_v62, 5  ;;  %v7731_v25 = vcombine.low %v1716_v38, %v1716_v38  ;;  %v7732_v9 = vcombine.high %v1716_v38, %v1716_v38  ;;  %v2145_v44 = vshrl.u32 %v7729_v61, 16  ;;  %v1719_v38 = vld [vmem:[#allocation2 + $0xd0] sm:$0x1f] }
 0x21d   : > { %9025 = vmatmul.mubr.bf16.gmra.mrb[20].mxu0 %v8200_v0  ;;  %v2124_v2 = vrot.slane %v2123_v3, 4  ;;  %v2137_v22 = vor.u32 %v2136_v8, %v2133_v40  ;;  %v2148_v29 = vshll.u32 %v7729_v61, 16  ;;  %v2154_v58 = vshll.u32 %v7730_v63, 16  ;;  %v1720_v8 = vld [vmem:[#allocation2 + $0xd8] sm:$0x1f] }
 0x21e   : > { %9028 = vmatprep.mubr.bf16.mxu0 %v8201_v27  ;;  %v2147_v11 = vrot.slane %v2145_v44, 4  ;;  %v2159_v17 = vshrl.u32 %v7731_v25, 16  ;;  %v2162_v30 = vshll.u32 %v7731_v25, 16  ;;  %v2168_v49 = vshll.u32 %v7732_v9, 16 }
 0x21f   : > { %v2129_v5 = vsel %vm10859_vm11, %v2124_v2, %v2128_v15  ;;  %v2138_v31 = vrot.slane %v2137_v22, 4  ;;  %v2150_v14 = vrot.slane %v2148_v29, 5  ;;  %v2156_v33 = vrot.slane %v2154_v58, 5 }
 0x220   : > { %v2161_v18 = vrot.slane %v2159_v17, 4  ;;  %v2164_v6 = vrot.slane %v2162_v30, 5  ;;  %v2170_v7 = vrot.slane %v2168_v49, 5  ;;  %v8133_v21 = vcombine.low %v4683_v37, %v4683_v37  ;;  %v1301_v30 = vld [vmem:[#allocation2 + $0x130] sm:$0x1f] }
 0x221   : > { %v2143_v20 = vsel %vm10859_vm11, %v2138_v31, %v2142_v32  ;;  %v2151_v51 = vor.u32 %v2150_v14, %v2147_v11  ;;  %v8134_v39 = vcombine.high %v4683_v37, %v4683_v37  ;;  %v8135_v1 = vcombine.low %v4684_v60, %v4684_v60 }
 0x222   : > { %v7781_v42 = vcombine.low %v2129_v5, %v2143_v20  ;;  %v2165_v27 = vor.u32 %v2164_v6, %v2161_v18  ;;  %v8136_v50 = vcombine.high %v4684_v60, %v4684_v60  ;;  %v8169_v19 = vrot.slane %v8133_v21, 9  ;;  %v1721_v20 = vld [vmem:[#allocation2 + $0xf0] sm:$0x1f] }
 0x223   : > { %v2152_v28 = vrot.slane %v2151_v51, 4  ;;  %v4961_v46 = vrot.slane %v8134_v39, 5  ;;  %v8170_v35 = vrot.slane %v8135_v1, 9  ;;  %v781_v23 = vmul.f32 %v10731_v24, %v743_v10 }
 0x224   : > { %8828 = vmatprep.mubr.bf16.mxu1 %v7781_v42  ;;  %v2166_v47 = vrot.slane %v2165_v27, 4  ;;  %v4965_v36 = vrot.slane %v8136_v50, 5  ;;  %v8137_v54 = vcombine.low %v4685_v16, %v4685_v16  ;;  %v8138_v56 = vcombine.high %v4685_v16, %v4685_v16  ;;  %v1722_v27 = vld [vmem:[#allocation2 + $0xf8] sm:$0x1f] }
 0x225   : > { %9029 = vmatmul.mubr.bf16.gmra.mrb[24].mxu0 %v8202_v4  ;;  %v2157_v55 = vsel %vm10859_vm11, %v2152_v28, %v2156_v33  ;;  %v4962_v41 = vsel %vm10959_vm14, %v8169_v19, %v4961_v46  ;;  %v819_v43 = vadd.f32 %v10741_v48, %v781_v23  ;;  %v7733_v57 = vcombine.low %v1717_v12, %v1717_v12 }
 0x226   : > { %v2171_v24 = vsel %vm10859_vm11, %v2166_v47, %v2170_v7  ;;  %v4966_v45 = vsel %vm10959_vm14, %v8170_v35, %v4965_v36  ;;  %v11162_v15 = vrot.slane %v8137_v54, 9  ;;  %v11164_v13 = vrot.slane %v8138_v56, 5 }
 0x227   : > { %v7782_v4 = vcombine.low %v2157_v55, %v2171_v24  ;;  %v8203_v59 = vcombine.low %v4962_v41, %v4966_v45  ;;  %v851_v40 = vmax.f32 %v819_v43, 0.0  ;;  %v7734_v62 = vcombine.high %v1717_v12, %v1717_v12 }
 0x228   : > { %v4970_v48 = vsel %vm10959_vm14, %v11162_v15, %v11164_v13  ;;  %v7735_v61 = vcombine.low %v1718_v53, %v1718_v53  ;;  %v7736_v0 = vcombine.high %v1718_v53, %v1718_v53  ;;  %v2173_v3 = vshrl.u32 %v7733_v57, 16  ;;  %v1727_v15 = vld [vmem:[#allocation2 + $0x120] sm:$0x1f] }
 0x229   : > { %8829 = vmatmul.mubr.bf16.gmra.mrb[16].mxu1 %v7782_v4  ;;  %9032 = vmatprep.mubr.bf16.mxu0 %v8203_v59  ;;  %v8531_v63 = vpack.c.bf16 %v851_v40, %v851_v40  ;;  %v2176_v32 = vshll.u32 %v7733_v57, 16  ;;  %v2182_v25 = vshll.u32 %v7734_v62, 16  ;;  %v7737_v9 = vcombine.low %v1719_v38, %v1719_v38  ;;  %v1723_v57 = vld [vmem:[#allocation2 + $0x100] sm:$0x1f]  ;;  %v1724_v59 = vld [vmem:[#allocation2 + $0x108] sm:$0x1f] }
 0x22a   : > { %v2175_v44 = vrot.slane %v2173_v3, 4  ;;  %v2187_v37 = vshrl.u32 %v7735_v61, 16  ;;  %v2190_v2 = vshll.u32 %v7735_v61, 16  ;;  %v2196_v22 = vshll.u32 %v7736_v0, 16 }
 0x22b   : > { %v1166_v29 = vshrl.u32 %v8531_v63, 16  ;;  %v1169_v58 = vshll.u32 %v8531_v63, 16  ;;  %v2178_v11 = vrot.slane %v2176_v32, 5  ;;  %v2184_v17 = vrot.slane %v2182_v25, 5 }
 0x22c   : > { %v2189_v49 = vrot.slane %v2187_v37, 4  ;;  %v2192_v60 = vrot.slane %v2190_v2, 5  ;;  %v2198_v5 = vrot.slane %v2196_v22, 5  ;;  %v7738_v31 = vcombine.high %v1719_v38, %v1719_v38 }
 0x22d   : > { %v1168_v14 = vrot.slane %v1166_v29, 7  ;;  %v2179_v33 = vor.u32 %v2178_v11, %v2175_v44  ;;  %v7739_v16 = vcombine.low %v1720_v8, %v1720_v8  ;;  %v7740_v18 = vcombine.high %v1720_v8, %v1720_v8 }
 0x22e   : > { %v2193_v6 = vor.u32 %v2192_v60, %v2189_v49  ;;  %v2201_v7 = vshrl.u32 %v7737_v9, 16  ;;  %v2204_v21 = vshll.u32 %v7737_v9, 16  ;;  %v2210_v10 = vshll.u32 %v7738_v31, 16 }
 0x22f   : > { %v1171_v51 = vor.u32 %v1169_v58, %v1168_v14  ;;  %v2180_v39 = vrot.slane %v2179_v33, 4  ;;  %v2215_v1 = vshrl.u32 %v7739_v16, 16  ;;  %v2218_v42 = vshll.u32 %v7739_v16, 16  ;;  %v1725_v16 = vld [vmem:[#allocation2 + $0x110] sm:$0x1f] }
 0x230   : > { %v2194_v50 = vrot.slane %v2193_v6, 4  ;;  %v2203_v19 = vrot.slane %v2201_v7, 4  ;;  %v2206_v12 = vrot.slane %v2204_v21, 5  ;;  %v2212_v28 = vrot.slane %v2210_v10, 5  ;;  %v1726_v10 = vld [vmem:[#allocation2 + $0x118] sm:$0x1f] }
 0x231   : > { %v1302_v46 = vsel %vm10775_vm8, %v1171_v51, %v1301_v30  ;;  %v2185_v35 = vsel %vm10859_vm11, %v2180_v39, %v2184_v17  ;;  %v2217_v23 = vrot.slane %v2215_v1, 4  ;;  %v2220_v53 = vrot.slane %v2218_v42, 5 }
 0x232   : > { %1303 = vst [vmem:[#allocation2 + $0x130] sm:$0x1f] %v1302_v46  ;;  %v2199_v47 = vsel %vm10859_vm11, %v2194_v50, %v2198_v5  ;;  %v2207_v36 = vor.u32 %v2206_v12, %v2203_v19  ;;  %v2224_v54 = vshll.u32 %v7740_v18, 16  ;;  %v7741_v56 = vcombine.low %v1721_v20, %v1721_v20 }
 0x233   : > { %v7783_v38 = vcombine.low %v2185_v35, %v2199_v47  ;;  %v2221_v55 = vor.u32 %v2220_v53, %v2217_v23  ;;  %v7742_v41 = vcombine.high %v1721_v20, %v1721_v20  ;;  %v7743_v43 = vcombine.low %v1722_v27, %v1722_v27 }
 0x234   : > { %v2208_v24 = vrot.slane %v2207_v36, 4  ;;  %v2226_v26 = vrot.slane %v2224_v54, 5  ;;  %v7744_v45 = vcombine.high %v1722_v27, %v1722_v27  ;;  %v2229_v4 = vshrl.u32 %v7741_v56, 16 }
 0x235   : > { %8832 = vmatprep.mubr.bf16.mxu1 %v7783_v38  ;;  %v2222_v40 = vrot.slane %v2221_v55, 4  ;;  %v2232_v62 = vshll.u32 %v7741_v56, 16  ;;  %v2238_v61 = vshll.u32 %v7742_v41, 16  ;;  %v2243_v0 = vshrl.u32 %v7743_v43, 16 }
 0x236   : > { %v2213_v3 = vsel %vm10859_vm11, %v2208_v24, %v2212_v28  ;;  %v2231_v8 = vrot.slane %v2229_v4, 4  ;;  %v2246_v63 = vshll.u32 %v7743_v43, 16  ;;  %v2252_v32 = vshll.u32 %v7744_v45, 16  ;;  %v9745_v28 = vld [vmem:[#allocation2 + $0x10] ss:$8 sps:$4 sm:$0xff]  }
 0x237   : > { %v2227_v25 = vsel %vm10859_vm11, %v2222_v40, %v2226_v26  ;;  %v2234_v9 = vrot.slane %v2232_v62, 5  ;;  %v2240_v44 = vrot.slane %v2238_v61, 5  ;;  %v2245_v37 = vrot.slane %v2243_v0, 4  ;;  %v1728_v0 = vld [vmem:[#allocation2 + $0x128] sm:$0x1f] }
 0x238   : > { %v7784_v2 = vcombine.low %v2213_v3, %v2227_v25  ;;  %v2248_v22 = vrot.slane %v2246_v63, 5  ;;  %v2254_v29 = vrot.slane %v2252_v32, 5  ;;  %v7745_v58 = vcombine.low %v1723_v57, %v1723_v57  ;;  %v9747_v25 = vld [vmem:[#allocation2 + $0x20] ss:$8 sps:$4 sm:$0xff]  }
 0x239   : > { %v4686_v11 = vld [vmem:[#allocation2 + $0x130] sm:$0x1e]  ;;  %v2235_v17 = vor.u32 %v2234_v9, %v2231_v8  ;;  %v7746_v30 = vcombine.high %v1723_v57, %v1723_v57  ;;  %v7747_v49 = vcombine.low %v1724_v59, %v1724_v59  ;;  %v7748_v60 = vcombine.high %v1724_v59, %v1724_v59 }
 0x23a   : > { %v8139_v5 = vcombine.low %v4686_v11, %v4686_v11  ;;  %v8140_v31 = vcombine.high %v4686_v11, %v4686_v11  ;;  %8833 = vmatmul.mubr.bf16.gmra.mrb[20].mxu1 %v7784_v2  ;;  %v2249_v14 = vor.u32 %v2248_v22, %v2245_v37  ;;  %v2257_v33 = vshrl.u32 %v7745_v58, 16 }
 0x23b   : > { %v2236_v18 = vrot.slane %v2235_v17, 4  ;;  %v2260_v6 = vshll.u32 %v7745_v58, 16  ;;  %v2266_v7 = vshll.u32 %v7746_v30, 16  ;;  %v2271_v21 = vshrl.u32 %v7747_v49, 16 }
 0x23c   : > { %v8172_v20 = vrot.slane %v8139_v5, 9  ;;  %v4973_v51 = vrot.slane %v8140_v31, 5  ;;  %v2250_v39 = vrot.slane %v2249_v14, 4  ;;  %v2259_v1 = vrot.slane %v2257_v33, 4 }
 0x23d   : > { %v2241_v42 = vsel %vm10859_vm11, %v2236_v18, %v2240_v44  ;;  %v2262_v27 = vrot.slane %v2260_v6, 5  ;;  %v2268_v50 = vrot.slane %v2266_v7, 5  ;;  %v2273_v19 = vrot.slane %v2271_v21, 4  ;;  %v2662_v6 = vld [vmem:[#allocation2] sm:$0x1e] }
 0x23e   : > { %v4974_v12 = vsel %vm10959_vm14, %v8172_v20, %v4973_v51  ;;  %v2255_v46 = vsel %vm10859_vm11, %v2250_v39, %v2254_v29  ;;  %v2274_v35 = vshll.u32 %v7747_v49, 16  ;;  %v2280_v23 = vshll.u32 %v7748_v60, 16  ;;  %v9757_v29 = vld [vmem:[#allocation2 + $0x30] ss:$8 sps:$4 sm:$0xff]   ;;  %v2663_v51 = vld [vmem:[#allocation2 + $0x8] sm:$0x1e] }
 0x23f   : > { %v8204_v53 = vcombine.low %v4970_v48, %v4974_v12  ;;  %v7785_v47 = vcombine.low %v2241_v42, %v2255_v46  ;;  %v2263_v36 = vor.u32 %v2262_v27, %v2259_v1  ;;  %v7749_v54 = vcombine.low %v1725_v16, %v1725_v16  ;;  %v9758_v49 = vld [vmem:[%s10331_s27 + $0x1c8] sm:$0xff]   ;;  %v10047_v39 = vld [vmem:[%s10331_s27 + $0x1c0] sm:$0xff]  }
 0x240   : > { %v2276_v56 = vrot.slane %v2274_v35, 5  ;;  %v2282_v38 = vrot.slane %v2280_v23, 5  ;;  %v7750_v55 = vcombine.high %v1725_v16, %v1725_v16  ;;  %v7751_v41 = vcombine.low %v1726_v10, %v1726_v10  ;;  %v9770_v35 = vld [vmem:[%s10331_s27 + $0x1d0] sm:$0xff]  }
 0x241   : > { %9033 = vmatmul.mubr.bf16.gmra.mrb[28].mxu0 %v8204_v53  ;;  %8836 = vmatprep.mubr.bf16.mxu1 %v7785_v47  ;;  %v2264_v43 = vrot.slane %v2263_v36, 4  ;;  %v7752_v57 = vcombine.high %v1726_v10, %v1726_v10  ;;  %v2285_v24 = vshrl.u32 %v7749_v54, 16  ;;  %v2288_v26 = vshll.u32 %v7749_v54, 16 }
 0x242   : > { %9052 = vmatprep.mubr.bf16.mxu0 %v9745_v28  ;;  %v2277_v45 = vor.u32 %v2276_v56, %v2273_v19  ;;  %v2294_v4 = vshll.u32 %v7750_v55, 16  ;;  %v2299_v59 = vshrl.u32 %v7751_v41, 16  ;;  %v2302_v40 = vshll.u32 %v7751_v41, 16  ;;  %v2664_v19 = vld [vmem:[#allocation2 + $0x10] sm:$0x1e] }
 0x243   : > { %v2269_v13 = vsel %vm10859_vm11, %v2264_v43, %v2268_v50  ;;  %v2287_v48 = vrot.slane %v2285_v24, 4  ;;  %v2290_v62 = vrot.slane %v2288_v26, 5  ;;  %v2308_v61 = vshll.u32 %v7752_v57, 16  ;;  %v2665_v56 = vld [vmem:[#allocation2 + $0x18] sm:$0x1e] }
 0x244   : > { %v2278_v3 = vrot.slane %v2277_v45, 4  ;;  %v2296_v8 = vrot.slane %v2294_v4, 5  ;;  %v2301_v63 = vrot.slane %v2299_v59, 4  ;;  %v2304_v32 = vrot.slane %v2302_v40, 5  ;;  %v9769_v26 = vld [vmem:[#allocation2 + $0x60] ss:$8 sps:$4 sm:$0xff]  }
 0x245   : > { %v2291_v9 = vor.u32 %v2290_v62, %v2287_v48  ;;  %v2310_v44 = vrot.slane %v2308_v61, 5  ;;  %v7753_v37 = vcombine.low %v1727_v15, %v1727_v15  ;;  %v7754_v2 = vcombine.high %v1727_v15, %v1727_v15  ;;  %v9782_v62 = vld [vmem:[%s10331_s27 + $0x1d8] sm:$0xff]   ;;  %v2666_v61 = vld [vmem:[#allocation2 + $0x20] sm:$0x1e] }
 0x246   : > { %v2283_v22 = vsel %vm10859_vm11, %v2278_v3, %v2282_v38  ;;  %v2305_v58 = vor.u32 %v2304_v32, %v2301_v63  ;;  %v7755_v11 = vcombine.low %v1728_v0, %v1728_v0  ;;  %v7756_v17 = vcombine.high %v1728_v0, %v1728_v0  ;;  %v9759_v38 = vld [vmem:[#allocation2 + $0x40] ss:$8 sps:$4 sm:$0xff]  }
 0x247   : > { %v7786_v30 = vcombine.low %v2269_v13, %v2283_v22  ;;  %v2292_v60 = vrot.slane %v2291_v9, 4  ;;  %v2313_v5 = vshrl.u32 %v7753_v37, 16  ;;  %v2316_v31 = vshll.u32 %v7753_v37, 16  ;;  %v2667_v32 = vld [vmem:[#allocation2 + $0x28] sm:$0x1e] }
 0x248   : > { %v2306_v14 = vrot.slane %v2305_v58, 4  ;;  %v2322_v33 = vshll.u32 %v7754_v2, 16  ;;  %v2327_v16 = vshrl.u32 %v7755_v11, 16  ;;  %v2330_v18 = vshll.u32 %v7755_v11, 16  ;;  %v2668_v2 = vld [vmem:[#allocation2 + $0x30] sm:$0x1e] }
 0x249   : > { %9053 = vmatmul.mubr.bf16.vlgmr.msra.gmra.mrb[0].mxu0 %v9747_v25  ;;  %8837 = vmatmul.mubr.bf16.gmra.mrb[24].mxu1 %v7786_v30  ;;  %v2297_v7 = vsel %vm10859_vm11, %v2292_v60, %v2296_v8  ;;  %v2315_v21 = vrot.slane %v2313_v5, 4  ;;  %v2318_v10 = vrot.slane %v2316_v31, 5  ;;  %v2336_v20 = vshll.u32 %v7756_v17, 16  ;;  %v2669_v11 = vld [vmem:[#allocation2 + $0x38] sm:$0x1e]  ;;  %v9794_v60 = vld [vmem:[%s10331_s27 + $0x1e0] sm:$0xff]  }
 0x24a   : > { %9085 = vmatpush3.bf16.msra.mxu0 %v10047_v39  ;;  %9056 = vmatprep.mubr.bf16.mxu0 %v9757_v29  ;;  %v2311_v1 = vsel %vm10859_vm11, %v2306_v14, %v2310_v44  ;;  %v2324_v42 = vrot.slane %v2322_v33, 5  ;;  %v2329_v27 = vrot.slane %v2327_v16, 4  ;;  %v2332_v50 = vrot.slane %v2330_v18, 5  ;;  %v2670_v5 = vld [vmem:[#allocation2 + $0x50] sm:$0x1e] }
 0x24b   : > { %9086 = vmatprep.subr.bf16.mxu0 %v9758_v49  ;;  %v7787_v12 = vcombine.low %v2297_v7, %v2311_v1  ;;  %v2319_v28 = vor.u32 %v2318_v10, %v2315_v21  ;;  %v2338_v46 = vrot.slane %v2336_v20, 5  ;;  %v7797_v23 = vcombine.low %v2662_v6, %v2662_v6  ;;  %v9771_v18 = vld [vmem:[#allocation2 + $0x70] ss:$8 sps:$4 sm:$0xff]  }
 0x24c   : > { %v2333_v53 = vor.u32 %v2332_v50, %v2329_v27  ;;  %v7798_v47 = vcombine.high %v2662_v6, %v2662_v6  ;;  %v7799_v36 = vcombine.low %v2663_v51, %v2663_v51  ;;  %v7800_v54 = vcombine.high %v2663_v51, %v2663_v51  ;;  %v2671_v20 = vld [vmem:[#allocation2 + $0x58] sm:$0x1e]  ;;  %v9781_v51 = vld [vmem:[#allocation2 + $0x80] ss:$8 sps:$4 sm:$0xff]  }
 0x24d   : > { %8840 = vmatprep.mubr.bf16.mxu1 %v7787_v12  ;;  %v2320_v55 = vrot.slane %v2319_v28, 4  ;;  %v7861_v41 = vrot.slane %v7797_v23, 9  ;;  %v7801_v43 = vcombine.low %v2664_v19, %v2664_v19  ;;  %v7802_v57 = vcombine.high %v2664_v19, %v2664_v19  ;;  %v2672_v50 = vld [vmem:[#allocation2 + $0x60] sm:$0x1e] }
 0x24e   : > { %9087 = vmatpush3.bf16.msra.mxu0 %v9758_v49  ;;  %v2334_v24 = vrot.slane %v2333_v53, 4  ;;  %v2859_v45 = vrot.slane %v7798_v47, 5  ;;  %v7862_v4 = vrot.slane %v7799_v36, 9  ;;  %v2863_v59 = vrot.slane %v7800_v54, 5  ;;  %v2673_v36 = vld [vmem:[#allocation2 + $0x68] sm:$0x1e] }
 0x24f   : > { %v2325_v40 = vsel %vm10859_vm11, %v2320_v55, %v2324_v42  ;;  %9088 = vmatprep.subr.bf16.mxu0 %v9770_v35  ;;  %v7803_v15 = vcombine.low %v2665_v56, %v2665_v56  ;;  %v7804_v13 = vcombine.high %v2665_v56, %v2665_v56  ;;  %v7863_v48 = vrot.slane %v7801_v43, 9  ;;  %v9806_v43 = vld [vmem:[%s10331_s27 + $0x1e8] sm:$0xff]  }
 0x250   : > { %v2339_v0 = vsel %vm10859_vm11, %v2334_v24, %v2338_v46  ;;  %v2860_v3 = vsel %vm10959_vm14, %v7861_v41, %v2859_v45  ;;  %v2864_v8 = vsel %vm10959_vm14, %v7862_v4, %v2863_v59  ;;  %v2867_v63 = vrot.slane %v7802_v57, 5  ;;  %v9804_v41 = vld [vmem:[%s10331_s27 + $0xc8] sm:$0xff]   ;;  %v2674_v57 = vld [vmem:[#allocation2 + $0x70] sm:$0x1e] }
 0x251   : > { %9057 = vmatmul.mubr.bf16.gmra.mrb[4].mxu0 %v9759_v38  ;;  %v7788_v25 = vcombine.low %v2325_v40, %v2339_v0  ;;  %v7909_v9 = vcombine.low %v2860_v3, %v2864_v8  ;;  %v7864_v44 = vrot.slane %v7803_v15, 9  ;;  %v2871_v37 = vrot.slane %v7804_v13, 5  ;;  %v10048_v0 = vld [vmem:[%s10331_s27 + $0xc0] sm:$0xff]  }
 0x252   : > { %9060 = vmatprep.mubr.bf16.mxu0 %v9769_v26  ;;  %9089 = vmatpush3.bf16.msra.mxu0 %v9770_v35  ;;  %v2868_v22 = vsel %vm10959_vm14, %v7863_v48, %v2867_v63  ;;  %v7805_v29 = vcombine.low %v2666_v61, %v2666_v61  ;;  %v7806_v58 = vcombine.high %v2666_v61, %v2666_v61  ;;  %v2675_v48 = vld [vmem:[#allocation2 + $0x78] sm:$0x1e] }
 0x253   : > { %8841 = vmatmul.mubr.bf16.gmra.mrb[28].mxu1 %v7788_v25  ;;  %v2872_v17 = vsel %vm10959_vm14, %v7864_v44, %v2871_v37  ;;  %9090 = vmatprep.subr.bf16.mxu0 %v9782_v62  ;;  %v7807_v30 = vcombine.low %v2667_v32, %v2667_v32  ;;  %v7808_v49 = vcombine.high %v2667_v32, %v2667_v32  ;;  %v9783_v61 = vld [vmem:[#allocation2 + $0x90] ss:$8 sps:$4 sm:$0xff]   ;;  %v2676_v25 = vld [vmem:[#allocation2 + $0x80] sm:$0x1e] }
 0x254   : > { %8860 = vmatprep.mubr.bf16.mxu1 %v7909_v9  ;;  %v7910_v31 = vcombine.low %v2868_v22, %v2872_v17  ;;  %v7865_v14 = vrot.slane %v7805_v29, 9  ;;  %v2875_v33 = vrot.slane %v7806_v58, 5  ;;  %v7809_v16 = vcombine.low %v2668_v2, %v2668_v2  ;;  %v2677_v22 = vld [vmem:[#allocation2 + $0x88] sm:$0x1e]  ;;  %v9816_v29 = vld [vmem:[%s10331_s27 + $0xd0] sm:$0xff]  }
 0x255   : > { %v7866_v6 = vrot.slane %v7807_v30, 9  ;;  %v2879_v7 = vrot.slane %v7808_v49, 5  ;;  %v7810_v21 = vcombine.high %v2668_v2, %v2668_v2  ;;  %v7811_v10 = vcombine.low %v2669_v11, %v2669_v11  ;;  %v9793_v58 = vld [vmem:[#allocation2 + $0xb0] ss:$8 sps:$4 sm:$0xff]  }
 0x256   : > { %9091 = vmatpush3.bf16.msra.mxu0 %v9782_v62  ;;  %v2876_v39 = vsel %vm10959_vm14, %v7865_v14, %v2875_v33  ;;  %v7812_v1 = vcombine.high %v2669_v11, %v2669_v11  ;;  %v7867_v42 = vrot.slane %v7809_v16, 9  ;;  %v7813_v27 = vcombine.low %v2670_v5, %v2670_v5  ;;  %v9818_v62 = vld [vmem:[%s10331_s27 + $0x1f0] sm:$0xff]   ;;  %v9830_v16 = vld [vmem:[%s10331_s27 + $0x1f8] sm:$0xff]  }
 0x257   : > { %v2880_v19 = vsel %vm10959_vm14, %v7866_v6, %v2879_v7  ;;  %v2883_v12 = vrot.slane %v7810_v21, 5  ;;  %v7868_v28 = vrot.slane %v7811_v10, 9  ;;  %9092 = vmatprep.subr.bf16.mxu0 %v9794_v60  ;;  %v7814_v46 = vcombine.high %v2670_v5, %v2670_v5  ;;  %v2678_v33 = vld [vmem:[#allocation2 + $0xa0] sm:$0x1e]  ;;  %v2679_v10 = vld [vmem:[#allocation2 + $0xa8] sm:$0x1e] }
 0x258   : > { %v7911_v35 = vcombine.low %v2876_v39, %v2880_v19  ;;  %v2887_v23 = vrot.slane %v7812_v1, 5  ;;  %v7815_v53 = vcombine.low %v2671_v20, %v2671_v20  ;;  %v7816_v47 = vcombine.high %v2671_v20, %v2671_v20 }
 0x259   : > { %9061 = vmatmul.mubr.bf16.gmra.mrb[8].mxu0 %v9771_v18  ;;  %v2884_v54 = vsel %vm10959_vm14, %v7867_v42, %v2883_v12  ;;  %v7869_v56 = vrot.slane %v7813_v27, 9  ;;  %v2891_v38 = vrot.slane %v7814_v46, 5  ;;  %v7817_v55 = vcombine.low %v2672_v50, %v2672_v50  ;;  %v2680_v42 = vld [vmem:[#allocation2 + $0xb0] sm:$0x1e]  ;;  %v9828_v27 = vld [vmem:[%s10331_s27 + $0xd8] sm:$0xff]  }
 0x25a   : > { %9064 = vmatprep.mubr.bf16.mxu0 %v9781_v51  ;;  %v2888_v24 = vsel %vm10959_vm14, %v7868_v28, %v2887_v23  ;;  %9093 = vmatpush3.bf16.msra.mxu0 %v9794_v60  ;;  %v7870_v26 = vrot.slane %v7815_v53, 9  ;;  %v2895_v45 = vrot.slane %v7816_v47, 5  ;;  %v7818_v4 = vcombine.high %v2672_v50, %v2672_v50  ;;  %v2681_v46 = vld [vmem:[#allocation2 + $0xb8] sm:$0x1e] }
 0x25b   : > { %8861 = vmatmul.mubr.bf16.vlgmr.msra.gmra.mrb[0].mxu1 %v7910_v31  ;;  %v7912_v59 = vcombine.low %v2884_v54, %v2888_v24  ;;  %v2892_v40 = vsel %vm10959_vm14, %v7869_v56, %v2891_v38  ;;  %v7819_v15 = vcombine.low %v2673_v36, %v2673_v36  ;;  %v7820_v13 = vcombine.high %v2673_v36, %v2673_v36  ;;  %v11248_v36 = vld [vmem:[%s10331_s27 + $0x200] sm:$0xff]  }
 0x25c   : > { %8864 = vmatprep.mubr.bf16.mxu1 %v7911_v35  ;;  %8893 = vmatpush3.bf16.msra.mxu1 %v10048_v0  ;;  %v2896_v3 = vsel %vm10959_vm14, %v7870_v26, %v2895_v45  ;;  %v7871_v8 = vrot.slane %v7817_v55, 9  ;;  %v2899_v63 = vrot.slane %v7818_v4, 5  ;;  %v7821_v32 = vcombine.low %v2674_v57, %v2674_v57  ;;  %v2683_v4 = vld [vmem:[#allocation2 + $0xc8] sm:$0x1e] }
 0x25d   : > { %v7913_v9 = vcombine.low %v2892_v40, %v2896_v3  ;;  %v7872_v44 = vrot.slane %v7819_v15, 9  ;;  %v2903_v37 = vrot.slane %v7820_v13, 5  ;;  %8894 = vmatprep.subr.bf16.mxu1 %v9804_v41  ;;  %9094 = vmatprep.subr.bf16.mxu0 %v9806_v43  ;;  %v7822_v2 = vcombine.high %v2674_v57, %v2674_v57  ;;  %v9805_v40 = vld [vmem:[#allocation2 + $0xd0] ss:$8 sps:$4 sm:$0xff]  }
 0x25e   : > { %v2900_v11 = vsel %vm10959_vm14, %v7871_v8, %v2899_v63  ;;  %9095 = vmatpush3.bf16.msra.mxu0 %v9806_v43  ;;  %v7823_v17 = vcombine.low %v2675_v48, %v2675_v48  ;;  %v7824_v30 = vcombine.high %v2675_v48, %v2675_v48  ;;  %v7873_v49 = vrot.slane %v7821_v32, 9  ;;  %v9795_v43 = vld [vmem:[#allocation2 + $0xc0] ss:$8 sps:$4 sm:$0xff]   ;;  %v2684_v63 = vld [vmem:[#allocation2 + $0xd0] sm:$0x1e] }
 0x25f   : > { %v2904_v60 = vsel %vm10959_vm14, %v7872_v44, %v2903_v37  ;;  %v2907_v5 = vrot.slane %v7822_v2, 5  ;;  %v7825_v31 = vcombine.low %v2676_v25, %v2676_v25  ;;  %v7826_v14 = vcombine.high %v2676_v25, %v2676_v25  ;;  %9096 = vmatprep.subr.bf16.mxu0 %v9818_v62  ;;  %v2685_v37 = vld [vmem:[#allocation2 + $0xd8] sm:$0x1e] }
 0x260   : > { %v11238_v18 = vcombine.low %v2900_v11, %v2904_v60  ;;  %8895 = vmatpush3.bf16.msra.mxu1 %v9804_v41  ;;  %v7874_v6 = vrot.slane %v7823_v17, 9  ;;  %v2911_v7 = vrot.slane %v7824_v30, 5  ;;  %v7827_v21 = vcombine.low %v2677_v22, %v2677_v22  ;;  %v2682_v41 = vld [vmem:[#allocation2 + $0xc0] sm:$0x1e]  ;;  %v5684_v11 = vld [vmem:[#allocation2 + $0x10] sm:$0x1f] }
 0x261   : > { %9065 = vmatmul.mubr.bf16.gmra.mrb[12].mxu0 %v9783_v61  ;;  %v2908_v20 = vsel %vm10959_vm14, %v7873_v49, %v2907_v5  ;;  %v7828_v51 = vcombine.high %v2677_v22, %v2677_v22  ;;  %v7875_v39 = vrot.slane %v7825_v31, 9  ;;  %v2915_v1 = vrot.slane %v7826_v14, 5  ;;  %8896 = vmatprep.subr.bf16.mxu1 %v9816_v29  ;;  %v9858_v17 = vld [vmem:[%s10331_s27 + $0xe8] sm:$0xff]  }
 0x262   : > { %9068 = vmatprep.mubr.bf16.mxu0 %v9793_v58  ;;  %v2912_v50 = vsel %vm10959_vm14, %v7874_v6, %v2911_v7  ;;  %v7876_v19 = vrot.slane %v7827_v21, 9  ;;  %9097 = vmatpush3.bf16.msra.mxu0 %v9818_v62  ;;  %v7829_v12 = vcombine.low %v2678_v33, %v2678_v33  ;;  %v7830_v28 = vcombine.high %v2678_v33, %v2678_v33  ;;  %v5685_v6 = vld [vmem:[#allocation2 + $0x18] sm:$0x1f] }
 0x263   : > { %8865 = vmatmul.mubr.bf16.gmra.mrb[4].mxu1 %v7912_v59  ;;  %v7915_v35 = vcombine.low %v2908_v20, %v2912_v50  ;;  %v2916_v23 = vsel %vm10959_vm14, %v7875_v39, %v2915_v1  ;;  %v2919_v53 = vrot.slane %v7828_v51, 5  ;;  %v7831_v47 = vcombine.low %v2679_v10, %v2679_v10  ;;  %9098 = vmatprep.subr.bf16.mxu0 %v9830_v16  ;;  %v9840_v59 = vld [vmem:[%s10331_s27 + $0xe0] sm:$0xff]   ;;  %v9807_v51 = vld [vmem:[#allocation2 + $0xe0] ss:$8 sps:$4 sm:$0xff]  }
 0x264   : > { %8868 = vmatprep.mubr.bf16.mxu1 %v7913_v9  ;;  %8897 = vmatpush3.bf16.msra.mxu1 %v9816_v29  ;;  %v7832_v54 = vcombine.high %v2679_v10, %v2679_v10  ;;  %v7877_v56 = vrot.slane %v7829_v12, 9  ;;  %v2923_v38 = vrot.slane %v7830_v28, 5  ;;  %v7833_v55 = vcombine.low %v2680_v42, %v2680_v42  ;;  %v9817_v50 = vld [vmem:[#allocation2 + $0x100] ss:$8 sps:$4 sm:$0xff]  }
 0x265   : > { %v2920_v57 = vsel %vm10959_vm14, %v7876_v19, %v2919_v53  ;;  %v7878_v24 = vrot.slane %v7831_v47, 9  ;;  %v7834_v26 = vcombine.high %v2680_v42, %v2680_v42  ;;  %v7835_v45 = vcombine.low %v2681_v46, %v2681_v46  ;;  %8898 = vmatprep.subr.bf16.mxu1 %v9828_v27 }
 0x266   : > { %v11253_v15 = vcombine.low %v2916_v23, %v2920_v57  ;;  %v2924_v13 = vsel %vm10959_vm14, %v7877_v56, %v2923_v38  ;;  %v2927_v48 = vrot.slane %v7832_v54, 5  ;;  %v7836_v62 = vcombine.high %v2681_v46, %v2681_v46  ;;  %9099 = vmatpush3.bf16.msra.mxu0 %v9830_v16  ;;  %v5686_v54 = vld [vmem:[#allocation2 + $0x20] sm:$0x1f] }
 0x267   : > { %v7879_v61 = vrot.slane %v7833_v55, 9  ;;  %v2931_v0 = vrot.slane %v7834_v26, 5  ;;  %v7880_v3 = vrot.slane %v7835_v45, 9  ;;  %v7837_v8 = vcombine.low %v2682_v41, %v2682_v41  ;;  %9132 = vmatprep.subr.bf16.mxu0 %v11248_v36 }
 0x268   : > { %v2928_v32 = vsel %vm10959_vm14, %v7878_v24, %v2927_v48  ;;  %v2935_v25 = vrot.slane %v7836_v62, 5  ;;  %8899 = vmatpush3.bf16.msra.mxu1 %v9828_v27  ;;  %v7838_v9 = vcombine.high %v2682_v41, %v2682_v41  ;;  %v7839_v44 = vcombine.low %v2683_v4, %v2683_v4  ;;  %v9876_v27 = vld [vmem:[%s10331_s27 + $0xf0] sm:$0xff]  }
 0x269   : > { %9069 = vmatmul.mubr.bf16.gmra.mrb[16].mxu0 %v9795_v43  ;;  %v11260_v2 = vcombine.low %v2924_v13, %v2928_v32  ;;  %v2932_v22 = vsel %vm10959_vm14, %v7879_v61, %v2931_v0  ;;  %v7840_v29 = vcombine.high %v2683_v4, %v2683_v4  ;;  %v7881_v58 = vrot.slane %v7837_v8, 9  ;;  %8900 = vmatprep.subr.bf16.mxu1 %v9840_v59  ;;  %v5687_v43 = vld [vmem:[#allocation2 + $0x28] sm:$0x1f]  ;;  %v2686_v4 = vld [vmem:[#allocation2 + $0xf0] sm:$0x1e] }
 0x26a   : > { %9072 = vmatprep.mubr.bf16.mxu0 %v9805_v40  ;;  %v2936_v30 = vsel %vm10959_vm14, %v7880_v3, %v2935_v25  ;;  %v2939_v49 = vrot.slane %v7838_v9, 5  ;;  %v7882_v60 = vrot.slane %v7839_v44, 9  ;;  %v7841_v5 = vcombine.low %v2684_v63, %v2684_v63 }
 0x26b   : > { %8869 = vmatmul.mubr.bf16.gmra.mrb[8].mxu1 %v11238_v18  ;;  %v11268_v31 = vcombine.low %v2932_v22, %v2936_v30  ;;  %v2943_v14 = vrot.slane %v7840_v29, 5  ;;  %v7842_v33 = vcombine.high %v2684_v63, %v2684_v63  ;;  %v7843_v16 = vcombine.low %v2685_v37, %v2685_v37  ;;  %v9819_v63 = vld [vmem:[#allocation2 + $0x110] ss:$8 sps:$4 sm:$0xff]  }
 0x26c   : > { %8872 = vmatprep.mubr.bf16.mxu1 %v7915_v35  ;;  %v2940_v7 = vsel %vm10959_vm14, %v7881_v58, %v2939_v49  ;;  %v7844_v21 = vcombine.high %v2685_v37, %v2685_v37  ;;  %v7883_v10 = vrot.slane %v7841_v5, 9  ;;  %8901 = vmatpush3.bf16.msra.mxu1 %v9840_v59  ;;  %v8253_v20 = vcombine.low %v5684_v11, %v5684_v11  ;;  %v9886_v59 = vld [vmem:[%s10331_s27 + $0xf8] sm:$0xff]  }
 0x26d   : > { %v2944_v39 = vsel %vm10959_vm14, %v7882_v60, %v2943_v14  ;;  %v2947_v18 = vrot.slane %v7842_v33, 5  ;;  %v7884_v1 = vrot.slane %v7843_v16, 9  ;;  %v8254_v42 = vcombine.high %v5684_v11, %v5684_v11  ;;  %8902 = vmatprep.subr.bf16.mxu1 %v9858_v17  ;;  %v9829_v37 = vld [vmem:[#allocation2 + $0x120] ss:$8 sps:$4 sm:$0xff]   ;;  %v2687_v60 = vld [vmem:[#allocation2 + $0xf8] sm:$0x1e] }
 0x26e   : > { %v11275_v19 = vcombine.low %v2940_v7, %v2944_v39  ;;  %v2951_v12 = vrot.slane %v7844_v21, 5  ;;  %v8255_v28 = vcombine.low %v5685_v6, %v5685_v6  ;;  %v8256_v46 = vcombine.high %v5685_v6, %v5685_v6  ;;  %v2688_v16 = vld [vmem:[#allocation2 + $0x100] sm:$0x1e] }
 0x26f   : > { %v2948_v35 = vsel %vm10959_vm14, %v7883_v10, %v2947_v18  ;;  %v5877_v23 = vshrl.u32 %v8253_v20, 16  ;;  %v5880_v53 = vshll.u32 %v8253_v20, 16  ;;  %v5886_v47 = vshll.u32 %v8254_v42, 16 }
 0x270   : > { %v2952_v56 = vsel %vm10959_vm14, %v7884_v1, %v2951_v12  ;;  %v5891_v38 = vshrl.u32 %v8255_v28, 16  ;;  %v5894_v55 = vshll.u32 %v8255_v28, 16  ;;  %v5900_v41 = vshll.u32 %v8256_v46, 16  ;;  %8903 = vmatpush3.bf16.msra.mxu1 %v9858_v17  ;;  %v2689_v1 = vld [vmem:[#allocation2 + $0x108] sm:$0x1e]  ;;  %v11291_v28 = vld [vmem:[%s10331_s27 + $0x100] sm:$0xff]  }
 0x271   : > { %9073 = vmatmul.mubr.bf16.gmra.mrb[20].mxu0 %v9807_v51  ;;  %v11281_v57 = vcombine.low %v2948_v35, %v2952_v56  ;;  %v5879_v24 = vrot.slane %v5877_v23, 4  ;;  %v5882_v26 = vrot.slane %v5880_v53, 5  ;;  %v5888_v45 = vrot.slane %v5886_v47, 5  ;;  %8904 = vmatprep.subr.bf16.mxu1 %v9876_v27 }
 0x272   : > { %9076 = vmatprep.mubr.bf16.mxu0 %v9817_v50  ;;  %v5893_v40 = vrot.slane %v5891_v38, 4  ;;  %v5896_v13 = vrot.slane %v5894_v55, 5  ;;  %v5902_v48 = vrot.slane %v5900_v41, 5  ;;  %v8257_v62 = vcombine.low %v5686_v54, %v5686_v54  ;;  %v5688_v55 = vld [vmem:[#allocation2 + $0x30] sm:$0x1f] }
 0x273   : > { %8873 = vmatmul.mubr.bf16.gmra.mrb[12].mxu1 %v11253_v15  ;;  %v5883_v61 = vor.u32 %v5882_v26, %v5879_v24  ;;  %v8258_v0 = vcombine.high %v5686_v54, %v5686_v54  ;;  %v8259_v3 = vcombine.low %v5687_v43, %v5687_v43  ;;  %v8260_v8 = vcombine.high %v5687_v43, %v5687_v43  ;;  %v5689_v41 = vld [vmem:[#allocation2 + $0x38] sm:$0x1f] }
 0x274   : > { %8876 = vmatprep.mubr.bf16.mxu1 %v11260_v2  ;;  %v5897_v32 = vor.u32 %v5896_v13, %v5893_v40  ;;  %v5905_v25 = vshrl.u32 %v8257_v62, 16  ;;  %v5908_v9 = vshll.u32 %v8257_v62, 16  ;;  %v7845_v44 = vcombine.low %v2686_v4, %v2686_v4  ;;  %8905 = vmatpush3.bf16.msra.mxu1 %v9876_v27  ;;  %v9831_v43 = vld [vmem:[#allocation2 + $0x130] ss:$8 sps:$4 sm:$0xff]  }
 0x275   : > { %v5884_v22 = vrot.slane %v5883_v61, 4  ;;  %v5914_v29 = vshll.u32 %v8258_v0, 16  ;;  %v5919_v58 = vshrl.u32 %v8259_v3, 16  ;;  %v5922_v11 = vshll.u32 %v8259_v3, 16  ;;  %8906 = vmatprep.subr.bf16.mxu1 %v9886_v59  ;;  %v5691_v3 = vld [vmem:[#allocation2 + $0x48] sm:$0x1f] }
 0x276   : > { %v5898_v17 = vrot.slane %v5897_v32, 4  ;;  %v5907_v15 = vrot.slane %v5905_v25, 4  ;;  %v5910_v30 = vrot.slane %v5908_v9, 5  ;;  %v5928_v49 = vshll.u32 %v8260_v8, 16 }
 0x277   : > { %v5889_v5 = vsel %vm10859_vm11, %v5884_v22, %v5888_v45  ;;  %v5916_v2 = vrot.slane %v5914_v29, 5  ;;  %v5921_v14 = vrot.slane %v5919_v58, 4  ;;  %v5924_v33 = vrot.slane %v5922_v11, 5  ;;  %v5690_v45 = vld [vmem:[#allocation2 + $0x40] sm:$0x1f] }
 0x278   : > { %v5903_v6 = vsel %vm10859_vm11, %v5898_v17, %v5902_v48  ;;  %v5911_v7 = vor.u32 %v5910_v30, %v5907_v15  ;;  %v5930_v21 = vrot.slane %v5928_v49, 5  ;;  %v7846_v10 = vcombine.high %v2686_v4, %v2686_v4  ;;  %8907 = vmatpush3.bf16.msra.mxu1 %v9886_v59 }
 0x279   : > { %9077 = vmatmul.mubr.bf16.gmra.mrb[24].mxu0 %v9819_v63  ;;  %v8333_v20 = vcombine.low %v5889_v5, %v5903_v6  ;;  %v5925_v51 = vor.u32 %v5924_v33, %v5921_v14  ;;  %v7847_v39 = vcombine.low %v2687_v60, %v2687_v60  ;;  %v7848_v18 = vcombine.high %v2687_v60, %v2687_v60 }
 0x27a   : > { %9080 = vmatprep.mubr.bf16.mxu0 %v9829_v37  ;;  %v5912_v42 = vrot.slane %v5911_v7, 4  ;;  %v7885_v27 = vrot.slane %v7845_v44, 9  ;;  %v2955_v50 = vrot.slane %v7846_v10, 5  ;;  %v7849_v12 = vcombine.low %v2688_v16, %v2688_v16  ;;  %9180 = vmatprep.subr.bf16.mxu1 %v11291_v28  ;;  %v2690_v10 = vld [vmem:[#allocation2 + $0x110] sm:$0x1e] }
 0x27b   : > { %8877 = vmatmul.mubr.bf16.gmra.mrb[16].mxu1 %v11268_v31  ;;  %v5926_v46 = vrot.slane %v5925_v51, 4  ;;  %v7886_v35 = vrot.slane %v7847_v39, 9  ;;  %v2959_v23 = vrot.slane %v7848_v18, 5  ;;  %v7850_v53 = vcombine.high %v2688_v16, %v2688_v16 }
 0x27c   : > { %8880 = vmatprep.mubr.bf16.mxu1 %v11275_v19  ;;  %v11298_v47 = vsel %vm10859_vm11, %v5912_v42, %v5916_v2  ;;  %v2956_v54 = vsel %vm10959_vm14, %v7885_v27, %v2955_v50  ;;  %v7851_v56 = vcombine.low %v2689_v1, %v2689_v1  ;;  %v7852_v38 = vcombine.high %v2689_v1, %v2689_v1  ;;  %v9863_v42 = vld [vmem:[%s10331_s27 + $0x208] sm:$0xff]  }
 0x27d   : > { %v5931_v31 = vsel %vm10859_vm11, %v5926_v46, %v5930_v21  ;;  %v2960_v24 = vsel %vm10959_vm14, %v7886_v35, %v2959_v23  ;;  %v7887_v26 = vrot.slane %v7849_v12, 9  ;;  %v2963_v19 = vrot.slane %v7850_v53, 5 }
 0x27e   : > { %v8334_v4 = vcombine.low %v11298_v47, %v5931_v31  ;;  %v7921_v59 = vcombine.low %v2956_v54, %v2960_v24  ;;  %v7888_v40 = vrot.slane %v7851_v56, 9  ;;  %v2967_v13 = vrot.slane %v7852_v38, 5 }
 0x27f   : > { %v2964_v48 = vsel %vm10959_vm14, %v7887_v26, %v2963_v19  ;;  %v8261_v62 = vcombine.low %v5688_v55, %v5688_v55  ;;  %v8262_v61 = vcombine.high %v5688_v55, %v5688_v55  ;;  %v8263_v0 = vcombine.low %v5689_v41, %v5689_v41  ;;  %v2692_v55 = vld [vmem:[#allocation2 + $0x120] sm:$0x1e]  ;;  %v2693_v26 = vld [vmem:[#allocation2 + $0x128] sm:$0x1e] }
 0x280   : > { %v2968_v8 = vsel %vm10959_vm14, %v7888_v40, %v2967_v13  ;;  %v8264_v63 = vcombine.high %v5689_v41, %v5689_v41  ;;  %v8265_v32 = vcombine.low %v5690_v45, %v5690_v45  ;;  %v8266_v25 = vcombine.high %v5690_v45, %v5690_v45  ;;  %v9881_v40 = vld [vmem:[%s10331_s27 + $0x210] sm:$0xff]  }
 0x281   : > { %9081 = vmatmul.mubr.bf16.gmra.mrb[28].mxu0 %v9831_v43  ;;  %v7922_v9 = vcombine.low %v2964_v48, %v2968_v8  ;;  %v5933_v44 = vshrl.u32 %v8261_v62, 16  ;;  %v5936_v37 = vshll.u32 %v8261_v62, 16  ;;  %v5942_v22 = vshll.u32 %v8262_v61, 16 }
 0x282   : > { %9100 = vmatprep.mubr.bf16.mxu0 %v8333_v20  ;;  %v5947_v29 = vshrl.u32 %v8263_v0, 16  ;;  %v5950_v58 = vshll.u32 %v8263_v0, 16  ;;  %v5956_v11 = vshll.u32 %v8264_v63, 16  ;;  %v8267_v17 = vcombine.low %v5691_v3, %v5691_v3  ;;  %v5692_v63 = vld [vmem:[#allocation2 + $0x60] sm:$0x1f] }
 0x283   : > { %8881 = vmatmul.mubr.bf16.gmra.mrb[20].mxu1 %v11281_v57  ;;  %v5935_v15 = vrot.slane %v5933_v44, 4  ;;  %v5938_v30 = vrot.slane %v5936_v37, 5  ;;  %v5944_v49 = vrot.slane %v5942_v22, 5  ;;  %v8268_v60 = vcombine.high %v5691_v3, %v5691_v3  ;;  %v2691_v57 = vld [vmem:[#allocation2 + $0x118] sm:$0x1e] }
 0x284   : > { %8884 = vmatprep.mubr.bf16.mxu1 %v7921_v59  ;;  %v5949_v5 = vrot.slane %v5947_v29, 4  ;;  %v5952_v2 = vrot.slane %v5950_v58, 5  ;;  %v5958_v14 = vrot.slane %v5956_v11, 5  ;;  %v5961_v33 = vshrl.u32 %v8265_v32, 16  ;;  %v5694_v22 = vld [vmem:[#allocation2 + $0x70] sm:$0x1f] }
 0x285   : > { %v5939_v16 = vor.u32 %v5938_v30, %v5935_v15  ;;  %v5964_v6 = vshll.u32 %v8265_v32, 16  ;;  %v5970_v7 = vshll.u32 %v8266_v25, 16  ;;  %v5975_v21 = vshrl.u32 %v8267_v17, 16  ;;  %v5693_v32 = vld [vmem:[#allocation2 + $0x68] sm:$0x1f] }
 0x286   : > { %v5953_v20 = vor.u32 %v5952_v2, %v5949_v5  ;;  %v5963_v51 = vrot.slane %v5961_v33, 4  ;;  %v5978_v39 = vshll.u32 %v8267_v17, 16  ;;  %v5984_v18 = vshll.u32 %v8268_v60, 16  ;;  %v9893_v15 = vld [vmem:[%s10331_s27 + $0x218] sm:$0xff]   ;;  %v5695_v33 = vld [vmem:[#allocation2 + $0x78] sm:$0x1f] }
 0x287   : > { %v5940_v1 = vrot.slane %v5939_v16, 4  ;;  %v5966_v27 = vrot.slane %v5964_v6, 5  ;;  %v5972_v50 = vrot.slane %v5970_v7, 5  ;;  %v5977_v12 = vrot.slane %v5975_v21, 4  ;;  %v9887_v6 = vld [vmem:[#allocation2 + $0x8] ss:$8 sps:$4 sm:$0xff]  }
 0x288   : > { %v5954_v46 = vrot.slane %v5953_v20, 4  ;;  %v5980_v35 = vrot.slane %v5978_v39, 5  ;;  %v5986_v23 = vrot.slane %v5984_v18, 5  ;;  %v7853_v53 = vcombine.low %v2690_v10, %v2690_v10 }
 0x289   : > { %9101 = vmatmul.mubr.bf16.vlgmr.msra.gmra.mrb[0].mxu0 %v8334_v4  ;;  %v5945_v47 = vsel %vm10859_vm11, %v5940_v1, %v5944_v49  ;;  %v5967_v54 = vor.u32 %v5966_v27, %v5963_v51  ;;  %v7854_v56 = vcombine.high %v2690_v10, %v2690_v10  ;;  %v7855_v38 = vcombine.low %v2691_v57, %v2691_v57  ;;  %v9904_v1 = vld [vmem:[%s10331_s27 + $0x220] sm:$0xff]  }
 0x28a   : > { %9133 = vmatpush3.bf16.msra.mxu0 %v11248_v36  ;;  %v5959_v41 = vsel %vm10859_vm11, %v5954_v46, %v5958_v14  ;;  %v5981_v43 = vor.u32 %v5980_v35, %v5977_v12  ;;  %v7856_v31 = vcombine.high %v2691_v57, %v2691_v57  ;;  %v7889_v24 = vrot.slane %v7853_v53, 9 }
 0x28b   : > { %8885 = vmatmul.mubr.bf16.gmra.mrb[24].mxu1 %v7922_v9  ;;  %v8335_v19 = vcombine.low %v5945_v47, %v5959_v41  ;;  %9134 = vmatprep.subr.bf16.mxu0 %v9863_v42  ;;  %v5968_v45 = vrot.slane %v5967_v54, 4  ;;  %v2971_v4 = vrot.slane %v7854_v56, 5  ;;  %v7890_v59 = vrot.slane %v7855_v38, 9 }
 0x28c   : > { %v5982_v13 = vrot.slane %v5981_v43, 4  ;;  %v2975_v48 = vrot.slane %v7856_v31, 5  ;;  %v7857_v62 = vcombine.low %v2692_v55, %v2692_v55  ;;  %v7858_v61 = vcombine.high %v2692_v55, %v2692_v55  ;;  %v5696_v55 = vld [vmem:[#allocation2 + $0x80] sm:$0x1f] }
 0x28d   : > { %9104 = vmatprep.mubr.bf16.mxu0 %v8335_v19  ;;  %v5973_v36 = vsel %vm10859_vm11, %v5968_v45, %v5972_v50  ;;  %v2972_v0 = vsel %vm10959_vm14, %v7889_v24, %v2971_v4  ;;  %v7859_v3 = vcombine.low %v2693_v26, %v2693_v26  ;;  %v7860_v8 = vcombine.high %v2693_v26, %v2693_v26  ;;  %v5697_v26 = vld [vmem:[#allocation2 + $0x88] sm:$0x1f]  ;;  %v9915_v19 = vld [vmem:[%s10331_s27 + $0x228] sm:$0xff]  }
 0x28e   : > { %v5987_v25 = vsel %vm10859_vm11, %v5982_v13, %v5986_v23  ;;  %9135 = vmatpush3.bf16.msra.mxu0 %v9863_v42  ;;  %v2976_v9 = vsel %vm10959_vm14, %v7890_v59, %v2975_v48  ;;  %v7891_v44 = vrot.slane %v7857_v62, 9  ;;  %v2979_v37 = vrot.slane %v7858_v61, 5  ;;  %v9888_v13 = vld [vmem:[#allocation2 + $0x18] ss:$8 sps:$4 sm:$0xff]  }
 0x28f   : > { %v8336_v29 = vcombine.low %v5973_v36, %v5987_v25  ;;  %v7923_v58 = vcombine.low %v2972_v0, %v2976_v9  ;;  %v7892_v11 = vrot.slane %v7859_v3, 9  ;;  %v2983_v17 = vrot.slane %v7860_v8, 5  ;;  %9136 = vmatprep.subr.bf16.mxu0 %v9881_v40  ;;  %v9898_v0 = vld [vmem:[#allocation2 + $0x28] ss:$8 sps:$4 sm:$0xff]  }
 0x290   : > { %v2980_v30 = vsel %vm10959_vm14, %v7891_v44, %v2979_v37  ;;  %v8269_v49 = vcombine.low %v5692_v63, %v5692_v63  ;;  %v8270_v60 = vcombine.high %v5692_v63, %v5692_v63  ;;  %v8271_v5 = vcombine.low %v5693_v32, %v5693_v32 }
 0x291   : > { %9105 = vmatmul.mubr.bf16.gmra.mrb[4].mxu0 %v8336_v29  ;;  %8888 = vmatprep.mubr.bf16.mxu1 %v7923_v58  ;;  %v2984_v2 = vsel %vm10959_vm14, %v7892_v11, %v2983_v17  ;;  %v8272_v14 = vcombine.high %v5693_v32, %v5693_v32  ;;  %v8273_v16 = vcombine.low %v5694_v22, %v5694_v22  ;;  %v9926_v17 = vld [vmem:[%s10331_s27 + $0x230] sm:$0xff]  }
 0x292   : > { %v7924_v7 = vcombine.low %v2980_v30, %v2984_v2  ;;  %v5989_v21 = vshrl.u32 %v8269_v49, 16  ;;  %v5992_v10 = vshll.u32 %v8269_v49, 16  ;;  %v5998_v20 = vshll.u32 %v8270_v60, 16  ;;  %9137 = vmatpush3.bf16.msra.mxu0 %v9881_v40 }
 0x293   : > { %v6003_v51 = vshrl.u32 %v8271_v5, 16  ;;  %v6006_v39 = vshll.u32 %v8271_v5, 16  ;;  %v6012_v18 = vshll.u32 %v8272_v14, 16  ;;  %v8274_v57 = vcombine.high %v5694_v22, %v5694_v22  ;;  %9138 = vmatprep.subr.bf16.mxu0 %v9893_v15  ;;  %v5698_v5 = vld [vmem:[#allocation2 + $0x90] sm:$0x1f] }
 0x294   : > { %8889 = vmatmul.mubr.bf16.gmra.mrb[28].mxu1 %v7924_v7  ;;  %v5991_v42 = vrot.slane %v5989_v21, 4  ;;  %v5994_v27 = vrot.slane %v5992_v10, 5  ;;  %v6000_v50 = vrot.slane %v5998_v20, 5  ;;  %v8275_v12 = vcombine.low %v5695_v33, %v5695_v33  ;;  %v10050_v7 = vld [vmem:[%s10331_s27 + $0x108] sm:$0xff]  }
 0x295   : > { %v6005_v46 = vrot.slane %v6003_v51, 4  ;;  %v6008_v35 = vrot.slane %v6006_v39, 5  ;;  %v6014_v23 = vrot.slane %v6012_v18, 5  ;;  %v8276_v53 = vcombine.high %v5695_v33, %v5695_v33  ;;  %8908 = vmatprep.mubr.bf16.mxu1 %v9887_v6  ;;  %v5699_v6 = vld [vmem:[#allocation2 + $0x98] sm:$0x1f] }
 0x296   : > { %v5995_v47 = vor.u32 %v5994_v27, %v5991_v42  ;;  %v6017_v54 = vshrl.u32 %v8273_v16, 16  ;;  %v6020_v56 = vshll.u32 %v8273_v16, 16  ;;  %v6026_v38 = vshll.u32 %v8274_v57, 16  ;;  %9139 = vmatpush3.bf16.msra.mxu0 %v9893_v15  ;;  %v5700_v39 = vld [vmem:[#allocation2 + $0xb0] sm:$0x1f]  ;;  %v9937_v27 = vld [vmem:[%s10331_s27 + $0x238] sm:$0xff]  }
 0x297   : > { %v6009_v41 = vor.u32 %v6008_v35, %v6005_v46  ;;  %v6031_v43 = vshrl.u32 %v8275_v12, 16  ;;  %v6034_v31 = vshll.u32 %v8275_v12, 16  ;;  %v6040_v24 = vshll.u32 %v8276_v53, 16  ;;  %9140 = vmatprep.subr.bf16.mxu0 %v9904_v1  ;;  %v9899_v42 = vld [vmem:[#allocation2 + $0x38] ss:$8 sps:$4 sm:$0xff]  }
 0x298   : > { %v5996_v45 = vrot.slane %v5995_v47, 4  ;;  %v6019_v4 = vrot.slane %v6017_v54, 4  ;;  %v6022_v59 = vrot.slane %v6020_v56, 5  ;;  %v6028_v40 = vrot.slane %v6026_v38, 5  ;;  %v10051_v38 = vld [vmem:[%s10331_s27 + $0x110] sm:$0xff]  }
 0x299   : > { %v6010_v48 = vrot.slane %v6009_v41, 4  ;;  %v6033_v62 = vrot.slane %v6031_v43, 4  ;;  %v6036_v61 = vrot.slane %v6034_v31, 5  ;;  %v6042_v36 = vrot.slane %v6040_v24, 5 }
 0x29a   : > { %v6001_v3 = vsel %vm10859_vm11, %v5996_v45, %v6000_v50  ;;  %v6023_v8 = vor.u32 %v6022_v59, %v6019_v4  ;;  %v8277_v63 = vcombine.low %v5696_v55, %v5696_v55  ;;  %v8278_v32 = vcombine.high %v5696_v55, %v5696_v55  ;;  %9141 = vmatpush3.bf16.msra.mxu0 %v9904_v1  ;;  %v5701_v4 = vld [vmem:[#allocation2 + $0xb8] sm:$0x1f] }
 0x29b   : > { %v6015_v25 = vsel %vm10859_vm11, %v6010_v48, %v6014_v23  ;;  %v6037_v9 = vor.u32 %v6036_v61, %v6033_v62  ;;  %v8279_v44 = vcombine.low %v5697_v26, %v5697_v26  ;;  %v8280_v37 = vcombine.high %v5697_v26, %v5697_v26  ;;  %9142 = vmatprep.subr.bf16.mxu0 %v9915_v19  ;;  %v9909_v23 = vld [vmem:[#allocation2 + $0x58] ss:$8 sps:$4 sm:$0xff]  }
 0x29c   : > { %v8337_v22 = vcombine.low %v6001_v3, %v6015_v25  ;;  %v6024_v29 = vrot.slane %v6023_v8, 4  ;;  %8909 = vmatmul.mubr.bf16.vlgmr.msra.gmra.mrb[0].mxu1 %v9888_v13  ;;  %v6045_v58 = vshrl.u32 %v8277_v63, 16  ;;  %v6048_v11 = vshll.u32 %v8277_v63, 16  ;;  %v5702_v62 = vld [vmem:[#allocation2 + $0xc0] sm:$0x1f]  ;;  %v10052_v8 = vld [vmem:[%s10331_s27 + $0x118] sm:$0xff]  }
 0x29d   : > { %v6038_v15 = vrot.slane %v6037_v9, 4  ;;  %v6054_v30 = vshll.u32 %v8278_v32, 16  ;;  %v6059_v49 = vshrl.u32 %v8279_v44, 16  ;;  %v6062_v60 = vshll.u32 %v8279_v44, 16  ;;  %8912 = vmatprep.mubr.bf16.mxu1 %v9898_v0  ;;  %9188 = vmatpush3.bf16.msra.mxu1 %v11291_v28  ;;  %v5703_v44 = vld [vmem:[#allocation2 + $0xc8] sm:$0x1f] }
 0x29e   : > { %9108 = vmatprep.mubr.bf16.mxu0 %v8337_v22  ;;  %v6029_v2 = vsel %vm10859_vm11, %v6024_v29, %v6028_v40  ;;  %v6047_v14 = vrot.slane %v6045_v58, 4  ;;  %v6050_v33 = vrot.slane %v6048_v11, 5  ;;  %v6068_v16 = vshll.u32 %v8280_v37, 16  ;;  %9181 = vmatprep.subr.bf16.mxu1 %v10050_v7  ;;  %v9910_v11 = vld [vmem:[#allocation2 + $0x68] ss:$8 sps:$4 sm:$0xff]  }
 0x29f   : > { %v6043_v21 = vsel %vm10859_vm11, %v6038_v15, %v6042_v36  ;;  %v6056_v10 = vrot.slane %v6054_v30, 5  ;;  %v6061_v20 = vrot.slane %v6059_v49, 4  ;;  %v6064_v51 = vrot.slane %v6062_v60, 5  ;;  %9143 = vmatpush3.bf16.msra.mxu0 %v9915_v19  ;;  %v9920_v60 = vld [vmem:[#allocation2 + $0x78] ss:$8 sps:$4 sm:$0xff]  }
 0x2a0   : > { %v8338_v28 = vcombine.low %v6029_v2, %v6043_v21  ;;  %v6051_v18 = vor.u32 %v6050_v33, %v6047_v14  ;;  %v6070_v57 = vrot.slane %v6068_v16, 5  ;;  %v8281_v1 = vcombine.low %v5698_v5, %v5698_v5  ;;  %9144 = vmatprep.subr.bf16.mxu0 %v9926_v17  ;;  %v10053_v16 = vld [vmem:[%s10331_s27 + $0x120] sm:$0xff]  }
 0x2a1   : > { %v6065_v50 = vor.u32 %v6064_v51, %v6061_v20  ;;  %v8282_v12 = vcombine.high %v5698_v5, %v5698_v5  ;;  %v8283_v46 = vcombine.low %v5699_v6, %v5699_v6  ;;  %v8284_v35 = vcombine.high %v5699_v6, %v5699_v6  ;;  %9189 = vmatpush3.bf16.msra.mxu1 %v10050_v7 }
 0x2a2   : > { %9109 = vmatmul.mubr.bf16.gmra.mrb[8].mxu0 %v8338_v28  ;;  %v6052_v53 = vrot.slane %v6051_v18, 4  ;;  %v6073_v47 = vshrl.u32 %v8281_v1, 16  ;;  %v6076_v54 = vshll.u32 %v8281_v1, 16  ;;  %v8285_v56 = vcombine.low %v5700_v39, %v5700_v39  ;;  %9182 = vmatprep.subr.bf16.mxu1 %v10051_v38 }
 0x2a3   : > { %v6066_v55 = vrot.slane %v6065_v50, 4  ;;  %v6082_v41 = vshll.u32 %v8282_v12, 16  ;;  %v6087_v43 = vshrl.u32 %v8283_v46, 16  ;;  %v6090_v31 = vshll.u32 %v8283_v46, 16  ;;  %9145 = vmatpush3.bf16.msra.mxu0 %v9926_v17 }
 0x2a4   : > { %v6057_v24 = vsel %vm10859_vm11, %v6052_v53, %v6056_v10  ;;  %v6075_v26 = vrot.slane %v6073_v47, 4  ;;  %v6078_v19 = vrot.slane %v6076_v54, 5  ;;  %v6096_v45 = vshll.u32 %v8284_v35, 16  ;;  %8913 = vmatmul.mubr.bf16.gmra.mrb[4].mxu1 %v9899_v42  ;;  %9146 = vmatprep.subr.bf16.mxu0 %v9937_v27  ;;  %v5704_v35 = vld [vmem:[#allocation2 + $0xd0] sm:$0x1f] }
 0x2a5   : > { %v6071_v59 = vsel %vm10859_vm11, %v6066_v55, %v6070_v57  ;;  %v6084_v40 = vrot.slane %v6082_v41, 5  ;;  %v6089_v13 = vrot.slane %v6087_v43, 4  ;;  %v6092_v48 = vrot.slane %v6090_v31, 5  ;;  %8916 = vmatprep.mubr.bf16.mxu1 %v9909_v23  ;;  %9190 = vmatpush3.bf16.msra.mxu1 %v10051_v38  ;;  %v10054_v23 = vld [vmem:[%s10331_s27 + $0x128] sm:$0xff]  }
 0x2a6   : > { %v8339_v61 = vcombine.low %v6057_v24, %v6071_v59  ;;  %v6079_v36 = vor.u32 %v6078_v19, %v6075_v26  ;;  %v6098_v0 = vrot.slane %v6096_v45, 5  ;;  %v8286_v3 = vcombine.high %v5700_v39, %v5700_v39  ;;  %9183 = vmatprep.subr.bf16.mxu1 %v10052_v8  ;;  %v5705_v38 = vld [vmem:[#allocation2 + $0xd8] sm:$0x1f]  ;;  %v9921_v24 = vld [vmem:[#allocation2 + $0x88] ss:$8 sps:$4 sm:$0xff]  }
 0x2a7   : > { %v6093_v63 = vor.u32 %v6092_v48, %v6089_v13  ;;  %v8287_v32 = vcombine.low %v5701_v4, %v5701_v4  ;;  %v8288_v25 = vcombine.high %v5701_v4, %v5701_v4  ;;  %v6101_v9 = vshrl.u32 %v8285_v56, 16  ;;  %9147 = vmatpush3.bf16.msra.mxu0 %v9937_v27  ;;  %v9931_v59 = vld [vmem:[#allocation2 + $0xa8] ss:$8 sps:$4 sm:$0xff]  }
 0x2a8   : > { %9112 = vmatprep.mubr.bf16.mxu0 %v8339_v61  ;;  %v6080_v37 = vrot.slane %v6079_v36, 4  ;;  %v6104_v22 = vshll.u32 %v8285_v56, 16  ;;  %v6110_v29 = vshll.u32 %v8286_v3, 16  ;;  %v8289_v58 = vcombine.low %v5702_v62, %v5702_v62  ;;  %v10055_v61 = vld [vmem:[%s10331_s27 + $0x130] sm:$0xff]  }
 0x2a9   : > { %v6094_v17 = vrot.slane %v6093_v63, 4  ;;  %v6103_v15 = vrot.slane %v6101_v9, 4  ;;  %v6115_v30 = vshrl.u32 %v8287_v32, 16  ;;  %v6118_v49 = vshll.u32 %v8287_v32, 16  ;;  %9191 = vmatpush3.bf16.msra.mxu1 %v10052_v8 }
 0x2aa   : > { %v6085_v5 = vsel %vm10859_vm11, %v6080_v37, %v6084_v40  ;;  %v6106_v2 = vrot.slane %v6104_v22, 5  ;;  %v6112_v14 = vrot.slane %v6110_v29, 5  ;;  %v6124_v33 = vshll.u32 %v8288_v25, 16  ;;  %9184 = vmatprep.subr.bf16.mxu1 %v10053_v16 }
 0x2ab   : > { %v6099_v6 = vsel %vm10859_vm11, %v6094_v17, %v6098_v0  ;;  %v6117_v7 = vrot.slane %v6115_v30, 4  ;;  %v6120_v21 = vrot.slane %v6118_v49, 5  ;;  %v8290_v10 = vcombine.high %v5702_v62, %v5702_v62 }
 0x2ac   : > { %v8340_v20 = vcombine.low %v6085_v5, %v6099_v6  ;;  %v6107_v51 = vor.u32 %v6106_v2, %v6103_v15  ;;  %v6126_v39 = vrot.slane %v6124_v33, 5  ;;  %v8291_v28 = vcombine.low %v5703_v44, %v5703_v44  ;;  %8917 = vmatmul.mubr.bf16.gmra.mrb[8].mxu1 %v9910_v11  ;;  %v5707_v11 = vld [vmem:[#allocation2 + $0xe8] sm:$0x1f] }
 0x2ad   : > { %v6121_v18 = vor.u32 %v6120_v21, %v6117_v7  ;;  %v8292_v57 = vcombine.high %v5703_v44, %v5703_v44  ;;  %v6129_v1 = vshrl.u32 %v8289_v58, 16  ;;  %v6132_v42 = vshll.u32 %v8289_v58, 16  ;;  %8920 = vmatprep.mubr.bf16.mxu1 %v9920_v60  ;;  %9192 = vmatpush3.bf16.msra.mxu1 %v10053_v16  ;;  %v5706_v44 = vld [vmem:[#allocation2 + $0xe0] sm:$0x1f]  ;;  %v10056_v5 = vld [vmem:[%s10331_s27 + $0x138] sm:$0xff]   ;;  %s11503_s27 = sld [smem:[#allocation7 + %s10264_s0]] }
 0x2ae   : > { %9113 = vmatmul.mubr.bf16.gmra.mrb[12].mxu0 %v8340_v20  ;;  %v6108_v27 = vrot.slane %v6107_v51, 4  ;;  %v6138_v50 = vshll.u32 %v8290_v10, 16  ;;  %v6143_v12 = vshrl.u32 %v8291_v28, 16  ;;  %v6146_v46 = vshll.u32 %v8291_v28, 16  ;;  %9185 = vmatprep.subr.bf16.mxu1 %v10054_v23  ;;  %v5708_v60 = vld [vmem:[#allocation2 + $0x100] sm:$0x1f] }
 0x2af   : > { %v6122_v53 = vrot.slane %v6121_v18, 4  ;;  %v6131_v47 = vrot.slane %v6129_v1, 4  ;;  %v6134_v54 = vrot.slane %v6132_v42, 5  ;;  %v6152_v56 = vshll.u32 %v8292_v57, 16  ;;  %v9932_v20 = vld [vmem:[#allocation2 + $0xb8] ss:$8 sps:$4 sm:$0xff]  }
 0x2b0   : > { %v6113_v55 = vsel %vm10859_vm11, %v6108_v27, %v6112_v14  ;;  %v6140_v41 = vrot.slane %v6138_v50, 5  ;;  %v6145_v43 = vrot.slane %v6143_v12, 4  ;;  %v6148_v31 = vrot.slane %v6146_v46, 5  ;;  %v9942_v57 = vld [vmem:[#allocation2 + $0xc8] ss:$8 sps:$4 sm:$0xff]  }
 0x2b1   : > { %v6127_v26 = vsel %vm10859_vm11, %v6122_v53, %v6126_v39  ;;  %v6135_v19 = vor.u32 %v6134_v54, %v6131_v47  ;;  %v6154_v45 = vrot.slane %v6152_v56, 5  ;;  %v8293_v4 = vcombine.low %v5704_v35, %v5704_v35  ;;  %9193 = vmatpush3.bf16.msra.mxu1 %v10054_v23  ;;  %v5709_v53 = vld [vmem:[#allocation2 + $0x108] sm:$0x1f] }
 0x2b2   : > { %v8341_v40 = vcombine.low %v6113_v55, %v6127_v26  ;;  %v6149_v13 = vor.u32 %v6148_v31, %v6145_v43  ;;  %v8294_v48 = vcombine.high %v5704_v35, %v5704_v35  ;;  %v8295_v62 = vcombine.low %v5705_v38, %v5705_v38  ;;  %9186 = vmatprep.subr.bf16.mxu1 %v10055_v61  ;;  %v5710_v55 = vld [vmem:[#allocation2 + $0x110] sm:$0x1f] }
 0x2b3   : > { %v6136_v36 = vrot.slane %v6135_v19, 4  ;;  %v8296_v0 = vcombine.high %v5705_v38, %v5705_v38  ;;  %v6157_v3 = vshrl.u32 %v8293_v4, 16  ;;  %v6160_v8 = vshll.u32 %v8293_v4, 16  ;;  %s8493_s24 = sshll.u32 %s11503_s27, 8 }
 0x2b4   : > { %9116 = vmatprep.mubr.bf16.mxu0 %v8341_v40  ;;  %v6150_v63 = vrot.slane %v6149_v13, 4  ;;  %v6166_v32 = vshll.u32 %v8294_v48, 16  ;;  %v6171_v25 = vshrl.u32 %v8295_v62, 16  ;;  %v6174_v9 = vshll.u32 %v8295_v62, 16  ;;  %8921 = vmatmul.mubr.bf16.gmra.mrb[12].mxu1 %v9921_v24  ;;  %v5711_v48 = vld [vmem:[#allocation2 + $0x118] sm:$0x1f] }
 0x2b5   : > { %v6141_v37 = vsel %vm10859_vm11, %v6136_v36, %v6140_v41  ;;  %v6159_v22 = vrot.slane %v6157_v3, 4  ;;  %v6162_v29 = vrot.slane %v6160_v8, 5  ;;  %v6180_v58 = vshll.u32 %v8296_v0, 16  ;;  %8924 = vmatprep.mubr.bf16.mxu1 %v9931_v59  ;;  %9194 = vmatpush3.bf16.msra.mxu1 %v10055_v61  ;;  %v9943_v8 = vld [vmem:[#allocation2 + $0xd8] ss:$8 sps:$4 sm:$0xff]   ;;  %s11515_s16 = scalar_lea.vmem [#allocation11], %s8493_s24 }
 0x2b6   : > { %v6155_v17 = vsel %vm10859_vm11, %v6150_v63, %v6154_v45  ;;  %v6168_v15 = vrot.slane %v6166_v32, 5  ;;  %v6173_v30 = vrot.slane %v6171_v25, 4  ;;  %v6176_v49 = vrot.slane %v6174_v9, 5  ;;  %9187 = vmatprep.subr.bf16.mxu1 %v10056_v5 }
 0x2b7   : > { %v8342_v2 = vcombine.low %v6141_v37, %v6155_v17  ;;  %v6163_v14 = vor.u32 %v6162_v29, %v6159_v22  ;;  %v6182_v33 = vrot.slane %v6180_v58, 5  ;;  %v8297_v16 = vcombine.low %v5706_v44, %v5706_v44 }
 0x2b8   : > { %v6177_v6 = vor.u32 %v6176_v49, %v6173_v30  ;;  %v8298_v7 = vcombine.high %v5706_v44, %v5706_v44  ;;  %v8299_v21 = vcombine.low %v5707_v11, %v5707_v11  ;;  %v8300_v10 = vcombine.high %v5707_v11, %v5707_v11  ;;  %v9952_v44 = vld [vmem:[#allocation2 + $0xf8] ss:$8 sps:$4 sm:$0xff]  }
 0x2b9   : > { %9117 = vmatmul.mubr.bf16.gmra.mrb[16].mxu0 %v8342_v2  ;;  %v6164_v51 = vrot.slane %v6163_v14, 4  ;;  %v6185_v39 = vshrl.u32 %v8297_v16, 16  ;;  %v6188_v28 = vshll.u32 %v8297_v16, 16  ;;  %v8301_v18 = vcombine.low %v5708_v60, %v5708_v60  ;;  %9195 = vmatpush3.bf16.msra.mxu1 %v10056_v5 }
 0x2ba   : > { %v6178_v1 = vrot.slane %v6177_v6, 4  ;;  %v6194_v42 = vshll.u32 %v8298_v7, 16  ;;  %v6199_v27 = vshrl.u32 %v8299_v21, 16  ;;  %v6202_v50 = vshll.u32 %v8299_v21, 16  ;;  %v5712_v7 = vld [vmem:[#allocation2 + $0x120] sm:$0x1f] }
 0x2bb   : > { %v6169_v12 = vsel %vm10859_vm11, %v6164_v51, %v6168_v15  ;;  %v6187_v46 = vrot.slane %v6185_v39, 4  ;;  %v6190_v35 = vrot.slane %v6188_v28, 5  ;;  %v6208_v23 = vshll.u32 %v8300_v10, 16  ;;  %v5713_v39 = vld [vmem:[#allocation2 + $0x128] sm:$0x1f] }
 0x2bc   : > { %v6183_v47 = vsel %vm10859_vm11, %v6178_v1, %v6182_v33  ;;  %v6196_v54 = vrot.slane %v6194_v42, 5  ;;  %v6201_v56 = vrot.slane %v6199_v27, 4  ;;  %v6204_v38 = vrot.slane %v6202_v50, 5  ;;  %8925 = vmatmul.mubr.bf16.gmra.mrb[16].mxu1 %v9932_v20 }
 0x2bd   : > { %v8343_v41 = vcombine.low %v6169_v12, %v6183_v47  ;;  %v6191_v43 = vor.u32 %v6190_v35, %v6187_v46  ;;  %v6210_v31 = vrot.slane %v6208_v23, 5  ;;  %v8302_v24 = vcombine.high %v5708_v60, %v5708_v60  ;;  %8928 = vmatprep.mubr.bf16.mxu1 %v9942_v57  ;;  %v9953_v46 = vld [vmem:[#allocation2 + $0x108] ss:$8 sps:$4 sm:$0xff]  }
 0x2be   : > { %v6205_v26 = vor.u32 %v6204_v38, %v6201_v56  ;;  %v8303_v19 = vcombine.low %v5709_v53, %v5709_v53  ;;  %v8304_v45 = vcombine.high %v5709_v53, %v5709_v53  ;;  %v6213_v4 = vshrl.u32 %v8301_v18, 16 }
 0x2bf   : > { %9120 = vmatprep.mubr.bf16.mxu0 %v8343_v41  ;;  %v6192_v59 = vrot.slane %v6191_v43, 4  ;;  %v6216_v40 = vshll.u32 %v8301_v18, 16  ;;  %v6222_v13 = vshll.u32 %v8302_v24, 16  ;;  %v8305_v62 = vcombine.low %v5710_v55, %v5710_v55 }
 0x2c0   : > { %v6206_v61 = vrot.slane %v6205_v26, 4  ;;  %v6215_v36 = vrot.slane %v6213_v4, 4  ;;  %v6227_v0 = vshrl.u32 %v8303_v19, 16  ;;  %v6230_v3 = vshll.u32 %v8303_v19, 16  ;;  %v5714_v19 = vld [vmem:[#allocation2 + $0x130] sm:$0x1f] }
 0x2c1   : > { %v6197_v63 = vsel %vm10859_vm11, %v6192_v59, %v6196_v54  ;;  %v6218_v32 = vrot.slane %v6216_v40, 5  ;;  %v6224_v25 = vrot.slane %v6222_v13, 5  ;;  %v6236_v9 = vshll.u32 %v8304_v45, 16  ;;  %v9962_v54 = vld [vmem:[#allocation2 + $0x118] ss:$8 sps:$4 sm:$0xff]  }
 0x2c2   : > { %v6211_v37 = vsel %vm10859_vm11, %v6206_v61, %v6210_v31  ;;  %v6229_v22 = vrot.slane %v6227_v0, 4  ;;  %v6232_v29 = vrot.slane %v6230_v3, 5  ;;  %v8306_v58 = vcombine.high %v5710_v55, %v5710_v55  ;;  %v5715_v13 = vld [vmem:[#allocation2 + $0x138] sm:$0x1f]  ;;  %v6646_v0 = vld [vmem:[#allocation2 + $0x10] sm:$0x1e] }
 0x2c3   : > { %v8344_v11 = vcombine.low %v6197_v63, %v6211_v37  ;;  %v6219_v17 = vor.u32 %v6218_v32, %v6215_v36  ;;  %v6238_v15 = vrot.slane %v6236_v9, 5  ;;  %v8307_v30 = vcombine.low %v5711_v48, %v5711_v48 }
 0x2c4   : > { %v6233_v49 = vor.u32 %v6232_v29, %v6229_v22  ;;  %v8308_v60 = vcombine.high %v5711_v48, %v5711_v48  ;;  %v6241_v5 = vshrl.u32 %v8305_v62, 16  ;;  %v6244_v2 = vshll.u32 %v8305_v62, 16  ;;  %8929 = vmatmul.mubr.bf16.gmra.mrb[20].mxu1 %v9943_v8 }
 0x2c5   : > { %9121 = vmatmul.mubr.bf16.gmra.mrb[20].mxu0 %v8344_v11  ;;  %v6220_v14 = vrot.slane %v6219_v17, 4  ;;  %v6250_v33 = vshll.u32 %v8306_v58, 16  ;;  %v6255_v16 = vshrl.u32 %v8307_v30, 16  ;;  %v6258_v6 = vshll.u32 %v8307_v30, 16  ;;  %8932 = vmatprep.mubr.bf16.mxu1 %v9952_v44  ;;  %v9963_v17 = vld [vmem:[#allocation2 + $0x128] ss:$8 sps:$4 sm:$0xff]  }
 0x2c6   : > { %v6234_v21 = vrot.slane %v6233_v49, 4  ;;  %v6243_v10 = vrot.slane %v6241_v5, 4  ;;  %v6246_v20 = vrot.slane %v6244_v2, 5  ;;  %v6264_v51 = vshll.u32 %v8308_v60, 16 }
 0x2c7   : > { %v6225_v28 = vsel %vm10859_vm11, %v6220_v14, %v6224_v25  ;;  %v6252_v18 = vrot.slane %v6250_v33, 5  ;;  %v6257_v57 = vrot.slane %v6255_v16, 4  ;;  %v6260_v1 = vrot.slane %v6258_v6, 5  ;;  %v6647_v16 = vld [vmem:[#allocation2 + $0x18] sm:$0x1e] }
 0x2c8   : > { %v6239_v42 = vsel %vm10859_vm11, %v6234_v21, %v6238_v15  ;;  %v6247_v27 = vor.u32 %v6246_v20, %v6243_v10  ;;  %v6266_v50 = vrot.slane %v6264_v51, 5  ;;  %v8309_v12 = vcombine.low %v5712_v7, %v5712_v7  ;;  %v6648_v20 = vld [vmem:[#allocation2 + $0x20] sm:$0x1e] }
 0x2c9   : > { %v8345_v35 = vcombine.low %v6225_v28, %v6239_v42  ;;  %v6261_v23 = vor.u32 %v6260_v1, %v6257_v57  ;;  %v8310_v53 = vcombine.high %v5712_v7, %v5712_v7  ;;  %v8311_v47 = vcombine.low %v5713_v39, %v5713_v39  ;;  %v6649_v57 = vld [vmem:[#allocation2 + $0x28] sm:$0x1e] }
 0x2ca   : > { %v6248_v56 = vrot.slane %v6247_v27, 4  ;;  %v8312_v38 = vcombine.high %v5713_v39, %v5713_v39  ;;  %v6269_v55 = vshrl.u32 %v8309_v12, 16  ;;  %v6272_v41 = vshll.u32 %v8309_v12, 16 }
 0x2cb   : > { %9124 = vmatprep.mubr.bf16.mxu0 %v8345_v35  ;;  %v6262_v43 = vrot.slane %v6261_v23, 4  ;;  %v6278_v31 = vshll.u32 %v8310_v53, 16  ;;  %v6283_v24 = vshrl.u32 %v8311_v47, 16  ;;  %v6286_v26 = vshll.u32 %v8311_v47, 16 }
 0x2cc   : > { %v6253_v45 = vsel %vm10859_vm11, %v6248_v56, %v6252_v18  ;;  %v6271_v4 = vrot.slane %v6269_v55, 4  ;;  %v6274_v59 = vrot.slane %v6272_v41, 5  ;;  %v6292_v40 = vshll.u32 %v8312_v38, 16  ;;  %8933 = vmatmul.mubr.bf16.gmra.mrb[24].mxu1 %v9953_v46  ;;  %v6650_v38 = vld [vmem:[#allocation2 + $0x30] sm:$0x1e] }
 0x2cd   : > { %v6267_v48 = vsel %vm10859_vm11, %v6262_v43, %v6266_v50  ;;  %v6280_v62 = vrot.slane %v6278_v31, 5  ;;  %v6285_v61 = vrot.slane %v6283_v24, 4  ;;  %v6288_v36 = vrot.slane %v6286_v26, 5  ;;  %8936 = vmatprep.mubr.bf16.mxu1 %v9962_v54  ;;  %v6651_v24 = vld [vmem:[#allocation2 + $0x38] sm:$0x1e] }
 0x2ce   : > { %v8346_v3 = vcombine.low %v6253_v45, %v6267_v48  ;;  %v6275_v8 = vor.u32 %v6274_v59, %v6271_v4  ;;  %v6294_v63 = vrot.slane %v6292_v40, 5  ;;  %v8313_v32 = vcombine.low %v5714_v19, %v5714_v19  ;;  %v6652_v59 = vld [vmem:[#allocation2 + $0x40] sm:$0x1e] }
 0x2cf   : > { %v6289_v25 = vor.u32 %v6288_v36, %v6285_v61  ;;  %v8314_v9 = vcombine.high %v5714_v19, %v5714_v19  ;;  %v8315_v44 = vcombine.low %v5715_v13, %v5715_v13  ;;  %v8316_v37 = vcombine.high %v5715_v13, %v5715_v13 }
 0x2d0   : > { %9125 = vmatmul.mubr.bf16.gmra.mrb[24].mxu0 %v8346_v3  ;;  %v6276_v22 = vrot.slane %v6275_v8, 4  ;;  %v6297_v29 = vshrl.u32 %v8313_v32, 16  ;;  %v6300_v58 = vshll.u32 %v8313_v32, 16  ;;  %v8357_v11 = vcombine.low %v6646_v0, %v6646_v0  ;;  %v6653_v8 = vld [vmem:[#allocation2 + $0x48] sm:$0x1e] }
 0x2d1   : > { %v6290_v15 = vrot.slane %v6289_v25, 4  ;;  %v6306_v30 = vshll.u32 %v8314_v9, 16  ;;  %v6311_v49 = vshrl.u32 %v8315_v44, 16  ;;  %v6314_v60 = vshll.u32 %v8315_v44, 16  ;;  %v6654_v44 = vld [vmem:[#allocation2 + $0x60] sm:$0x1e] }
 0x2d2   : > { %v6281_v5 = vsel %vm10859_vm11, %v6276_v22, %v6280_v62  ;;  %v6299_v2 = vrot.slane %v6297_v29, 4  ;;  %v6302_v14 = vrot.slane %v6300_v58, 5  ;;  %v6320_v33 = vshll.u32 %v8316_v37, 16 }
 0x2d3   : > { %v6295_v6 = vsel %vm10859_vm11, %v6290_v15, %v6294_v63  ;;  %v6308_v7 = vrot.slane %v6306_v30, 5  ;;  %v6313_v21 = vrot.slane %v6311_v49, 4  ;;  %v6316_v10 = vrot.slane %v6314_v60, 5  ;;  %v6655_v49 = vld [vmem:[#allocation2 + $0x68] sm:$0x1e] }
 0x2d4   : > { %v8347_v51 = vcombine.low %v6281_v5, %v6295_v6  ;;  %v6303_v39 = vor.u32 %v6302_v14, %v6299_v2  ;;  %v6322_v28 = vrot.slane %v6320_v33, 5  ;;  %v8358_v18 = vcombine.high %v6646_v0, %v6646_v0  ;;  %8937 = vmatmul.mubr.bf16.gmra.mrb[28].mxu1 %v9963_v17  ;;  %v6656_v33 = vld [vmem:[#allocation2 + $0x70] sm:$0x1e] }
 0x2d5   : > { %v6317_v1 = vor.u32 %v6316_v10, %v6313_v21  ;;  %v8359_v42 = vcombine.low %v6647_v16, %v6647_v16  ;;  %v8360_v27 = vcombine.high %v6647_v16, %v6647_v16  ;;  %v8421_v50 = vrot.slane %v8357_v11, 9  ;;  %v6657_v16 = vld [vmem:[#allocation2 + $0x78] sm:$0x1e] }
 0x2d6   : > { %9128 = vmatprep.mubr.bf16.mxu0 %v8347_v51  ;;  %v6304_v12 = vrot.slane %v6303_v39, 4  ;;  %v6840_v46 = vrot.slane %v8358_v18, 5  ;;  %v8361_v35 = vcombine.low %v6648_v20, %v6648_v20  ;;  %v8362_v23 = vcombine.high %v6648_v20, %v6648_v20 }
 0x2d7   : > { %v6318_v53 = vrot.slane %v6317_v1, 4  ;;  %v8422_v47 = vrot.slane %v8359_v42, 9  ;;  %v6844_v54 = vrot.slane %v8360_v27, 5  ;;  %v8363_v56 = vcombine.low %v6649_v57, %v6649_v57  ;;  %v3709_v27 = vld [vmem:[#allocation2 + $0xa8] sm:$0x1f] }
 0x2d8   : > { %v6309_v55 = vsel %vm10859_vm11, %v6304_v12, %v6308_v7  ;;  %v6841_v41 = vsel %vm10959_vm14, %v8421_v50, %v6840_v46  ;;  %v8364_v43 = vcombine.high %v6649_v57, %v6649_v57  ;;  %v8423_v31 = vrot.slane %v8361_v35, 9  ;;  %v3710_v50 = vld [vmem:[#allocation2 + $0xb0] sm:$0x1f] }
 0x2d9   : > { %v6323_v26 = vsel %vm10859_vm11, %v6318_v53, %v6322_v28  ;;  %v6845_v19 = vsel %vm10959_vm14, %v8422_v47, %v6844_v54  ;;  %v6848_v45 = vrot.slane %v8362_v23, 5  ;;  %v8424_v4 = vrot.slane %v8363_v56, 9 }
 0x2da   : > { %v8348_v40 = vcombine.low %v6309_v55, %v6323_v26  ;;  %v8469_v13 = vcombine.low %v6841_v41, %v6845_v19  ;;  %v6852_v48 = vrot.slane %v8364_v43, 5  ;;  %v8365_v62 = vcombine.low %v6650_v38, %v6650_v38 }
 0x2db   : > { %v6849_v61 = vsel %vm10959_vm14, %v8423_v31, %v6848_v45  ;;  %v8366_v36 = vcombine.high %v6650_v38, %v6650_v38  ;;  %v8367_v0 = vcombine.low %v6651_v24, %v6651_v24  ;;  %v8368_v3 = vcombine.high %v6651_v24, %v6651_v24  ;;  %v3711_v31 = vld [vmem:[#allocation2 + $0xb8] sm:$0x1f] }
 0x2dc   : > { %9129 = vmatmul.mubr.bf16.gmra.mrb[28].mxu0 %v8348_v40  ;;  %v6853_v63 = vsel %vm10959_vm14, %v8424_v4, %v6852_v48  ;;  %v8425_v32 = vrot.slane %v8365_v62, 9  ;;  %v8369_v25 = vcombine.low %v6652_v59, %v6652_v59  ;;  %v8370_v9 = vcombine.high %v6652_v59, %v6652_v59 }
 0x2dd   : > { %9148 = vmatprep.mubr.bf16.mxu0 %v8469_v13  ;;  %v8470_v37 = vcombine.low %v6849_v61, %v6853_v63  ;;  %v6856_v22 = vrot.slane %v8366_v36, 5  ;;  %v8426_v29 = vrot.slane %v8367_v0, 9  ;;  %v6860_v58 = vrot.slane %v8368_v3, 5  ;;  %v3712_v36 = vld [vmem:[#allocation2 + $0xc0] sm:$0x1f] }
 0x2de   : > { %v8371_v11 = vcombine.low %v6653_v8, %v6653_v8  ;;  %v8372_v17 = vcombine.high %v6653_v8, %v6653_v8  ;;  %v8427_v15 = vrot.slane %v8369_v25, 9  ;;  %v6864_v30 = vrot.slane %v8370_v9, 5  ;;  %v6658_v25 = vld [vmem:[#allocation2 + $0x80] sm:$0x1e] }
 0x2df   : > { %v6857_v60 = vsel %vm10959_vm14, %v8425_v32, %v6856_v22  ;;  %v6861_v5 = vsel %vm10959_vm14, %v8426_v29, %v6860_v58  ;;  %v8373_v2 = vcombine.low %v6654_v44, %v6654_v44  ;;  %v8374_v14 = vcombine.high %v6654_v44, %v6654_v44 }
 0x2e0   : > { %v8471_v6 = vcombine.low %v6857_v60, %v6861_v5  ;;  %v6865_v7 = vsel %vm10959_vm14, %v8427_v15, %v6864_v30  ;;  %v8428_v21 = vrot.slane %v8371_v11, 9  ;;  %v6868_v10 = vrot.slane %v8372_v17, 5 }
 0x2e1   : > { %v8375_v20 = vcombine.low %v6655_v49, %v6655_v49  ;;  %v8376_v51 = vcombine.high %v6655_v49, %v6655_v49  ;;  %v8429_v39 = vrot.slane %v8373_v2, 9  ;;  %v6872_v28 = vrot.slane %v8374_v14, 5 }
 0x2e2   : > { %v6869_v18 = vsel %vm10959_vm14, %v8428_v21, %v6868_v10  ;;  %v8377_v57 = vcombine.low %v6656_v33, %v6656_v33  ;;  %v8378_v1 = vcombine.high %v6656_v33, %v6656_v33  ;;  %v8379_v42 = vcombine.low %v6657_v16, %v6657_v16 }
 0x2e3   : > { %v8472_v12 = vcombine.low %v6865_v7, %v6869_v18  ;;  %v6873_v46 = vsel %vm10959_vm14, %v8429_v39, %v6872_v28  ;;  %v8430_v35 = vrot.slane %v8375_v20, 9  ;;  %v6876_v23 = vrot.slane %v8376_v51, 5  ;;  %v6660_v18 = vld [vmem:[#allocation2 + $0x90] sm:$0x1e] }
 0x2e4   : > { %9149 = vmatmul.mubr.bf16.vlgmr.msra.gmra.mrb[0].mxu0 %v8470_v37  ;;  %v8380_v53 = vcombine.high %v6657_v16, %v6657_v16  ;;  %v8431_v47 = vrot.slane %v8377_v57, 9  ;;  %v6880_v54 = vrot.slane %v8378_v1, 5  ;;  %v8432_v56 = vrot.slane %v8379_v42, 9  ;;  %v6659_v16 = vld [vmem:[#allocation2 + $0x88] sm:$0x1e] }
 0x2e5   : > { %9152 = vmatprep.mubr.bf16.mxu0 %v8471_v6  ;;  %v6877_v38 = vsel %vm10959_vm14, %v8430_v35, %v6876_v23  ;;  %v8005_v55 = vcombine.low %v3709_v27, %v3709_v27  ;;  %v8006_v41 = vcombine.high %v3709_v27, %v3709_v27  ;;  %v8007_v43 = vcombine.low %v3710_v50, %v3710_v50 }
 0x2e6   : > { %v8473_v24 = vcombine.low %v6873_v46, %v6877_v38  ;;  %v6881_v26 = vsel %vm10959_vm14, %v8431_v47, %v6880_v54  ;;  %v6884_v19 = vrot.slane %v8380_v53, 5  ;;  %v8008_v45 = vcombine.high %v3710_v50, %v3710_v50  ;;  %v6661_v50 = vld [vmem:[#allocation2 + $0x98] sm:$0x1e] }
 0x2e7   : > { %v4110_v4 = vshrl.u32 %v8005_v55, 16  ;;  %v4113_v59 = vshll.u32 %v8005_v55, 16  ;;  %v4119_v40 = vshll.u32 %v8006_v41, 16  ;;  %v4124_v13 = vshrl.u32 %v8007_v43, 16 }
 0x2e8   : > { %v6885_v48 = vsel %vm10959_vm14, %v8432_v56, %v6884_v19  ;;  %v4127_v62 = vshll.u32 %v8007_v43, 16  ;;  %v4133_v61 = vshll.u32 %v8008_v45, 16  ;;  %v8009_v0 = vcombine.low %v3711_v31, %v3711_v31 }
 0x2e9   : > { %v8474_v3 = vcombine.low %v6881_v26, %v6885_v48  ;;  %v4112_v8 = vrot.slane %v4110_v4, 4  ;;  %v4115_v63 = vrot.slane %v4113_v59, 5  ;;  %v4121_v32 = vrot.slane %v4119_v40, 5  ;;  %v3714_v4 = vld [vmem:[#allocation2 + $0xd0] sm:$0x1f] }
 0x2ea   : > { %v4126_v9 = vrot.slane %v4124_v13, 4  ;;  %v4129_v44 = vrot.slane %v4127_v62, 5  ;;  %v4135_v37 = vrot.slane %v4133_v61, 5  ;;  %v8010_v22 = vcombine.high %v3711_v31, %v3711_v31  ;;  %v3713_v31 = vld [vmem:[#allocation2 + $0xc8] sm:$0x1f] }
 0x2eb   : > { %v4116_v29 = vor.u32 %v4115_v63, %v4112_v8  ;;  %v8011_v58 = vcombine.low %v3712_v36, %v3712_v36  ;;  %v8012_v11 = vcombine.high %v3712_v36, %v3712_v36  ;;  %v4138_v17 = vshrl.u32 %v8009_v0, 16  ;;  %v3715_v62 = vld [vmem:[#allocation2 + $0xd8] sm:$0x1f] }
 0x2ec   : > { %9153 = vmatmul.mubr.bf16.gmra.mrb[4].mxu0 %v8472_v12  ;;  %v4130_v15 = vor.u32 %v4129_v44, %v4126_v9  ;;  %v4141_v30 = vshll.u32 %v8009_v0, 16  ;;  %v4147_v49 = vshll.u32 %v8010_v22, 16  ;;  %v8381_v60 = vcombine.low %v6658_v25, %v6658_v25  ;;  %v3716_v22 = vld [vmem:[#allocation2 + $0xe0] sm:$0x1f] }
 0x2ed   : > { %9156 = vmatprep.mubr.bf16.mxu0 %v8473_v24  ;;  %v4117_v5 = vrot.slane %v4116_v29, 4  ;;  %v4140_v2 = vrot.slane %v4138_v17, 4  ;;  %v4152_v14 = vshrl.u32 %v8011_v58, 16  ;;  %v4155_v33 = vshll.u32 %v8011_v58, 16 }
 0x2ee   : > { %v4131_v6 = vrot.slane %v4130_v15, 4  ;;  %v4143_v7 = vrot.slane %v4141_v30, 5  ;;  %v4149_v21 = vrot.slane %v4147_v49, 5  ;;  %v4161_v10 = vshll.u32 %v8012_v11, 16 }
 0x2ef   : > { %v4122_v20 = vsel %vm10859_vm11, %v4117_v5, %v4121_v32  ;;  %v4154_v51 = vrot.slane %v4152_v14, 4  ;;  %v4157_v39 = vrot.slane %v4155_v33, 5  ;;  %v8382_v28 = vcombine.high %v6658_v25, %v6658_v25 }
 0x2f0   : > { %v4136_v57 = vsel %vm10859_vm11, %v4131_v6, %v4135_v37  ;;  %v4144_v1 = vor.u32 %v4143_v7, %v4140_v2  ;;  %v4163_v42 = vrot.slane %v4161_v10, 5  ;;  %v8383_v27 = vcombine.low %v6659_v16, %v6659_v16 }
 0x2f1   : > { %v8061_v12 = vcombine.low %v4122_v20, %v4136_v57  ;;  %v4158_v46 = vor.u32 %v4157_v39, %v4154_v51  ;;  %v8384_v35 = vcombine.high %v6659_v16, %v6659_v16  ;;  %v8433_v23 = vrot.slane %v8381_v60, 9 }
 0x2f2   : > { %v4145_v53 = vrot.slane %v4144_v1, 4  ;;  %v6888_v47 = vrot.slane %v8382_v28, 5  ;;  %v8434_v54 = vrot.slane %v8383_v27, 9  ;;  %v8385_v56 = vcombine.low %v6660_v18, %v6660_v18 }
 0x2f3   : > { %8972 = vmatprep.mubr.bf16.mxu1 %v8061_v12  ;;  %v4159_v38 = vrot.slane %v4158_v46, 4  ;;  %v6892_v55 = vrot.slane %v8384_v35, 5  ;;  %v8386_v41 = vcombine.high %v6660_v18, %v6660_v18  ;;  %v8387_v43 = vcombine.low %v6661_v50, %v6661_v50  ;;  %v6662_v18 = vld [vmem:[#allocation2 + $0xb0] sm:$0x1e] }
 0x2f4   : > { %9157 = vmatmul.mubr.bf16.gmra.mrb[8].mxu0 %v8474_v3  ;;  %v4150_v24 = vsel %vm10859_vm11, %v4145_v53, %v4149_v21  ;;  %v6889_v26 = vsel %vm10959_vm14, %v8433_v23, %v6888_v47  ;;  %v8388_v19 = vcombine.high %v6661_v50, %v6661_v50  ;;  %v8435_v45 = vrot.slane %v8385_v56, 9  ;;  %v6663_v50 = vld [vmem:[#allocation2 + $0xb8] sm:$0x1e] }
 0x2f5   : > { %v4164_v59 = vsel %vm10859_vm11, %v4159_v38, %v4163_v42  ;;  %v6893_v40 = vsel %vm10959_vm14, %v8434_v54, %v6892_v55  ;;  %v6896_v13 = vrot.slane %v8386_v41, 5  ;;  %v8436_v48 = vrot.slane %v8387_v43, 9  ;;  %v6664_v38 = vld [vmem:[#allocation2 + $0xc0] sm:$0x1e] }
 0x2f6   : > { %v8062_v61 = vcombine.low %v4150_v24, %v4164_v59  ;;  %v8475_v36 = vcombine.low %v6889_v26, %v6893_v40  ;;  %v6900_v0 = vrot.slane %v8388_v19, 5  ;;  %v8013_v3 = vcombine.low %v3713_v31, %v3713_v31  ;;  %v6665_v24 = vld [vmem:[#allocation2 + $0xc8] sm:$0x1e] }
 0x2f7   : > { %v6897_v8 = vsel %vm10959_vm14, %v8435_v45, %v6896_v13  ;;  %v8014_v63 = vcombine.high %v3713_v31, %v3713_v31  ;;  %v8015_v32 = vcombine.low %v3714_v4, %v3714_v4  ;;  %v8016_v25 = vcombine.high %v3714_v4, %v3714_v4 }
 0x2f8   : > { %8973 = vmatmul.mubr.bf16.vlgmr.msra.gmra.mrb[16].mxu1 %v8062_v61  ;;  %9160 = vmatprep.mubr.bf16.mxu0 %v8475_v36  ;;  %v6901_v9 = vsel %vm10959_vm14, %v8436_v48, %v6900_v0  ;;  %v4166_v44 = vshrl.u32 %v8013_v3, 16  ;;  %v4169_v37 = vshll.u32 %v8013_v3, 16  ;;  %v8017_v29 = vcombine.low %v3715_v62, %v3715_v62  ;;  %v3717_v3 = vld [vmem:[#allocation2 + $0xf8] sm:$0x1f] }
 0x2f9   : > { %v8476_v58 = vcombine.low %v6897_v8, %v6901_v9  ;;  %v4175_v11 = vshll.u32 %v8014_v63, 16  ;;  %v4180_v17 = vshrl.u32 %v8015_v32, 16  ;;  %v4183_v15 = vshll.u32 %v8015_v32, 16  ;;  %v3718_v9 = vld [vmem:[#allocation2 + $0x100] sm:$0x1f] }
 0x2fa   : > { %v4168_v30 = vrot.slane %v4166_v44, 4  ;;  %v4171_v49 = vrot.slane %v4169_v37, 5  ;;  %v4189_v60 = vshll.u32 %v8016_v25, 16  ;;  %v8018_v5 = vcombine.high %v3715_v62, %v3715_v62 }
 0x2fb   : > { %v4177_v2 = vrot.slane %v4175_v11, 5  ;;  %v4182_v14 = vrot.slane %v4180_v17, 4  ;;  %v4185_v33 = vrot.slane %v4183_v15, 5  ;;  %v8019_v16 = vcombine.low %v3716_v22, %v3716_v22 }
 0x2fc   : > { %9161 = vmatmul.mubr.bf16.gmra.mrb[12].mxu0 %v8476_v58  ;;  %v4172_v6 = vor.u32 %v4171_v49, %v4168_v30  ;;  %v4191_v7 = vrot.slane %v4189_v60, 5  ;;  %v8020_v21 = vcombine.high %v3716_v22, %v3716_v22  ;;  %v4194_v10 = vshrl.u32 %v8017_v29, 16  ;;  %v3719_v58 = vld [vmem:[#allocation2 + $0x108] sm:$0x1f] }
 0x2fd   : > { %v4186_v20 = vor.u32 %v4185_v33, %v4182_v14  ;;  %v4197_v51 = vshll.u32 %v8017_v29, 16  ;;  %v4203_v39 = vshll.u32 %v8018_v5, 16  ;;  %v4208_v28 = vshrl.u32 %v8019_v16, 16 }
 0x2fe   : > { %v4173_v57 = vrot.slane %v4172_v6, 4  ;;  %v4196_v1 = vrot.slane %v4194_v10, 4  ;;  %v4211_v42 = vshll.u32 %v8019_v16, 16  ;;  %v4217_v27 = vshll.u32 %v8020_v21, 16  ;;  %v3720_v6 = vld [vmem:[#allocation2 + $0x110] sm:$0x1f] }
 0x2ff   : > { %v4187_v12 = vrot.slane %v4186_v20, 4  ;;  %v4199_v46 = vrot.slane %v4197_v51, 5  ;;  %v4205_v35 = vrot.slane %v4203_v39, 5  ;;  %v4210_v23 = vrot.slane %v4208_v28, 4 }
 0x300   : > { %v4178_v53 = vsel %vm10859_vm11, %v4173_v57, %v4177_v2  ;;  %v4213_v47 = vrot.slane %v4211_v42, 5  ;;  %v4219_v54 = vrot.slane %v4217_v27, 5  ;;  %v8389_v56 = vcombine.low %v6662_v18, %v6662_v18 }
 0x301   : > { %v4192_v55 = vsel %vm10859_vm11, %v4187_v12, %v4191_v7  ;;  %v4200_v41 = vor.u32 %v4199_v46, %v4196_v1  ;;  %v8390_v43 = vcombine.high %v6662_v18, %v6662_v18  ;;  %v8391_v31 = vcombine.low %v6663_v50, %v6663_v50 }
 0x302   : > { %v8063_v26 = vcombine.low %v4178_v53, %v4192_v55  ;;  %v4214_v19 = vor.u32 %v4213_v47, %v4210_v23  ;;  %v8392_v45 = vcombine.high %v6663_v50, %v6663_v50  ;;  %v8437_v4 = vrot.slane %v8389_v56, 9 }
 0x303   : > { %v4201_v59 = vrot.slane %v4200_v41, 4  ;;  %v6904_v40 = vrot.slane %v8390_v43, 5  ;;  %v8438_v13 = vrot.slane %v8391_v31, 9  ;;  %v8393_v48 = vcombine.low %v6664_v38, %v6664_v38 }
 0x304   : > { %8976 = vmatprep.mubr.bf16.mxu1 %v8063_v26  ;;  %v4215_v62 = vrot.slane %v4214_v19, 4  ;;  %v6908_v61 = vrot.slane %v8392_v45, 5  ;;  %v8394_v36 = vcombine.high %v6664_v38, %v6664_v38  ;;  %v8395_v0 = vcombine.low %v6665_v24, %v6665_v24  ;;  %v6666_v38 = vld [vmem:[#allocation2 + $0xd0] sm:$0x1e] }
 0x305   : > { %v4206_v8 = vsel %vm10859_vm11, %v4201_v59, %v4205_v35  ;;  %v6905_v63 = vsel %vm10959_vm14, %v8437_v4, %v6904_v40  ;;  %v8396_v32 = vcombine.high %v6665_v24, %v6665_v24  ;;  %v8439_v25 = vrot.slane %v8393_v48, 9  ;;  %v6667_v24 = vld [vmem:[#allocation2 + $0xd8] sm:$0x1e] }
 0x306   : > { %v4220_v44 = vsel %vm10859_vm11, %v4215_v62, %v4219_v54  ;;  %v6909_v37 = vsel %vm10959_vm14, %v8438_v13, %v6908_v61  ;;  %v6912_v22 = vrot.slane %v8394_v36, 5  ;;  %v8440_v29 = vrot.slane %v8395_v0, 9  ;;  %v6668_v62 = vld [vmem:[#allocation2 + $0xe0] sm:$0x1e] }
 0x307   : > { %v8064_v11 = vcombine.low %v4206_v8, %v4220_v44  ;;  %v8477_v17 = vcombine.low %v6905_v63, %v6909_v37  ;;  %v6916_v15 = vrot.slane %v8396_v32, 5  ;;  %v8021_v30 = vcombine.low %v3717_v3, %v3717_v3  ;;  %v6669_v8 = vld [vmem:[#allocation2 + $0xe8] sm:$0x1e] }
 0x308   : > { %v6913_v49 = vsel %vm10959_vm14, %v8439_v25, %v6912_v22  ;;  %v8022_v60 = vcombine.high %v3717_v3, %v3717_v3  ;;  %v8023_v5 = vcombine.low %v3718_v9, %v3718_v9  ;;  %v8024_v2 = vcombine.high %v3718_v9, %v3718_v9 }
 0x309   : > { %8977 = vmatmul.mubr.bf16.gmra.mrb[20].mxu1 %v8064_v11  ;;  %9164 = vmatprep.mubr.bf16.mxu0 %v8477_v17  ;;  %v6917_v14 = vsel %vm10959_vm14, %v8440_v29, %v6916_v15  ;;  %v4222_v33 = vshrl.u32 %v8021_v30, 16  ;;  %v4225_v16 = vshll.u32 %v8021_v30, 16  ;;  %v8025_v7 = vcombine.low %v3719_v58, %v3719_v58  ;;  %v3721_v30 = vld [vmem:[#allocation2 + $0x118] sm:$0x1f] }
 0x30a   : > { %v8478_v21 = vcombine.low %v6913_v49, %v6917_v14  ;;  %v4231_v10 = vshll.u32 %v8022_v60, 16  ;;  %v4236_v20 = vshrl.u32 %v8023_v5, 16  ;;  %v4239_v51 = vshll.u32 %v8023_v5, 16  ;;  %v3722_v14 = vld [vmem:[#allocation2 + $0x120] sm:$0x1f] }
 0x30b   : > { %v4224_v39 = vrot.slane %v4222_v33, 4  ;;  %v4227_v28 = vrot.slane %v4225_v16, 5  ;;  %v4245_v18 = vshll.u32 %v8024_v2, 16  ;;  %v8026_v57 = vcombine.high %v3719_v58, %v3719_v58 }
 0x30c   : > { %9165 = vmatmul.mubr.bf16.gmra.mrb[16].mxu0 %v8478_v21  ;;  %v4233_v1 = vrot.slane %v4231_v10, 5  ;;  %v4238_v42 = vrot.slane %v4236_v20, 4  ;;  %v4241_v27 = vrot.slane %v4239_v51, 5  ;;  %v8027_v50 = vcombine.low %v3720_v6, %v3720_v6  ;;  %v3723_v21 = vld [vmem:[#allocation2 + $0x128] sm:$0x1f] }
 0x30d   : > { %v4228_v12 = vor.u32 %v4227_v28, %v4224_v39  ;;  %v4247_v46 = vrot.slane %v4245_v18, 5  ;;  %v8028_v35 = vcombine.high %v3720_v6, %v3720_v6  ;;  %v4250_v23 = vshrl.u32 %v8025_v7, 16 }
 0x30e   : > { %v4242_v53 = vor.u32 %v4241_v27, %v4238_v42  ;;  %v4253_v47 = vshll.u32 %v8025_v7, 16  ;;  %v4259_v54 = vshll.u32 %v8026_v57, 16  ;;  %v4264_v56 = vshrl.u32 %v8027_v50, 16 }
 0x30f   : > { %v4229_v55 = vrot.slane %v4228_v12, 4  ;;  %v4252_v41 = vrot.slane %v4250_v23, 4  ;;  %v4267_v43 = vshll.u32 %v8027_v50, 16  ;;  %v4273_v31 = vshll.u32 %v8028_v35, 16  ;;  %v3724_v12 = vld [vmem:[#allocation2 + $0x130] sm:$0x1f] }
 0x310   : > { %v4243_v26 = vrot.slane %v4242_v53, 4  ;;  %v4255_v19 = vrot.slane %v4253_v47, 5  ;;  %v4261_v45 = vrot.slane %v4259_v54, 5  ;;  %v4266_v4 = vrot.slane %v4264_v56, 4 }
 0x311   : > { %v4234_v59 = vsel %vm10859_vm11, %v4229_v55, %v4233_v1  ;;  %v4269_v40 = vrot.slane %v4267_v43, 5  ;;  %v4275_v13 = vrot.slane %v4273_v31, 5  ;;  %v8397_v48 = vcombine.low %v6666_v38, %v6666_v38 }
 0x312   : > { %v4248_v61 = vsel %vm10859_vm11, %v4243_v26, %v4247_v46  ;;  %v4256_v36 = vor.u32 %v4255_v19, %v4252_v41  ;;  %v8398_v0 = vcombine.high %v6666_v38, %v6666_v38  ;;  %v8399_v3 = vcombine.low %v6667_v24, %v6667_v24 }
 0x313   : > { %v8065_v63 = vcombine.low %v4234_v59, %v4248_v61  ;;  %v4270_v32 = vor.u32 %v4269_v40, %v4266_v4  ;;  %v8400_v25 = vcombine.high %v6667_v24, %v6667_v24  ;;  %v8441_v9 = vrot.slane %v8397_v48, 9 }
 0x314   : > { %v4257_v44 = vrot.slane %v4256_v36, 4  ;;  %v6920_v37 = vrot.slane %v8398_v0, 5  ;;  %v8442_v22 = vrot.slane %v8399_v3, 9  ;;  %v8401_v29 = vcombine.low %v6668_v62, %v6668_v62 }
 0x315   : > { %8980 = vmatprep.mubr.bf16.mxu1 %v8065_v63  ;;  %v4271_v58 = vrot.slane %v4270_v32, 4  ;;  %v6924_v11 = vrot.slane %v8400_v25, 5  ;;  %v8402_v17 = vcombine.high %v6668_v62, %v6668_v62  ;;  %v8403_v15 = vcombine.low %v6669_v8, %v6669_v8  ;;  %v6670_v62 = vld [vmem:[#allocation2 + $0x100] sm:$0x1e] }
 0x316   : > { %v4262_v49 = vsel %vm10859_vm11, %v4257_v44, %v4261_v45  ;;  %v6921_v60 = vsel %vm10959_vm14, %v8441_v9, %v6920_v37  ;;  %v8404_v5 = vcombine.high %v6669_v8, %v6669_v8  ;;  %v8443_v2 = vrot.slane %v8401_v29, 9  ;;  %v6671_v8 = vld [vmem:[#allocation2 + $0x108] sm:$0x1e] }
 0x317   : > { %v4276_v33 = vsel %vm10859_vm11, %v4271_v58, %v4275_v13  ;;  %v6925_v16 = vsel %vm10959_vm14, %v8442_v22, %v6924_v11  ;;  %v6928_v6 = vrot.slane %v8402_v17, 5  ;;  %v8444_v7 = vrot.slane %v8403_v15, 9  ;;  %v6672_v58 = vld [vmem:[#allocation2 + $0x110] sm:$0x1e] }
 0x318   : > { %v8066_v10 = vcombine.low %v4262_v49, %v4276_v33  ;;  %v8479_v20 = vcombine.low %v6921_v60, %v6925_v16  ;;  %v6932_v51 = vrot.slane %v8404_v5, 5  ;;  %v8029_v39 = vcombine.low %v3721_v30, %v3721_v30  ;;  %v6673_v49 = vld [vmem:[#allocation2 + $0x118] sm:$0x1e] }
 0x319   : > { %v6929_v28 = vsel %vm10959_vm14, %v8443_v2, %v6928_v6  ;;  %v8030_v18 = vcombine.high %v3721_v30, %v3721_v30  ;;  %v8031_v57 = vcombine.low %v3722_v14, %v3722_v14  ;;  %v8032_v1 = vcombine.high %v3722_v14, %v3722_v14 }
 0x31a   : > { %8981 = vmatmul.mubr.bf16.gmra.mrb[24].mxu1 %v8066_v10  ;;  %9168 = vmatprep.mubr.bf16.mxu0 %v8479_v20  ;;  %v6933_v42 = vsel %vm10959_vm14, %v8444_v7, %v6932_v51  ;;  %v4278_v27 = vshrl.u32 %v8029_v39, 16  ;;  %v4281_v50 = vshll.u32 %v8029_v39, 16  ;;  %v8033_v46 = vcombine.low %v3723_v21, %v3723_v21  ;;  %v6674_v39 = vld [vmem:[#allocation2 + $0x120] sm:$0x1e] }
 0x31b   : > { %v8480_v35 = vcombine.low %v6929_v28, %v6933_v42  ;;  %v4287_v23 = vshll.u32 %v8030_v18, 16  ;;  %v4292_v53 = vshrl.u32 %v8031_v57, 16  ;;  %v4295_v47 = vshll.u32 %v8031_v57, 16  ;;  %v6675_v42 = vld [vmem:[#allocation2 + $0x128] sm:$0x1e] }
 0x31c   : > { %v4280_v54 = vrot.slane %v4278_v27, 4  ;;  %v4283_v56 = vrot.slane %v4281_v50, 5  ;;  %v4301_v38 = vshll.u32 %v8032_v1, 16  ;;  %v8034_v55 = vcombine.high %v3723_v21, %v3723_v21 }
 0x31d   : > { %9169 = vmatmul.mubr.bf16.gmra.mrb[20].mxu0 %v8480_v35  ;;  %v4289_v41 = vrot.slane %v4287_v23, 5  ;;  %v4294_v43 = vrot.slane %v4292_v53, 4  ;;  %v4297_v31 = vrot.slane %v4295_v47, 5  ;;  %v8035_v24 = vcombine.low %v3724_v12, %v3724_v12  ;;  %v6676_v35 = vld [vmem:[#allocation2 + $0x130] sm:$0x1e] }
 0x31e   : > { %v4284_v26 = vor.u32 %v4283_v56, %v4280_v54  ;;  %v4303_v19 = vrot.slane %v4301_v38, 5  ;;  %v8036_v45 = vcombine.high %v3724_v12, %v3724_v12  ;;  %v4306_v4 = vshrl.u32 %v8033_v46, 16 }
 0x31f   : > { %v4298_v59 = vor.u32 %v4297_v31, %v4294_v43  ;;  %v4309_v40 = vshll.u32 %v8033_v46, 16  ;;  %v4315_v13 = vshll.u32 %v8034_v55, 16  ;;  %v4320_v48 = vshrl.u32 %v8035_v24, 16  ;;  %v6677_v43 = vld [vmem:[#allocation2 + $0x138] sm:$0x1e] }
 0x320   : > { %v4285_v61 = vrot.slane %v4284_v26, 4  ;;  %v4308_v36 = vrot.slane %v4306_v4, 4  ;;  %v4323_v0 = vshll.u32 %v8035_v24, 16  ;;  %v4329_v3 = vshll.u32 %v8036_v45, 16 }
 0x321   : > { %v4299_v63 = vrot.slane %v4298_v59, 4  ;;  %v4311_v32 = vrot.slane %v4309_v40, 5  ;;  %v4317_v25 = vrot.slane %v4315_v13, 5  ;;  %v4322_v9 = vrot.slane %v4320_v48, 4 }
 0x322   : > { %v4290_v44 = vsel %vm10859_vm11, %v4285_v61, %v4289_v41  ;;  %v4325_v37 = vrot.slane %v4323_v0, 5  ;;  %v4331_v22 = vrot.slane %v4329_v3, 5  ;;  %v8405_v29 = vcombine.low %v6670_v62, %v6670_v62 }
 0x323   : > { %v4304_v11 = vsel %vm10859_vm11, %v4299_v63, %v4303_v19  ;;  %v4312_v17 = vor.u32 %v4311_v32, %v4308_v36  ;;  %v8406_v15 = vcombine.high %v6670_v62, %v6670_v62  ;;  %v8407_v30 = vcombine.low %v6671_v8, %v6671_v8 }
 0x324   : > { %v8067_v60 = vcombine.low %v4290_v44, %v4304_v11  ;;  %v4326_v5 = vor.u32 %v4325_v37, %v4322_v9  ;;  %v8408_v2 = vcombine.high %v6671_v8, %v6671_v8  ;;  %v8445_v14 = vrot.slane %v8405_v29, 9 }
 0x325   : > { %v4313_v33 = vrot.slane %v4312_v17, 4  ;;  %v6936_v16 = vrot.slane %v8406_v15, 5  ;;  %v8446_v6 = vrot.slane %v8407_v30, 9  ;;  %v8409_v7 = vcombine.low %v6672_v58, %v6672_v58 }
 0x326   : > { %8984 = vmatprep.mubr.bf16.mxu1 %v8067_v60  ;;  %v4327_v21 = vrot.slane %v4326_v5, 4  ;;  %v6940_v10 = vrot.slane %v8408_v2, 5  ;;  %v8410_v20 = vcombine.high %v6672_v58, %v6672_v58  ;;  %v8411_v51 = vcombine.low %v6673_v49, %v6673_v49 }
 0x327   : > { %v4318_v28 = vsel %vm10859_vm11, %v4313_v33, %v4317_v25  ;;  %v6937_v18 = vsel %vm10959_vm14, %v8445_v14, %v6936_v16  ;;  %v8412_v57 = vcombine.high %v6673_v49, %v6673_v49  ;;  %v8447_v1 = vrot.slane %v8409_v7, 9  ;;  %v11511_v33 = vld [vmem:[%s251_s15] ss:$0 sm:$0xff]  ;;  %s7538_s15 = sshll.u32 %s10195_s19, 4  ;;  %s7539_s15 = int_to_ptr.vmem [resolvable:$true] %s7538_s15 }
 0x328   : > { %v4332_v27 = vsel %vm10859_vm11, %v4327_v21, %v4331_v22  ;;  %v6941_v50 = vsel %vm10959_vm14, %v8446_v6, %v6940_v10  ;;  %v6944_v12 = vrot.slane %v8410_v20, 5  ;;  %v8448_v46 = vrot.slane %v8411_v51, 9  ;;  %v7293_v21 = vld [vmem:[%s11515_s16 + $0x10] sm:$0xff]  ;;  %s10119_s17 = scalar_lea.vmem %s7539_s15, 4096  ;;  %p10126_p12 = scmp.lt.s32.totalorder %s7539_s15, %s7539_s15 }
 0x329   : > { %v8068_v23 = vcombine.low %v4318_v28, %v4332_v27  ;;  %v8481_v53 = vcombine.low %v6937_v18, %v6941_v50  ;;  %v6948_v47 = vrot.slane %v8412_v57, 5  ;;  %v8413_v54 = vcombine.low %v6674_v39, %v6674_v39  ;;  %p10120_p0 = scmp.ne.s32.totalorder %s7539_s15, %s10119_s17  ;;  %p10127_p10 = scmp.lt.s32.totalorder %s10119_s17, %s10119_s17 }
 0x32a   : > { %v6945_v56 = vsel %vm10959_vm14, %v8447_v1, %v6944_v12  ;;  %v8414_v38 = vcombine.high %v6674_v39, %v6674_v39  ;;  %v8415_v55 = vcombine.low %v6675_v42, %v6675_v42  ;;  %v8416_v41 = vcombine.high %v6675_v42, %v6675_v42  ;;  %v7291_v39 = vld [vmem:[%s11515_s16] sm:$0xff]  ;;  %v7294_v1 = vld [vmem:[%s11515_s16 + $0x18] sm:$0xff]  ;;  %v7292_v12 = vld [vmem:[%s11515_s16 + $0x8] sm:$0xff] }
 0x32b   : > { %8985 = vmatmul.mubr.bf16.gmra.mrb[28].mxu1 %v8068_v23  ;;  %9172 = vmatprep.mubr.bf16.mxu0 %v8481_v53  ;;  %v6949_v34 = vsel %vm10959_vm14, %v8448_v46, %v6948_v47  ;;  %v8449_v31 = vrot.slane %v8413_v54, 9  ;;  %v8417_v24 = vcombine.low %v6676_v35, %v6676_v35  ;;  %v8418_v26 = vcombine.high %v6676_v35, %v6676_v35  ;;  %p10121_p2 = pnand %p10120_p0, %p9498_p5  ;;  %p10128_p11 = por %p10127_p10, %p10126_p12 }
 0x32c   : > { %v8482_v19 = vcombine.low %v6945_v56, %v6949_v34  ;;  %v6952_v45 = vrot.slane %v8414_v38, 5  ;;  %v8450_v4 = vrot.slane %v8415_v55, 9  ;;  %v6956_v59 = vrot.slane %v8416_v41, 5  ;;  %v7297_v55 = vld [vmem:[%s11515_s16 + $0x30] sm:$0xff] }
 0x32d   : > { %v8419_v40 = vcombine.low %v6677_v43, %v6677_v43  ;;  %v8420_v13 = vcombine.high %v6677_v43, %v6677_v43  ;;  %v8451_v48 = vrot.slane %v8417_v24, 9  ;;  %v6960_v62 = vrot.slane %v8418_v26, 5  ;;  %p10122_p6 = pneg %p10121_p2 }
 0x32e   : > { %9173 = vmatmul.mubr.bf16.gmra.mrb[24].mxu0 %v8482_v19  ;;  %v6953_v61 = vsel %vm10959_vm14, %v8449_v31, %v6952_v45  ;;  %v6957_v36 = vsel %vm10959_vm14, %v8450_v4, %v6956_v59  ;;  %v7295_v31 = vld [vmem:[%s11515_s16 + $0x20] sm:$0xff]  ;;  %v7298_v4 = vld [vmem:[%s11515_s16 + $0x38] sm:$0xff] }
 0x32f   : > { %v8483_v0 = vcombine.low %v6953_v61, %v6957_v36  ;;  %v6961_v3 = vsel %vm10959_vm14, %v8451_v48, %v6960_v62  ;;  %v8452_v8 = vrot.slane %v8419_v40, 9  ;;  %v6964_v63 = vrot.slane %v8420_v13, 5  ;;  %v7296_v48 = vld [vmem:[%s11515_s16 + $0x28] sm:$0xff]  ;;  %p10129_p7 = pnand %p10128_p11, %p10122_p6 }
 0x331   : > { %9176 = vmatprep.mubr.bf16.mxu0 %v8483_v0  ;;  %v6965_v32 = vsel %vm10959_vm14, %v8452_v8, %v6964_v63 }
 0x332   : > { %v8484_v25 = vcombine.low %v6961_v3, %v6965_v32 }
 0x336   : > { %9177 = vmatmul.mubr.bf16.gmra.mrb[28].mxu0 %v8484_v25 }
 0x36f   : > { %v8910_v9 = vpop.f32.mrb[0].mxu1 }
 0x370   : > { %v3534_v44 = vpop.f32.mrb[1].mxu1  ;;  %v9196_v16 = vadd.f32 %v8910_v9, %v11511_v33 }
 0x371   : > { %v8911_v37 = vpop.f32.mrb[2].mxu1  ;;  %v9198_v6 = vadd.f32 %v11511_v33, %v3534_v44  ;;  %v7301_v44 = vld [vmem:[%s11515_s16 + $0x50] sm:$0xff] }
 0x372   : > { %v3537_v22 = vpop.f32.mrb[3].mxu1  ;;  %v9200_v10 = vadd.f32 %v8911_v37, %v11511_v33 }
 0x373   : > { %v9202_v28 = vadd.f32 %v11511_v33, %v3537_v22 }
 0x377   : > { %v8914_v29 = vpop.f32.mrb[4].mxu1 }
 0x378   : > { %v3550_v58 = vpop.f32.mrb[5].mxu1  ;;  %v9204_v47 = vadd.f32 %v8914_v29, %v11511_v33 }
 0x379   : > { %v8915_v11 = vpop.f32.mrb[6].mxu1  ;;  %v9206_v54 = vadd.f32 %v11511_v33, %v3550_v58  ;;  %v7299_v58 = vld [vmem:[%s11515_s16 + $0x40] sm:$0xff] }
 0x37a   : > { %v3553_v17 = vpop.f32.mrb[7].mxu1  ;;  %v9208_v41 = vadd.f32 %v8915_v11, %v11511_v33 }
 0x37b   : > { %v9210_v24 = vadd.f32 %v11511_v33, %v3553_v17 }
 0x37f   : > { %v8918_v15 = vpop.f32.mrb[8].mxu1 }
 0x380   : > { %v11488_v30 = vpop.f32.mrb[9].mxu1  ;;  %v9212_v63 = vadd.f32 %v8918_v15, %v11511_v33 }
 0x381   : > { %v11490_v49 = vpop.f32.mrb[10].mxu1  ;;  %v9214_v32 = vadd.f32 %v11511_v33, %v11488_v30 }
 0x382   : > { %v11492_v60 = vpop.f32.mrb[11].mxu1  ;;  %v9216_v37 = vadd.f32 %v11490_v49, %v11511_v33 }
 0x383   : > { %v9218_v11 = vadd.f32 %v11511_v33, %v11492_v60 }
 0x387   : > { %v11494_v52 = vpop.f32.mrb[12].mxu1 }
 0x388   : > { %v11496_v5 = vpop.f32.mrb[13].mxu1 }
 0x389   : > { %v11498_v2 = vpop.f32.mrb[14].mxu1 }
 0x38a   : > { %v11500_v14 = vpop.f32.mrb[15].mxu1 }
 0x3b7   : > { %v9150_v7 = vpop.f32.mrb[0].mxu0 }
 0x3b8   : > { %v9197_v20 = vadd.f32 %v9196_v16, %v9150_v7  ;;  %v7129_v51 = vpop.f32.mrb[1].mxu0  ;;  %v7302_v16 = vld [vmem:[%s11515_s16 + $0x58] sm:$0xff] }
 0x3b9   : > { %v9199_v18 = vadd.f32 %v9198_v6, %v7129_v51  ;;  %v9151_v57 = vpop.f32.mrb[2].mxu0 }
 0x3ba   : > { %v11522_v42 = vadd.f32 %v9197_v20, %v7293_v21  ;;  %v9201_v27 = vadd.f32 %v9200_v10, %v9151_v57  ;;  %v7132_v50 = vpop.f32.mrb[3].mxu0  ;;  %v7300_v10 = vld [vmem:[%s11515_s16 + $0x48] sm:$0xff] }
 0x3bb   : > { %v11525_v46 = vadd.f32 %v9199_v18, %v7291_v39  ;;  %v9203_v35 = vadd.f32 %v9202_v28, %v7132_v50 }
 0x3bc   : > { %7357 = vst [vmem:[%s11515_s16 + $0x10] sm:$0xff] %v11522_v42  ;;  %v11529_v23 = vadd.f32 %v9201_v27, %v7294_v1  ;;  %v9220_v27 = vadd.f32 %v11494_v52, %v11511_v33 }
 0x3bd   : > { %7355 = vst [vmem:[%s11515_s16] sm:$0xff] %v11525_v46  ;;  %v11533_v53 = vadd.f32 %v9203_v35, %v7292_v12  ;;  %v9222_v12 = vadd.f32 %v11511_v33, %v11496_v5 }
 0x3be   : > { %7358 = vst [vmem:[%s11515_s16 + $0x18] sm:$0xff] %v11529_v23 }
 0x3bf   : > { %7356 = vst [vmem:[%s11515_s16 + $0x8] sm:$0xff] %v11533_v53  ;;  %v7387_v56 = vadd.f32 %v11533_v53, %v11525_v46  ;;  %v9154_v38 = vpop.f32.mrb[4].mxu0 }
 0x3c0   : > { %v9205_v43 = vadd.f32 %v9204_v47, %v9154_v38  ;;  %v7145_v34 = vpop.f32.mrb[5].mxu0 }
 0x3c1   : > { %v7388_v26 = vadd.f32 %v7387_v56, %v11522_v42  ;;  %v9207_v19 = vadd.f32 %v9206_v54, %v7145_v34  ;;  %v9155_v45 = vpop.f32.mrb[6].mxu0  ;;  %v7305_v54 = vld [vmem:[%s11515_s16 + $0x70] sm:$0xff]  ;;  %v9224_v56 = vadd.f32 %v11498_v2, %v11511_v33  ;;  %v7304_v2 = vld [vmem:[%s11515_s16 + $0x68] sm:$0xff] }
 0x3c2   : > { %v11549_v59 = vadd.f32 %v9205_v43, %v7297_v55  ;;  %v9209_v40 = vadd.f32 %v9208_v41, %v9155_v45  ;;  %v7148_v13 = vpop.f32.mrb[7].mxu0  ;;  %v7303_v55 = vld [vmem:[%s11515_s16 + $0x60] sm:$0xff]  ;;  %v9226_v41 = vadd.f32 %v11511_v33, %v11500_v14 }
 0x3c3   : > { %v11552_v62 = vadd.f32 %v9207_v19, %v7295_v31  ;;  %v7389_v61 = vadd.f32 %v7388_v26, %v11529_v23  ;;  %v9211_v36 = vadd.f32 %v9210_v24, %v7148_v13  ;;  %v7306_v31 = vld [vmem:[%s11515_s16 + $0x78] sm:$0xff] }
 0x3c4   : > { %7361 = vst [vmem:[%s11515_s16 + $0x30] sm:$0xff] %v11549_v59  ;;  %v11557_v0 = vadd.f32 %v9209_v40, %v7298_v4 }
 0x3c5   : > { %7359 = vst [vmem:[%s11515_s16 + $0x20] sm:$0xff] %v11552_v62  ;;  %v7390_v3 = vadd.f32 %v7389_v61, %v11552_v62  ;;  %v11562_v8 = vadd.f32 %v9211_v36, %v7296_v48 }
 0x3c6   : > { %7362 = vst [vmem:[%s11515_s16 + $0x38] sm:$0xff] %v11557_v0 }
 0x3c7   : > { %7360 = vst [vmem:[%s11515_s16 + $0x28] sm:$0xff] %v11562_v8  ;;  %v7391_v25 = vadd.f32 %v7390_v3, %v11562_v8  ;;  %v9158_v9 = vpop.f32.mrb[8].mxu0 }
 0x3c8   : > { %v9213_v22 = vadd.f32 %v9212_v63, %v9158_v9  ;;  %v7161_v29 = vpop.f32.mrb[9].mxu0 }
 0x3c9   : > { %v7392_v17 = vadd.f32 %v7391_v25, %v11549_v59  ;;  %v9215_v15 = vadd.f32 %v9214_v32, %v7161_v29  ;;  %v9159_v30 = vpop.f32.mrb[10].mxu0 }
 0x3ca   : > { %v11580_v6 = vadd.f32 %v9213_v22, %v7301_v44  ;;  %v9217_v7 = vadd.f32 %v9216_v37, %v9159_v30  ;;  %v7164_v21 = vpop.f32.mrb[11].mxu0  ;;  %v7309_v22 = vld [vmem:[%s11515_s16 + $0x90] sm:$0xff] }
 0x3cb   : > { %v11583_v49 = vadd.f32 %v9215_v15, %v7299_v58  ;;  %v7393_v20 = vadd.f32 %v7392_v17, %v11557_v0  ;;  %v9219_v51 = vadd.f32 %v9218_v11, %v7164_v21  ;;  %v8974_v60 = vpop.f32.mrb[16].mxu1  ;;  %v7307_v17 = vld [vmem:[%s11515_s16 + $0x80] sm:$0xff] }
 0x3cc   : > { %7365 = vst [vmem:[%s11515_s16 + $0x50] sm:$0xff] %v11580_v6  ;;  %v11588_v39 = vadd.f32 %v9217_v7, %v7302_v16  ;;  %v4560_v28 = vpop.f32.mrb[17].mxu1  ;;  %v9228_v63 = vadd.f32 %v8974_v60, %v11511_v33  ;;  %v7310_v7 = vld [vmem:[%s11515_s16 + $0x98] sm:$0xff]  ;;  %v7308_v60 = vld [vmem:[%s11515_s16 + $0x88] sm:$0xff] }
 0x3cd   : > { %7363 = vst [vmem:[%s11515_s16 + $0x40] sm:$0xff] %v11583_v49  ;;  %v7394_v18 = vadd.f32 %v7393_v20, %v11583_v49  ;;  %v11593_v57 = vadd.f32 %v9219_v51, %v7300_v10  ;;  %v8975_v1 = vpop.f32.mrb[18].mxu1  ;;  %v9230_v9 = vadd.f32 %v11511_v33, %v4560_v28 }
 0x3ce   : > { %7366 = vst [vmem:[%s11515_s16 + $0x58] sm:$0xff] %v11588_v39  ;;  %v4563_v50 = vpop.f32.mrb[19].mxu1  ;;  %v9232_v29 = vadd.f32 %v8975_v1, %v11511_v33 }
 0x3cf   : > { %7364 = vst [vmem:[%s11515_s16 + $0x48] sm:$0xff] %v11593_v57  ;;  %v7395_v35 = vadd.f32 %v7394_v18, %v11593_v57  ;;  %v9162_v47 = vpop.f32.mrb[12].mxu0  ;;  %v9234_v15 = vadd.f32 %v11511_v33, %v4563_v50 }
 0x3d0   : > { %v9221_v38 = vadd.f32 %v9220_v27, %v9162_v47  ;;  %v7177_v52 = vpop.f32.mrb[13].mxu0 }
 0x3d1   : > { %v7396_v5 = vadd.f32 %v7395_v35, %v11580_v6  ;;  %v9223_v43 = vadd.f32 %v9222_v12, %v7177_v52  ;;  %v9163_v34 = vpop.f32.mrb[14].mxu0 }
 0x3d2   : > { %v11612_v24 = vadd.f32 %v9221_v38, %v7305_v54  ;;  %v9225_v26 = vadd.f32 %v9224_v56, %v9163_v34  ;;  %v7180_v19 = vpop.f32.mrb[15].mxu0 }
 0x3d3   : > { %v11615_v45 = vadd.f32 %v9223_v43, %v7303_v55  ;;  %v7397_v4 = vadd.f32 %v7396_v5, %v11588_v39  ;;  %v9227_v40 = vadd.f32 %v9226_v41, %v7180_v19  ;;  %v7313_v5 = vld [vmem:[%s11515_s16 + $0xb0] sm:$0xff] }
 0x3d4   : > { %7369 = vst [vmem:[%s11515_s16 + $0x70] sm:$0xff] %v11612_v24  ;;  %v11620_v14 = vadd.f32 %v9225_v26, %v7306_v31  ;;  %v7311_v26 = vld [vmem:[%s11515_s16 + $0xa0] sm:$0xff] }
 0x3d5   : > { %7367 = vst [vmem:[%s11515_s16 + $0x60] sm:$0xff] %v11615_v45  ;;  %v11624_v13 = vadd.f32 %v9227_v40, %v7304_v2  ;;  %v7398_v48 = vadd.f32 %v7397_v4, %v11615_v45 }
 0x3d6   : > { %7370 = vst [vmem:[%s11515_s16 + $0x78] sm:$0xff] %v11620_v14 }
 0x3d7   : > { %7368 = vst [vmem:[%s11515_s16 + $0x68] sm:$0xff] %v11624_v13  ;;  %v7399_v61 = vadd.f32 %v7398_v48, %v11624_v13  ;;  %v7314_v48 = vld [vmem:[%s11515_s16 + $0xb8] sm:$0xff] }
 0x3d9   : > { %v7400_v32 = vadd.f32 %v7399_v61, %v11612_v24 }
 0x3db   : > { %v7401_v10 = vadd.f32 %v7400_v32, %v11620_v14 }
 0x3dc   : > { %v8978_v36 = vpop.f32.mrb[20].mxu1 }
 0x3dd   : > { %v4576_v3 = vpop.f32.mrb[21].mxu1  ;;  %v9236_v56 = vadd.f32 %v8978_v36, %v11511_v33 }
 0x3de   : > { %v8979_v25 = vpop.f32.mrb[22].mxu1  ;;  %v9238_v52 = vadd.f32 %v11511_v33, %v4576_v3 }
 0x3df   : > { %v4579_v44 = vpop.f32.mrb[23].mxu1  ;;  %v9166_v37 = vpop.f32.mrb[16].mxu0  ;;  %v9240_v43 = vadd.f32 %v8979_v25, %v11511_v33 }
 0x3e0   : > { %v9229_v58 = vadd.f32 %v9228_v63, %v9166_v37  ;;  %v7193_v11 = vpop.f32.mrb[17].mxu0  ;;  %v9242_v19 = vadd.f32 %v11511_v33, %v4579_v44  ;;  %v7312_v63 = vld [vmem:[%s11515_s16 + $0xa8] sm:$0xff] }
 0x3e1   : > { %v9231_v30 = vadd.f32 %v9230_v9, %v7193_v11  ;;  %v9167_v16 = vpop.f32.mrb[18].mxu0 }
 0x3e2   : > { %v11640_v21 = vadd.f32 %v9229_v58, %v7309_v22  ;;  %v9233_v20 = vadd.f32 %v9232_v29, %v9167_v16  ;;  %v7196_v51 = vpop.f32.mrb[19].mxu0 }
 0x3e3   : > { %v11644_v28 = vadd.f32 %v9231_v30, %v7307_v17  ;;  %v9235_v18 = vadd.f32 %v9234_v15, %v7196_v51 }
 0x3e4   : > { %7373 = vst [vmem:[%s11515_s16 + $0x90] sm:$0xff] %v11640_v21  ;;  %v11648_v1 = vadd.f32 %v9233_v20, %v7310_v7  ;;  %v7317_v20 = vld [vmem:[%s11515_s16 + $0xd0] sm:$0xff] }
 0x3e5   : > { %7371 = vst [vmem:[%s11515_s16 + $0x80] sm:$0xff] %v11644_v28  ;;  %v11652_v27 = vadd.f32 %v9235_v18, %v7308_v60  ;;  %v7402_v50 = vadd.f32 %v7401_v10, %v11644_v28 }
 0x3e6   : > { %7374 = vst [vmem:[%s11515_s16 + $0x98] sm:$0xff] %v11648_v1 }
 0x3e7   : > { %7372 = vst [vmem:[%s11515_s16 + $0x88] sm:$0xff] %v11652_v27  ;;  %v7403_v12 = vadd.f32 %v7402_v50, %v11652_v27  ;;  %v7315_v50 = vld [vmem:[%s11515_s16 + $0xc0] sm:$0xff] }
 0x3e9   : > { %v7404_v47 = vadd.f32 %v7403_v12, %v11640_v21 }
 0x3eb   : > { %v7405_v4 = vadd.f32 %v7404_v47, %v11648_v1 }
 0x3ed   : > { %v8982_v35 = vpop.f32.mrb[24].mxu1 }
 0x3ee   : > { %v4592_v54 = vpop.f32.mrb[25].mxu1  ;;  %v9244_v15 = vadd.f32 %v8982_v35, %v11511_v33  ;;  %v7318_v35 = vld [vmem:[%s11515_s16 + $0xd8] sm:$0xff] }
 0x3ef   : > { %v8983_v38 = vpop.f32.mrb[26].mxu1  ;;  %v9246_v16 = vadd.f32 %v11511_v33, %v4592_v54 }
 0x3f0   : > { %v4595_v55 = vpop.f32.mrb[27].mxu1  ;;  %v9170_v41 = vpop.f32.mrb[20].mxu0  ;;  %v9248_v51 = vadd.f32 %v8983_v38, %v11511_v33 }
 0x3f1   : > { %v9237_v34 = vadd.f32 %v9236_v56, %v9170_v41  ;;  %v7209_v31 = vpop.f32.mrb[21].mxu0  ;;  %v9250_v12 = vadd.f32 %v11511_v33, %v4595_v55 }
 0x3f2   : > { %v9239_v2 = vadd.f32 %v9238_v52, %v7209_v31  ;;  %v9171_v40 = vpop.f32.mrb[22].mxu0 }
 0x3f3   : > { %v11669_v61 = vadd.f32 %v9237_v34, %v7313_v5  ;;  %v9241_v36 = vadd.f32 %v9240_v43, %v9171_v40  ;;  %v7212_v3 = vpop.f32.mrb[23].mxu0  ;;  %v7316_v5 = vld [vmem:[%s11515_s16 + $0xc8] sm:$0xff]  ;;  %v7321_v40 = vld [vmem:[%s11515_s16 + $0xf0] sm:$0xff] }
 0x3f4   : > { %v11672_v32 = vadd.f32 %v9239_v2, %v7311_v26  ;;  %v9243_v25 = vadd.f32 %v9242_v19, %v7212_v3 }
 0x3f5   : > { %7377 = vst [vmem:[%s11515_s16 + $0xb0] sm:$0xff] %v11669_v61  ;;  %v11676_v9 = vadd.f32 %v9241_v36, %v7314_v48 }
 0x3f6   : > { %7375 = vst [vmem:[%s11515_s16 + $0xa0] sm:$0xff] %v11672_v32  ;;  %v7406_v44 = vadd.f32 %v7405_v4, %v11672_v32  ;;  %v11681_v37 = vadd.f32 %v9243_v25, %v7312_v63  ;;  %v7319_v63 = vld [vmem:[%s11515_s16 + $0xe0] sm:$0xff] }
 0x3f7   : > { %7378 = vst [vmem:[%s11515_s16 + $0xb8] sm:$0xff] %v11676_v9 }
 0x3f8   : > { %7376 = vst [vmem:[%s11515_s16 + $0xa8] sm:$0xff] %v11681_v37  ;;  %v7407_v22 = vadd.f32 %v7406_v44, %v11681_v37 }
 0x3fa   : > { %v7408_v29 = vadd.f32 %v7407_v22, %v11669_v61 }
 0x3fc   : > { %v7409_v58 = vadd.f32 %v7408_v29, %v11676_v9 }
 0x3fe   : > { %v8986_v11 = vpop.f32.mrb[28].mxu1 }
 0x3ff   : > { %v4608_v17 = vpop.f32.mrb[29].mxu1  ;;  %v9252_v26 = vadd.f32 %v8986_v11, %v11511_v33 }
 0x400   : > { %v8987_v30 = vpop.f32.mrb[30].mxu1  ;;  %v9254_v19 = vadd.f32 %v11511_v33, %v4608_v17 }
 0x401   : > { %v4611_v7 = vpop.f32.mrb[31].mxu1  ;;  %v9174_v10 = vpop.f32.mrb[24].mxu0  ;;  %v9256_v48 = vadd.f32 %v8987_v30, %v11511_v33  ;;  %v7320_v30 = vld [vmem:[%s11515_s16 + $0xe8] sm:$0xff] }
 0x402   : > { %v9245_v60 = vadd.f32 %v9244_v15, %v9174_v10  ;;  %v7225_v18 = vpop.f32.mrb[25].mxu0  ;;  %v9258_v25 = vadd.f32 %v11511_v33, %v4611_v7 }
 0x403   : > { %v9247_v47 = vadd.f32 %v9246_v16, %v7225_v18  ;;  %v9175_v56 = vpop.f32.mrb[26].mxu0 }
 0x404   : > { %v11697_v52 = vadd.f32 %v9245_v60, %v7317_v20  ;;  %v9249_v54 = vadd.f32 %v9248_v51, %v9175_v56  ;;  %v7228_v41 = vpop.f32.mrb[27].mxu0 }
 0x405   : > { %v11700_v43 = vadd.f32 %v9247_v47, %v7315_v50  ;;  %v9251_v38 = vadd.f32 %v9250_v12, %v7228_v41 }
 0x406   : > { %7381 = vst [vmem:[%s11515_s16 + $0xd0] sm:$0xff] %v11697_v52  ;;  %v11704_v34 = vadd.f32 %v9249_v54, %v7318_v35 }
 0x407   : > { %7379 = vst [vmem:[%s11515_s16 + $0xc0] sm:$0xff] %v11700_v43  ;;  %v7410_v55 = vadd.f32 %v7409_v58, %v11700_v43  ;;  %v11709_v31 = vadd.f32 %v9251_v38, %v7316_v5  ;;  %v7322_v58 = vld [vmem:[%s11515_s16 + $0xf8] sm:$0xff] }
 0x408   : > { %7382 = vst [vmem:[%s11515_s16 + $0xd8] sm:$0xff] %v11704_v34 }
 0x409   : > { %7380 = vst [vmem:[%s11515_s16 + $0xc8] sm:$0xff] %v11709_v31  ;;  %v7411_v2 = vadd.f32 %v7410_v55, %v11709_v31  ;;  %v9178_v4 = vpop.f32.mrb[28].mxu0 }
 0x40a   : > { %v9253_v36 = vadd.f32 %v9252_v26, %v9178_v4  ;;  %v7241_v3 = vpop.f32.mrb[29].mxu0 }
 0x40b   : > { %v7412_v44 = vadd.f32 %v7411_v2, %v11697_v52  ;;  %v9255_v22 = vadd.f32 %v9254_v19, %v7241_v3  ;;  %v9179_v29 = vpop.f32.mrb[30].mxu0 }
 0x40c   : > { %v7353_v11 = vadd.f32 %v9253_v36, %v7321_v40  ;;  %v9257_v17 = vadd.f32 %v9256_v48, %v9179_v29  ;;  %v7244_v15 = vpop.f32.mrb[31].mxu0 }
 0x40d   : > { %v7351_v16 = vadd.f32 %v9255_v22, %v7319_v63  ;;  %v7413_v10 = vadd.f32 %v7412_v44, %v11704_v34  ;;  %v9259_v33 = vadd.f32 %v9258_v25, %v7244_v15 }
 0x40e   : > { %7385 = vst [vmem:[%s11515_s16 + $0xf0] sm:$0xff] %v7353_v11  ;;  %v7354_v7 = vadd.f32 %v9257_v17, %v7322_v58 }
 0x40f   : > { %7383 = vst [vmem:[%s11515_s16 + $0xe0] sm:$0xff] %v7351_v16  ;;  %v7414_v20 = vadd.f32 %v7413_v10, %v7351_v16  ;;  %v7352_v51 = vadd.f32 %v9259_v33, %v7320_v30 }
 0x410   : > { %7386 = vst [vmem:[%s11515_s16 + $0xf8] sm:$0xff] %v7354_v7 }
 0x411   : > { %7384 = vst [vmem:[%s11515_s16 + $0xe8] sm:$0xff] %v7352_v51  ;;  %v7415_v60 = vadd.f32 %v7414_v20, %v7352_v51 }
 0x412   : > { %10132 = shalt.err (!%p10129_p7)
}
 0x413   : > { %s10133_s21 = scalar_lea.hbm %s11888_s6, 4096 }
 0x414   : > { %p10134_p8 = scmp.ne.s32.totalorder %s11888_s6, %s10133_s21  ;;  %p10139_p1 = scmp.lt.u32.totalorder %s10133_s21, %s11888_s6 }
 0x416   : > { %p10135_p9 = pnand %p10134_p8, %p9498_p5 }
 0x418   : > { %p10136_p13 = pneg %p10135_p9 }
 0x41a   : > { %p10141_p3 = pnand %p10139_p1, %p10136_p13 }
 0x41c   : > { %10144 = shalt.err (!%p10141_p3)
}
 0x41d   : > { %s10196_s25 = smov 128   ;;  %s10197_s28 = smov 8   ;;  %v7416_v18 = vadd.f32 %v7415_v60, %v7353_v11 }
 0x41e   : > { %9490 = dma.vmem_to_hbm [thread:$0]  (%p9498_p5), %s7539_s15, 4096, %s11888_s6, [#allocation10], %s10196_s25, %s10196_s25, %s10197_s28  }
 0x41f   : > { %v7417_v50 = vadd.f32 %v7416_v18, %v7354_v7  ;;  %s8494_s12 = sshll.u32 %s11503_s27, 3 }
 0x420   : > { %s7426_s24 = scalar_lea.vmem [#allocation3], %s8494_s12  ;;  %s7530_s29 = scalar_lea.vmem [#allocation4], %s8494_s12 }
 0x421   : > { %v7418_v12 = vrot.slane %v7417_v50, 4 }
 0x423   : > { %v7419_v47 = vadd.f32 %v7418_v12, %v7417_v50 }
 0x425   : > { %v7420_v56 = vrot.slane %v7419_v47, 2 }
 0x427   : > { %v7421_v35 = vadd.f32 %v7420_v56, %v7419_v47 }
 0x429   : > { %v7422_v54 = vrot.slane %v7421_v35, 1 }
 0x42b   : > { %v7423_v41 = vadd.f32 %v7422_v54, %v7421_v35 }
 0x42d   : > { %v11750_v5 = vmul.f32 0.00390625, %v7423_v41 }
 0x42f   : > { %7427 = vst [vmem:[%s7426_s24] sm:$0x1] %v11750_v5  ;;  %v11757_v38 = vsub.f32 %v11672_v32, %v11750_v5  ;;  %v11761_v55 = vsub.f32 %v11681_v37, %v11750_v5  ;;  %v11765_v26 = vsub.f32 %v11669_v61, %v11750_v5  ;;  %v11769_v19 = vsub.f32 %v11676_v9, %v11750_v5 }
 0x430   : > { %v11773_v2 = vsub.f32 %v11700_v43, %v11750_v5  ;;  %v11777_v32 = vsub.f32 %v11709_v31, %v11750_v5  ;;  %v11781_v37 = vsub.f32 %v11697_v52, %v11750_v5  ;;  %v11785_v61 = vsub.f32 %v11704_v34, %v11750_v5 }
 0x431   : > { %v11788_v4 = vsub.f32 %v7351_v16, %v11750_v5  ;;  %v11791_v9 = vsub.f32 %v7352_v51, %v11750_v5  ;;  %v11794_v43 = vsub.f32 %v7353_v11, %v11750_v5  ;;  %v11797_v31 = vsub.f32 %v7354_v7, %v11750_v5 }
 0x432   : > { %v7428_v52 = vsub.f32 %v11525_v46, %v11750_v5  ;;  %v7429_v40 = vsub.f32 %v11533_v53, %v11750_v5  ;;  %v7430_v34 = vsub.f32 %v11522_v42, %v11750_v5  ;;  %v7431_v3 = vsub.f32 %v11529_v23, %v11750_v5 }
 0x433   : > { %v7432_v63 = vsub.f32 %v11552_v62, %v11750_v5  ;;  %v7433_v22 = vsub.f32 %v11562_v8, %v11750_v5  ;;  %v7434_v53 = vsub.f32 %v11549_v59, %v11750_v5  ;;  %v7435_v11 = vsub.f32 %v11557_v0, %v11750_v5 }
 0x434   : > { %v7460_v48 = vmul.f32 %v7428_v52, %v7428_v52  ;;  %v7461_v36 = vmul.f32 %v7429_v40, %v7429_v40  ;;  %v7462_v25 = vmul.f32 %v7430_v34, %v7430_v34  ;;  %v7463_v46 = vmul.f32 %v7431_v3, %v7431_v3 }
 0x435   : > { %v7464_v58 = vmul.f32 %v7432_v63, %v7432_v63  ;;  %v7465_v17 = vmul.f32 %v7433_v22, %v7433_v22  ;;  %v7436_v62 = vsub.f32 %v11583_v49, %v11750_v5  ;;  %v7466_v15 = vmul.f32 %v7434_v53, %v7434_v53 }
 0x436   : > { %v7492_v44 = vadd.f32 %v7461_v36, %v7460_v48  ;;  %v7437_v8 = vsub.f32 %v11593_v57, %v11750_v5  ;;  %v7467_v16 = vmul.f32 %v7435_v11, %v7435_v11  ;;  %v7438_v59 = vsub.f32 %v11580_v6, %v11750_v5 }
 0x437   : > { %v7468_v33 = vmul.f32 %v7436_v62, %v7436_v62  ;;  %v7439_v0 = vsub.f32 %v11588_v39, %v11750_v5  ;;  %v7440_v49 = vsub.f32 %v11615_v45, %v11750_v5  ;;  %v7441_v57 = vsub.f32 %v11624_v13, %v11750_v5 }
 0x438   : > { %v7493_v29 = vadd.f32 %v7492_v44, %v7462_v25  ;;  %v7469_v20 = vmul.f32 %v7437_v8, %v7437_v8  ;;  %v7470_v60 = vmul.f32 %v7438_v59, %v7438_v59  ;;  %v7442_v6 = vsub.f32 %v11612_v24, %v11750_v5 }
 0x439   : > { %v7471_v50 = vmul.f32 %v7439_v0, %v7439_v0  ;;  %v7472_v47 = vmul.f32 %v7440_v49, %v7440_v49  ;;  %v7443_v39 = vsub.f32 %v11620_v14, %v11750_v5  ;;  %v7473_v35 = vmul.f32 %v7441_v57, %v7441_v57 }
 0x43a   : > { %v7494_v42 = vadd.f32 %v7493_v29, %v7463_v46  ;;  %v7444_v45 = vsub.f32 %v11644_v28, %v11750_v5  ;;  %v7474_v41 = vmul.f32 %v7442_v6, %v7442_v6  ;;  %v7445_v13 = vsub.f32 %v11652_v27, %v11750_v5 }
 0x43b   : > { %v7475_v40 = vmul.f32 %v7443_v39, %v7443_v39  ;;  %v7446_v24 = vsub.f32 %v11640_v21, %v11750_v5  ;;  %v7447_v14 = vsub.f32 %v11648_v1, %v11750_v5  ;;  %v7480_v46 = vmul.f32 %v11757_v38, %v11757_v38 }
 0x43c   : > { %v7495_v23 = vadd.f32 %v7494_v42, %v7464_v58  ;;  %v7476_v48 = vmul.f32 %v7444_v45, %v7444_v45  ;;  %v7477_v3 = vmul.f32 %v7445_v13, %v7445_v13  ;;  %v7481_v29 = vmul.f32 %v11761_v55, %v11761_v55 }
 0x43d   : > { %v7478_v25 = vmul.f32 %v7446_v24, %v7446_v24  ;;  %v7479_v28 = vmul.f32 %v7447_v14, %v7447_v14  ;;  %v7482_v21 = vmul.f32 %v11765_v26, %v11765_v26  ;;  %v7483_v1 = vmul.f32 %v11769_v19, %v11769_v19 }
 0x43e   : > { %v7496_v30 = vadd.f32 %v7495_v23, %v7465_v17  ;;  %v7484_v42 = vmul.f32 %v11773_v2, %v11773_v2  ;;  %v7485_v38 = vmul.f32 %v11777_v32, %v11777_v32  ;;  %v7486_v55 = vmul.f32 %v11781_v37, %v11781_v37 }
 0x43f   : > { %v7487_v26 = vmul.f32 %v11785_v61, %v11785_v61  ;;  %v7488_v19 = vmul.f32 %v11788_v4, %v11788_v4  ;;  %v7489_v2 = vmul.f32 %v11791_v9, %v11791_v9  ;;  %v7490_v32 = vmul.f32 %v11794_v43, %v11794_v43 }
 0x440   : > { %v7497_v10 = vadd.f32 %v7496_v30, %v7466_v15  ;;  %v7491_v37 = vmul.f32 %v11797_v31, %v11797_v31 }
 0x442   : > { %v7498_v7 = vadd.f32 %v7497_v10, %v7467_v16 }
 0x444   : > { %v7499_v51 = vadd.f32 %v7498_v7, %v7468_v33 }
 0x446   : > { %v7500_v18 = vadd.f32 %v7499_v51, %v7469_v20 }
 0x448   : > { %v7501_v12 = vadd.f32 %v7500_v18, %v7470_v60 }
 0x44a   : > { %v7502_v56 = vadd.f32 %v7501_v12, %v7471_v50 }
 0x44c   : > { %v7503_v54 = vadd.f32 %v7502_v56, %v7472_v47 }
 0x44e   : > { %v7504_v52 = vadd.f32 %v7503_v54, %v7473_v35 }
 0x450   : > { %v7505_v34 = vadd.f32 %v7504_v52, %v7474_v41 }
 0x452   : > { %v7506_v36 = vadd.f32 %v7505_v34, %v7475_v40 }
 0x454   : > { %v7507_v63 = vadd.f32 %v7506_v36, %v7476_v48 }
 0x456   : > { %v7508_v44 = vadd.f32 %v7507_v63, %v7477_v3 }
 0x458   : > { %v7509_v22 = vadd.f32 %v7508_v44, %v7478_v25 }
 0x45a   : > { %v7510_v27 = vadd.f32 %v7509_v22, %v7479_v28 }
 0x45c   : > { %v7511_v53 = vadd.f32 %v7510_v27, %v7480_v46 }
 0x45e   : > { %v7512_v58 = vadd.f32 %v7511_v53, %v7481_v29 }
 0x460   : > { %v7513_v5 = vadd.f32 %v7512_v58, %v7482_v21 }
 0x462   : > { %v7514_v11 = vadd.f32 %v7513_v5, %v7483_v1 }
 0x464   : > { %v7515_v17 = vadd.f32 %v7514_v11, %v7484_v42 }
 0x466   : > { %v7516_v23 = vadd.f32 %v7515_v17, %v7485_v38 }
 0x468   : > { %v7517_v62 = vadd.f32 %v7516_v23, %v7486_v55 }
 0x46a   : > { %v7518_v15 = vadd.f32 %v7517_v62, %v7487_v26 }
 0x46c   : > { %v7519_v30 = vadd.f32 %v7518_v15, %v7488_v19 }
 0x46e   : > { %v7520_v8 = vadd.f32 %v7519_v30, %v7489_v2 }
 0x470   : > { %v7521_v16 = vadd.f32 %v7520_v8, %v7490_v32 }
 0x472   : > { %v7522_v61 = vadd.f32 %v7521_v16, %v7491_v37 }
 0x474   : > { %v7523_v10 = vrot.slane %v7522_v61, 4 }
 0x476   : > { %v7524_v59 = vadd.f32 %v7523_v10, %v7522_v61 }
 0x478   : > { %v7525_v33 = vrot.slane %v7524_v59, 2 }
 0x47a   : > { %v7526_v4 = vadd.f32 %v7525_v33, %v7524_v59 }
 0x47c   : > { %v7527_v7 = vrot.slane %v7526_v4, 1 }
 0x47e   : > { %v7528_v0 = vadd.f32 %v7527_v7, %v7526_v4 }
 0x480   : > { %v7529_v20 = vmul.f32 0.00390625, %v7528_v0 }
 0x482   : > { %7531 = vst [vmem:[%s7530_s29] sm:$0x1] %v7529_v20 }
 0x483   : > { %10170 = dma.done.wait (%p9498_p5), [#allocation10], 4096  }
 0x484   : > { %10172 = vsyncadd (%p9498_p5), [#allocation10], 4294963200 }
 0x485 PF: > { %p21_p4 = scmp.ge.s32.totalorder %s10267_s11, 4   ;;  %s11902_s7 = smov %s10179_s8 }
 0x486   : > { %s11903_s8 = smov %s10183_s9  ;;  %s11904_s9 = smov %s10277_s14 }
 0x487   : > { %s11905_s10 = smov %s10267_s11  ;;  %23 = sbr.rel (!%p21_p4) target bundleno = 16 (0x10), region = 104 }
 0x48e   :  { %7554 = vsyncpa [#allocation9], 1 }
 0x48f   :  { %7556 = vsyncpa [#allocation9 + $0x1], 1 }
 0x490   :  { %7557 = vsyncpa [#allocation10], 1 }
 0x491   :  { %7559 = vsyncpa [#allocation10 + $0x1], 1 }
 0x492   :  { %7560 = vsyncmov [#allocation5] }
 0x495   :  { %s7561_s0 = vpop.sfrf %7560 }
 0x496   :  { %p8499_p5 = scmp.ne.s32.totalorder %s7561_s0, 0 }
 0x498   :  { %7565 = shalt.err (%p8499_p5)  }

</bundles_post_ra>
